<compile_context>
chip_gen: v6e
topology: v6e:2x2x1
jax: 0.10.0
libtpu: 0.0.40
codegen_flags: <defaults>
</compile_context>

<pallas_src>
import functools

import numpy as np

import jax
import jax.numpy as jnp
from jax import lax
from jax.experimental import pallas as pl
from jax.experimental.pallas import tpu as pltpu


# ----------------------------------------------------------------------------
# Fused network kernel: BT images per grid step
# ----------------------------------------------------------------------------
def _net_kernel(x_ref, t1_ref, b1_ref, sel1_ref, t2_ref, b2_ref, sel2_ref,
                wf1_ref, selc_ref, bf1_ref, wf2_ref, bf2_ref, wf3_ref, bf3_ref,
                out_ref):
    f32 = jnp.float32
    bf16 = jnp.bfloat16
    bt = out_ref.shape[0]                 # images per step
    n1, n2, n3 = bt * 32, bt * 16, bt * 8

    xs = x_ref[0]                         # (bt*32+8, 128) f32, lane = w*3+ci

    # ---- conv1 (3->6, 5x5, valid) + bias + relu ---------------------------
    # a1[b*32+h, w*6+co] for h in [0,28); rows with h>=28 are garbage (unused).
    a1 = jnp.dot(xs[0:n1].astype(bf16), t1_ref[0], preferred_element_type=f32)
    for di in range(1, 5):
        a1 = a1 + jnp.dot(xs[di:di + n1].astype(bf16), t1_ref[di],
                          preferred_element_type=f32)
    a1 = jnp.maximum(a1 + b1_ref[...], 0.0)                 # (n1, 168)

    # ---- pool1 (2x2, stride 2) --------------------------------------------
    # Row pairs first, then host-precomputed 0/1 selection (per-image stride 16),
    # then lane-shift max; width compaction deferred into t2's zero rows.
    mh = jnp.maximum(a1[0:n1 - 1, :], a1[1:n1, :]).astype(bf16)
    p1 = jnp.dot(sel1_ref[...], mh, preferred_element_type=f32)   # (n2+8, 168)
    pw = jnp.maximum(p1[:, 0:162], p1[:, 6:168])                  # (n2+8, 162)
    # Valid pooled values at rows b*16+h2 (h2<14), lanes 12*w2+ci.

    # ---- conv2 (6->16, 5x5, valid) + bias + relu --------------------------
    a2 = jnp.dot(pw[0:n2].astype(bf16), t2_ref[0], preferred_element_type=f32)
    for di in range(1, 5):
        a2 = a2 + jnp.dot(pw[di:di + n2].astype(bf16), t2_ref[di],
                          preferred_element_type=f32)
    a2 = jnp.maximum(a2 + b2_ref[...], 0.0)                 # (n2, 160)
    # Valid at rows b*16+h (h<10), lanes wo*16+co.

    # ---- pool2 (2x2, stride 2) --------------------------------------------
    m2 = jnp.maximum(a2[0:n2 - 1, :], a2[1:n2, :]).astype(bf16)
    p2 = jnp.dot(sel2_ref[...], m2, preferred_element_type=f32)   # (n3+8, 160)
    pw2 = jnp.maximum(p2[:, 0:144], p2[:, 16:160])                # (n3+8, 144)
    # Valid at rows b*8+h5 (h5<5), lanes 32*w5+co.

    # ---- fc1 (400 -> 120) via the same row-shift trick; PyTorch (C,H,W)
    # flatten is folded into wf1 on the host.  Valid outputs at rows b*8.
    z1 = jnp.dot(pw2[0:n3].astype(bf16), wf1_ref[0], preferred_element_type=f32)
    for h5 in range(1, 5):
        z1 = z1 + jnp.dot(pw2[h5:h5 + n3].astype(bf16), wf1_ref[h5],
                          preferred_element_type=f32)
    # Compact to one row per image, then bias + relu.
    zc = jnp.dot(selc_ref[...], z1.astype(bf16), preferred_element_type=f32)
    z = jnp.maximum(zc + bf1_ref[...], 0.0)                 # (bt, 128)

    # ---- fc2 (120 -> 84, relu) and fc3 (84 -> 10) --------------------------
    z = jnp.maximum(jnp.dot(z.astype(bf16), wf2_ref[...],
                            preferred_element_type=f32) + bf2_ref[...], 0.0)
    z = jnp.dot(z.astype(bf16), wf3_ref[...],
                preferred_element_type=f32) + bf3_ref[...]

    out_ref[...] = z                                        # logits in lanes 0..9


# ----------------------------------------------------------------------------
# Wrapper: one pallas_call over the batch, BT images per grid step
# ----------------------------------------------------------------------------
def net_forward(x_nchw, kp, bt=8):
    B = x_nchw.shape[0]
    G = -(-B // bt)
    Bpad = G * bt

    # One-time layout prep: NCHW -> channel-last lane-dense (lane = w*3+ci),
    # pad lanes to 128, stack BT images per group, pad 8 rows for the shifts.
    xcl = jnp.transpose(x_nchw, (0, 2, 3, 1)).reshape(B, 32, 96)
    xcl = jnp.pad(xcl, ((0, Bpad - B), (0, 0), (0, 32)))
    xg = xcl.reshape(G, bt * 32, 128)
    xg = jnp.pad(xg, ((0, 0), (0, 8), (0, 0)))              # (G, bt*32+8, 128)

    out = pl.pallas_call(
        _net_kernel,
        out_shape=jax.ShapeDtypeStruct((Bpad, 128), jnp.float32),
        grid=(G,),
        in_specs=[
            pl.BlockSpec((1, bt * 32 + 8, 128), lambda g: (g, 0, 0)),  # images
            pl.BlockSpec((5, 128, 168), lambda g: (0, 0, 0)),          # conv1 Toeplitz
            pl.BlockSpec((1, 168), lambda g: (0, 0)),                  # conv1 bias row
            pl.BlockSpec((bt * 16 + 8, bt * 32 - 1), lambda g: (0, 0)),  # pool1 sel
            pl.BlockSpec((5, 162, 160), lambda g: (0, 0, 0)),          # conv2 Toeplitz
            pl.BlockSpec((1, 160), lambda g: (0, 0)),                  # conv2 bias row
            pl.BlockSpec((bt * 8 + 8, bt * 16 - 1), lambda g: (0, 0)),   # pool2 sel
            pl.BlockSpec((5, 144, 128), lambda g: (0, 0, 0)),          # fc1 (padded)
            pl.BlockSpec((bt, bt * 8), lambda g: (0, 0)),              # row-compaction sel
            pl.BlockSpec((1, 128), lambda g: (0, 0)),                  # fc1 bias
            pl.BlockSpec((128, 128), lambda g: (0, 0)),                # fc2 (padded)
            pl.BlockSpec((1, 128), lambda g: (0, 0)),                  # fc2 bias
            pl.BlockSpec((128, 128), lambda g: (0, 0)),                # fc3 (padded)
            pl.BlockSpec((1, 128), lambda g: (0, 0)),                  # fc3 bias
        ],
        out_specs=pl.BlockSpec((bt, 128), lambda g: (g, 0)),
        compiler_params=pltpu.CompilerParams(
            dimension_semantics=("parallel",)),
    )(xg, kp["t1"], kp["b1"], kp["sel1"], kp["t2"], kp["b2"], kp["sel2"],
      kp["wf1"], kp["selc"], kp["bf1"], kp["wf2"], kp["bf2"],
      kp["wf3"], kp["bf3"])
    return out[:B, :10]


# ----------------------------------------------------------------------------
# One-time host-side parameter preparation (PyTorch layout -> kernel operands)
# ----------------------------------------------------------------------------
def prepare_kernel_params(p, bt=8):
    w1 = np.asarray(p["conv1_w"], np.float32)   # (6, 3, 5, 5)
    b1 = np.asarray(p["conv1_b"], np.float32)
    w2 = np.asarray(p["conv2_w"], np.float32)   # (16, 6, 5, 5)
    b2 = np.asarray(p["conv2_b"], np.float32)
    f1w = np.asarray(p["fc1_w"], np.float32)    # (120, 400)
    f1b = np.asarray(p["fc1_b"], np.float32)
    f2w = np.asarray(p["fc2_w"], np.float32)    # (84, 120)
    f2b = np.asarray(p["fc2_b"], np.float32)
    f3w = np.asarray(p["fc3_w"], np.float32)    # (10, 84)
    f3b = np.asarray(p["fc3_b"], np.float32)

    # conv1 Toeplitz over channel-last lanes: t1[di][(w+dj)*3+ci, w*6+co]
    t1 = np.zeros((5, 128, 168), np.float32)
    for di in range(5):
        for w in range(28):
            for dj in range(5):
                for ci in range(3):
                    t1[di, (w + dj) * 3 + ci, w * 6:(w + 1) * 6] = w1[:, ci, di, dj]
    b1row = np.tile(b1, 28)[None, :]                          # (1, 168)

    # conv2 Toeplitz over the deferred-compaction pool1 layout:
    # t2[di][(wo+dj)*12 + ci, wo*16 + co] = w2[co, ci, di, dj]; other rows zero.
    t2 = np.zeros((5, 162, 160), np.float32)
    for di in range(5):
        for wo in range(10):
            for dj in range(5):
                for ci in range(6):
                    t2[di, (wo + dj) * 12 + ci, wo * 16:(wo + 1) * 16] = w2[:, ci, di, dj]
    b2row = np.tile(b2, 10)[None, :]                          # (1, 160)

    # fc1 with PyTorch (C,H,W) flatten folded in, padded to 128 output lanes:
    # wf1[h5][32*w5 + co, n] = f1w[n, co*25 + h5*5 + w5]; other rows zero.
    wf1 = np.zeros((5, 144, 128), np.float32)
    for h5 in range(5):
        for w5 in range(5):
            for co in range(16):
                wf1[h5, w5 * 32 + co, :120] = f1w[:, co * 25 + h5 * 5 + w5]
    bf1 = np.zeros((1, 128), np.float32)
    bf1[0, :120] = f1b

    wf2 = np.zeros((128, 128), np.float32)
    wf2[:120, :84] = f2w.T
    bf2 = np.zeros((1, 128), np.float32)
    bf2[0, :84] = f2b

    wf3 = np.zeros((128, 128), np.float32)
    wf3[:84, :10] = f3w.T
    bf3 = np.zeros((1, 128), np.float32)
    bf3[0, :10] = f3b

    # Host-precomputed 0/1 pool / compaction selection matrices (exact in bf16).
    sel1 = np.zeros((bt * 16 + 8, bt * 32 - 1), np.float32)
    for b in range(bt):
        for h2 in range(14):
            sel1[b * 16 + h2, b * 32 + 2 * h2] = 1.0
    sel2 = np.zeros((bt * 8 + 8, bt * 16 - 1), np.float32)
    for b in range(bt):
        for k in range(5):
            sel2[b * 8 + k, b * 16 + 2 * k] = 1.0
    selc = np.zeros((bt, bt * 8), np.float32)
    for b in range(bt):
        selc[b, b * 8] = 1.0

    jb = lambda a: jnp.asarray(a, jnp.bfloat16)
    jf = lambda a: jnp.asarray(a, jnp.float32)
    return {"t1": jb(t1), "b1": jf(b1row), "sel1": jb(sel1),
            "t2": jb(t2), "b2": jf(b2row), "sel2": jb(sel2),
            "wf1": jb(wf1), "selc": jb(selc), "bf1": jf(bf1),
            "wf2": jb(wf2), "bf2": jf(bf2), "wf3": jb(wf3), "bf3": jf(bf3)}


def init_torch_params(key):
    ks = jax.random.split(key, 10)
    return {
        "conv1_w": jax.random.normal(ks[0], (6, 3, 5, 5), jnp.float32) * 0.1,
        "conv1_b": jax.random.normal(ks[1], (6,), jnp.float32) * 0.1,
        "conv2_w": jax.random.normal(ks[2], (16, 6, 5, 5), jnp.float32) * 0.1,
        "conv2_b": jax.random.normal(ks[3], (16,), jnp.float32) * 0.1,
        "fc1_w": jax.random.normal(ks[4], (120, 400), jnp.float32) * 0.05,
        "fc1_b": jax.random.normal(ks[5], (120,), jnp.float32) * 0.05,
        "fc2_w": jax.random.normal(ks[6], (84, 120), jnp.float32) * 0.05,
        "fc2_b": jax.random.normal(ks[7], (84,), jnp.float32) * 0.05,
        "fc3_w": jax.random.normal(ks[8], (10, 84), jnp.float32) * 0.05,
        "fc3_b": jax.random.normal(ks[9], (10,), jnp.float32) * 0.05,
    }


# ----------------------------------------------------------------------------
# Pure-JAX reference (faithful translation of the PyTorch module)
# ----------------------------------------------------------------------------
def reference_forward(x, p):
    y = lax.conv_general_dilated(x, p["conv1_w"], (1, 1), "VALID",
                                 dimension_numbers=("NCHW", "OIHW", "NCHW"))
    y = jnp.maximum(y + p["conv1_b"][None, :, None, None], 0.0)
    y = lax.reduce_window(y, -jnp.inf, lax.max, (1, 1, 2, 2), (1, 1, 2, 2), "VALID")
    y = lax.conv_general_dilated(y, p["conv2_w"], (1, 1), "VALID",
                                 dimension_numbers=("NCHW", "OIHW", "NCHW"))
    y = jnp.maximum(y + p["conv2_b"][None, :, None, None], 0.0)
    y = lax.reduce_window(y, -jnp.inf, lax.max, (1, 1, 2, 2), (1, 1, 2, 2), "VALID")
    y = y.reshape(y.shape[0], 16 * 5 * 5)
    y = jnp.maximum(y @ p["fc1_w"].T + p["fc1_b"], 0.0)
    y = jnp.maximum(y @ p["fc2_w"].T + p["fc2_b"], 0.0)
    return y @ p["fc3_w"].T + p["fc3_b"]


if __name__ == "__main__":
    key = jax.random.PRNGKey(0)
    kx, kparam = jax.random.split(key)
    B, BT = 16, 8   # 16 CIFAR-sized images, 8 per grid step -> grid of 2
    x = jax.random.normal(kx, (B, 3, 32, 32), jnp.float32)

    torch_params = init_torch_params(kparam)
    kernel_params = prepare_kernel_params(torch_params, BT)

    fwd = jax.jit(functools.partial(net_forward, bt=BT))
    out = jax.block_until_ready(fwd(x, kernel_params))
    assert out.shape == (B, 10), out.shape

    with jax.default_matmul_precision("highest"):
        ref = jax.block_until_ready(jax.jit(reference_forward)(x, torch_params))
    np.testing.assert_allclose(np.asarray(out), np.asarray(ref),
                               rtol=5e-2, atol=2e-2)

    print("KERNEL_OK")
</pallas_src>

<mosaic_0001>
module attributes {stable_mosaic.version = 11 : i64} {
  func.func @_net_kernel(%arg0: i32, %arg1: memref<1x264x128xf32, #tpu.memory_space<vmem>>, %arg2: memref<5x128x168xbf16, #tpu.memory_space<vmem>>, %arg3: memref<1x168xf32, #tpu.memory_space<vmem>>, %arg4: memref<136x255xbf16, #tpu.memory_space<vmem>>, %arg5: memref<5x162x160xbf16, #tpu.memory_space<vmem>>, %arg6: memref<1x160xf32, #tpu.memory_space<vmem>>, %arg7: memref<72x127xbf16, #tpu.memory_space<vmem>>, %arg8: memref<5x144x128xbf16, #tpu.memory_space<vmem>>, %arg9: memref<8x64xbf16, #tpu.memory_space<vmem>>, %arg10: memref<1x128xf32, #tpu.memory_space<vmem>>, %arg11: memref<128x128xbf16, #tpu.memory_space<vmem>>, %arg12: memref<1x128xf32, #tpu.memory_space<vmem>>, %arg13: memref<128x128xbf16, #tpu.memory_space<vmem>>, %arg14: memref<1x128xf32, #tpu.memory_space<vmem>>, %arg15: memref<8x128xf32, #tpu.memory_space<vmem>>) attributes {dimension_semantics = [#tpu.dimension_semantics<parallel>], iteration_bounds = array<i64: 2>, scalar_prefetch = 0 : i64, scratch_operands = 0 : i64, tpu.core_type = #tpu.core_type<tc>, window_params = [{transform_indices = @transform_0, window_bounds = array<i64: 1, 264, 128>}, {pipeline_mode = #tpu.pipeline_mode<synchronous>, transform_indices = @transform_1, window_bounds = array<i64: 5, 128, 168>}, {pipeline_mode = #tpu.pipeline_mode<synchronous>, transform_indices = @transform_2, window_bounds = array<i64: 1, 168>}, {pipeline_mode = #tpu.pipeline_mode<synchronous>, transform_indices = @transform_3, window_bounds = array<i64: 136, 255>}, {pipeline_mode = #tpu.pipeline_mode<synchronous>, transform_indices = @transform_4, window_bounds = array<i64: 5, 162, 160>}, {pipeline_mode = #tpu.pipeline_mode<synchronous>, transform_indices = @transform_5, window_bounds = array<i64: 1, 160>}, {pipeline_mode = #tpu.pipeline_mode<synchronous>, transform_indices = @transform_6, window_bounds = array<i64: 72, 127>}, {pipeline_mode = #tpu.pipeline_mode<synchronous>, transform_indices = @transform_7, window_bounds = array<i64: 5, 144, 128>}, {pipeline_mode = #tpu.pipeline_mode<synchronous>, transform_indices = @transform_8, window_bounds = array<i64: 8, 64>}, {pipeline_mode = #tpu.pipeline_mode<synchronous>, transform_indices = @transform_9, window_bounds = array<i64: 1, 128>}, {pipeline_mode = #tpu.pipeline_mode<synchronous>, transform_indices = @transform_10, window_bounds = array<i64: 128, 128>}, {pipeline_mode = #tpu.pipeline_mode<synchronous>, transform_indices = @transform_11, window_bounds = array<i64: 1, 128>}, {pipeline_mode = #tpu.pipeline_mode<synchronous>, transform_indices = @transform_12, window_bounds = array<i64: 128, 128>}, {pipeline_mode = #tpu.pipeline_mode<synchronous>, transform_indices = @transform_13, window_bounds = array<i64: 1, 128>}, {transform_indices = @transform_14, window_bounds = array<i64: 8, 128>}]} {
    %c0 = arith.constant 0 : index
    %c0_0 = arith.constant 0 : index
    %c0_1 = arith.constant 0 : index
    %0 = vector.load %arg1[%c0, %c0_0, %c0_1] : memref<1x264x128xf32, #tpu.memory_space<vmem>>, vector<1x264x128xf32>
    %1 = vector.shape_cast %0 : vector<1x264x128xf32> to vector<264x128xf32>
    %2 = vector.extract_strided_slice %1 {offsets = [0, 0], sizes = [256, 128], strides = [1, 1]} : vector<264x128xf32> to vector<256x128xf32>
    %3 = arith.truncf %2 : vector<256x128xf32> to vector<256x128xbf16>
    %c0_2 = arith.constant 0 : index
    %c0_3 = arith.constant 0 : index
    %c0_4 = arith.constant 0 : index
    %4 = vector.load %arg2[%c0_2, %c0_3, %c0_4] : memref<5x128x168xbf16, #tpu.memory_space<vmem>>, vector<1x128x168xbf16>
    %5 = vector.shape_cast %4 : vector<1x128x168xbf16> to vector<128x168xbf16>
    %cst = arith.constant dense<0.000000e+00> : vector<256x168xf32>
    %6 = tpu.matmul %3, %5, %cst {dimension_numbers = #tpu.dot_dimension_numbers<[1], [0], [0], [1], [0, 0, 1, 1], [], []>} : vector<256x128xbf16>, vector<128x168xbf16>, vector<256x168xf32> -> vector<256x168xf32>
    %7 = vector.extract_strided_slice %1 {offsets = [1, 0], sizes = [256, 128], strides = [1, 1]} : vector<264x128xf32> to vector<256x128xf32>
    %8 = arith.truncf %7 : vector<256x128xf32> to vector<256x128xbf16>
    %c1 = arith.constant 1 : index
    %c0_5 = arith.constant 0 : index
    %c0_6 = arith.constant 0 : index
    %9 = vector.load %arg2[%c1, %c0_5, %c0_6] : memref<5x128x168xbf16, #tpu.memory_space<vmem>>, vector<1x128x168xbf16>
    %10 = vector.shape_cast %9 : vector<1x128x168xbf16> to vector<128x168xbf16>
    %cst_7 = arith.constant dense<0.000000e+00> : vector<256x168xf32>
    %11 = tpu.matmul %8, %10, %cst_7 {dimension_numbers = #tpu.dot_dimension_numbers<[1], [0], [0], [1], [0, 0, 1, 1], [], []>} : vector<256x128xbf16>, vector<128x168xbf16>, vector<256x168xf32> -> vector<256x168xf32>
    %12 = arith.addf %6, %11 : vector<256x168xf32>
    %13 = vector.extract_strided_slice %1 {offsets = [2, 0], sizes = [256, 128], strides = [1, 1]} : vector<264x128xf32> to vector<256x128xf32>
    %14 = arith.truncf %13 : vector<256x128xf32> to vector<256x128xbf16>
    %c2 = arith.constant 2 : index
    %c0_8 = arith.constant 0 : index
    %c0_9 = arith.constant 0 : index
    %15 = vector.load %arg2[%c2, %c0_8, %c0_9] : memref<5x128x168xbf16, #tpu.memory_space<vmem>>, vector<1x128x168xbf16>
    %16 = vector.shape_cast %15 : vector<1x128x168xbf16> to vector<128x168xbf16>
    %cst_10 = arith.constant dense<0.000000e+00> : vector<256x168xf32>
    %17 = tpu.matmul %14, %16, %cst_10 {dimension_numbers = #tpu.dot_dimension_numbers<[1], [0], [0], [1], [0, 0, 1, 1], [], []>} : vector<256x128xbf16>, vector<128x168xbf16>, vector<256x168xf32> -> vector<256x168xf32>
    %18 = arith.addf %12, %17 : vector<256x168xf32>
    %19 = vector.extract_strided_slice %1 {offsets = [3, 0], sizes = [256, 128], strides = [1, 1]} : vector<264x128xf32> to vector<256x128xf32>
    %20 = arith.truncf %19 : vector<256x128xf32> to vector<256x128xbf16>
    %c3 = arith.constant 3 : index
    %c0_11 = arith.constant 0 : index
    %c0_12 = arith.constant 0 : index
    %21 = vector.load %arg2[%c3, %c0_11, %c0_12] : memref<5x128x168xbf16, #tpu.memory_space<vmem>>, vector<1x128x168xbf16>
    %22 = vector.shape_cast %21 : vector<1x128x168xbf16> to vector<128x168xbf16>
    %cst_13 = arith.constant dense<0.000000e+00> : vector<256x168xf32>
    %23 = tpu.matmul %20, %22, %cst_13 {dimension_numbers = #tpu.dot_dimension_numbers<[1], [0], [0], [1], [0, 0, 1, 1], [], []>} : vector<256x128xbf16>, vector<128x168xbf16>, vector<256x168xf32> -> vector<256x168xf32>
    %24 = arith.addf %18, %23 : vector<256x168xf32>
    %25 = vector.extract_strided_slice %1 {offsets = [4, 0], sizes = [256, 128], strides = [1, 1]} : vector<264x128xf32> to vector<256x128xf32>
    %26 = arith.truncf %25 : vector<256x128xf32> to vector<256x128xbf16>
    %c4 = arith.constant 4 : index
    %c0_14 = arith.constant 0 : index
    %c0_15 = arith.constant 0 : index
    %27 = vector.load %arg2[%c4, %c0_14, %c0_15] : memref<5x128x168xbf16, #tpu.memory_space<vmem>>, vector<1x128x168xbf16>
    %28 = vector.shape_cast %27 : vector<1x128x168xbf16> to vector<128x168xbf16>
    %cst_16 = arith.constant dense<0.000000e+00> : vector<256x168xf32>
    %29 = tpu.matmul %26, %28, %cst_16 {dimension_numbers = #tpu.dot_dimension_numbers<[1], [0], [0], [1], [0, 0, 1, 1], [], []>} : vector<256x128xbf16>, vector<128x168xbf16>, vector<256x168xf32> -> vector<256x168xf32>
    %30 = arith.addf %24, %29 : vector<256x168xf32>
    %c0_17 = arith.constant 0 : index
    %c0_18 = arith.constant 0 : index
    %31 = vector.load %arg3[%c0_17, %c0_18] : memref<1x168xf32, #tpu.memory_space<vmem>>, vector<1x168xf32>
    %32 = vector.broadcast %31 : vector<1x168xf32> to vector<256x168xf32>
    %33 = arith.addf %30, %32 : vector<256x168xf32>
    %cst_19 = arith.constant 0.000000e+00 : f32
    %34 = vector.broadcast %cst_19 : f32 to vector<256x168xf32>
    %35 = arith.maximumf %33, %34 : vector<256x168xf32>
    %36 = vector.extract_strided_slice %35 {offsets = [0, 0], sizes = [255, 168], strides = [1, 1]} : vector<256x168xf32> to vector<255x168xf32>
    %37 = vector.extract_strided_slice %35 {offsets = [1, 0], sizes = [255, 168], strides = [1, 1]} : vector<256x168xf32> to vector<255x168xf32>
    %38 = arith.maximumf %36, %37 : vector<255x168xf32>
    %39 = arith.truncf %38 : vector<255x168xf32> to vector<255x168xbf16>
    %c0_20 = arith.constant 0 : index
    %c0_21 = arith.constant 0 : index
    %40 = vector.load %arg4[%c0_20, %c0_21] : memref<136x255xbf16, #tpu.memory_space<vmem>>, vector<136x255xbf16>
    %cst_22 = arith.constant dense<0.000000e+00> : vector<136x168xf32>
    %41 = tpu.matmul %40, %39, %cst_22 {dimension_numbers = #tpu.dot_dimension_numbers<[1], [0], [0], [1], [0, 0, 1, 1], [], []>} : vector<136x255xbf16>, vector<255x168xbf16>, vector<136x168xf32> -> vector<136x168xf32>
    %42 = vector.extract_strided_slice %41 {offsets = [0, 0], sizes = [136, 162], strides = [1, 1]} : vector<136x168xf32> to vector<136x162xf32>
    %43 = vector.extract_strided_slice %41 {offsets = [0, 6], sizes = [136, 162], strides = [1, 1]} : vector<136x168xf32> to vector<136x162xf32>
    %44 = arith.maximumf %42, %43 : vector<136x162xf32>
    %45 = vector.extract_strided_slice %44 {offsets = [0, 0], sizes = [128, 162], strides = [1, 1]} : vector<136x162xf32> to vector<128x162xf32>
    %46 = arith.truncf %45 : vector<128x162xf32> to vector<128x162xbf16>
    %c0_23 = arith.constant 0 : index
    %c0_24 = arith.constant 0 : index
    %c0_25 = arith.constant 0 : index
    %47 = vector.load %arg5[%c0_23, %c0_24, %c0_25] : memref<5x162x160xbf16, #tpu.memory_space<vmem>>, vector<1x162x160xbf16>
    %48 = vector.shape_cast %47 : vector<1x162x160xbf16> to vector<162x160xbf16>
    %cst_26 = arith.constant dense<0.000000e+00> : vector<128x160xf32>
    %49 = tpu.matmul %46, %48, %cst_26 {dimension_numbers = #tpu.dot_dimension_numbers<[1], [0], [0], [1], [0, 0, 1, 1], [], []>} : vector<128x162xbf16>, vector<162x160xbf16>, vector<128x160xf32> -> vector<128x160xf32>
    %50 = vector.extract_strided_slice %44 {offsets = [1, 0], sizes = [128, 162], strides = [1, 1]} : vector<136x162xf32> to vector<128x162xf32>
    %51 = arith.truncf %50 : vector<128x162xf32> to vector<128x162xbf16>
    %c1_27 = arith.constant 1 : index
    %c0_28 = arith.constant 0 : index
    %c0_29 = arith.constant 0 : index
    %52 = vector.load %arg5[%c1_27, %c0_28, %c0_29] : memref<5x162x160xbf16, #tpu.memory_space<vmem>>, vector<1x162x160xbf16>
    %53 = vector.shape_cast %52 : vector<1x162x160xbf16> to vector<162x160xbf16>
    %cst_30 = arith.constant dense<0.000000e+00> : vector<128x160xf32>
    %54 = tpu.matmul %51, %53, %cst_30 {dimension_numbers = #tpu.dot_dimension_numbers<[1], [0], [0], [1], [0, 0, 1, 1], [], []>} : vector<128x162xbf16>, vector<162x160xbf16>, vector<128x160xf32> -> vector<128x160xf32>
    %55 = arith.addf %49, %54 : vector<128x160xf32>
    %56 = vector.extract_strided_slice %44 {offsets = [2, 0], sizes = [128, 162], strides = [1, 1]} : vector<136x162xf32> to vector<128x162xf32>
    %57 = arith.truncf %56 : vector<128x162xf32> to vector<128x162xbf16>
    %c2_31 = arith.constant 2 : index
    %c0_32 = arith.constant 0 : index
    %c0_33 = arith.constant 0 : index
    %58 = vector.load %arg5[%c2_31, %c0_32, %c0_33] : memref<5x162x160xbf16, #tpu.memory_space<vmem>>, vector<1x162x160xbf16>
    %59 = vector.shape_cast %58 : vector<1x162x160xbf16> to vector<162x160xbf16>
    %cst_34 = arith.constant dense<0.000000e+00> : vector<128x160xf32>
    %60 = tpu.matmul %57, %59, %cst_34 {dimension_numbers = #tpu.dot_dimension_numbers<[1], [0], [0], [1], [0, 0, 1, 1], [], []>} : vector<128x162xbf16>, vector<162x160xbf16>, vector<128x160xf32> -> vector<128x160xf32>
    %61 = arith.addf %55, %60 : vector<128x160xf32>
    %62 = vector.extract_strided_slice %44 {offsets = [3, 0], sizes = [128, 162], strides = [1, 1]} : vector<136x162xf32> to vector<128x162xf32>
    %63 = arith.truncf %62 : vector<128x162xf32> to vector<128x162xbf16>
    %c3_35 = arith.constant 3 : index
    %c0_36 = arith.constant 0 : index
    %c0_37 = arith.constant 0 : index
    %64 = vector.load %arg5[%c3_35, %c0_36, %c0_37] : memref<5x162x160xbf16, #tpu.memory_space<vmem>>, vector<1x162x160xbf16>
    %65 = vector.shape_cast %64 : vector<1x162x160xbf16> to vector<162x160xbf16>
    %cst_38 = arith.constant dense<0.000000e+00> : vector<128x160xf32>
    %66 = tpu.matmul %63, %65, %cst_38 {dimension_numbers = #tpu.dot_dimension_numbers<[1], [0], [0], [1], [0, 0, 1, 1], [], []>} : vector<128x162xbf16>, vector<162x160xbf16>, vector<128x160xf32> -> vector<128x160xf32>
    %67 = arith.addf %61, %66 : vector<128x160xf32>
    %68 = vector.extract_strided_slice %44 {offsets = [4, 0], sizes = [128, 162], strides = [1, 1]} : vector<136x162xf32> to vector<128x162xf32>
    %69 = arith.truncf %68 : vector<128x162xf32> to vector<128x162xbf16>
    %c4_39 = arith.constant 4 : index
    %c0_40 = arith.constant 0 : index
    %c0_41 = arith.constant 0 : index
    %70 = vector.load %arg5[%c4_39, %c0_40, %c0_41] : memref<5x162x160xbf16, #tpu.memory_space<vmem>>, vector<1x162x160xbf16>
    %71 = vector.shape_cast %70 : vector<1x162x160xbf16> to vector<162x160xbf16>
    %cst_42 = arith.constant dense<0.000000e+00> : vector<128x160xf32>
    %72 = tpu.matmul %69, %71, %cst_42 {dimension_numbers = #tpu.dot_dimension_numbers<[1], [0], [0], [1], [0, 0, 1, 1], [], []>} : vector<128x162xbf16>, vector<162x160xbf16>, vector<128x160xf32> -> vector<128x160xf32>
    %73 = arith.addf %67, %72 : vector<128x160xf32>
    %c0_43 = arith.constant 0 : index
    %c0_44 = arith.constant 0 : index
    %74 = vector.load %arg6[%c0_43, %c0_44] : memref<1x160xf32, #tpu.memory_space<vmem>>, vector<1x160xf32>
    %75 = vector.broadcast %74 : vector<1x160xf32> to vector<128x160xf32>
    %76 = arith.addf %73, %75 : vector<128x160xf32>
    %cst_45 = arith.constant 0.000000e+00 : f32
    %77 = vector.broadcast %cst_45 : f32 to vector<128x160xf32>
    %78 = arith.maximumf %76, %77 : vector<128x160xf32>
    %79 = vector.extract_strided_slice %78 {offsets = [0, 0], sizes = [127, 160], strides = [1, 1]} : vector<128x160xf32> to vector<127x160xf32>
    %80 = vector.extract_strided_slice %78 {offsets = [1, 0], sizes = [127, 160], strides = [1, 1]} : vector<128x160xf32> to vector<127x160xf32>
    %81 = arith.maximumf %79, %80 : vector<127x160xf32>
    %82 = arith.truncf %81 : vector<127x160xf32> to vector<127x160xbf16>
    %c0_46 = arith.constant 0 : index
    %c0_47 = arith.constant 0 : index
    %83 = vector.load %arg7[%c0_46, %c0_47] : memref<72x127xbf16, #tpu.memory_space<vmem>>, vector<72x127xbf16>
    %cst_48 = arith.constant dense<0.000000e+00> : vector<72x160xf32>
    %84 = tpu.matmul %83, %82, %cst_48 {dimension_numbers = #tpu.dot_dimension_numbers<[1], [0], [0], [1], [0, 0, 1, 1], [], []>} : vector<72x127xbf16>, vector<127x160xbf16>, vector<72x160xf32> -> vector<72x160xf32>
    %85 = vector.extract_strided_slice %84 {offsets = [0, 0], sizes = [72, 144], strides = [1, 1]} : vector<72x160xf32> to vector<72x144xf32>
    %86 = vector.extract_strided_slice %84 {offsets = [0, 16], sizes = [72, 144], strides = [1, 1]} : vector<72x160xf32> to vector<72x144xf32>
    %87 = arith.maximumf %85, %86 : vector<72x144xf32>
    %88 = vector.extract_strided_slice %87 {offsets = [0, 0], sizes = [64, 144], strides = [1, 1]} : vector<72x144xf32> to vector<64x144xf32>
    %89 = arith.truncf %88 : vector<64x144xf32> to vector<64x144xbf16>
    %c0_49 = arith.constant 0 : index
    %c0_50 = arith.constant 0 : index
    %c0_51 = arith.constant 0 : index
    %90 = vector.load %arg8[%c0_49, %c0_50, %c0_51] : memref<5x144x128xbf16, #tpu.memory_space<vmem>>, vector<1x144x128xbf16>
    %91 = vector.shape_cast %90 : vector<1x144x128xbf16> to vector<144x128xbf16>
    %cst_52 = arith.constant dense<0.000000e+00> : vector<64x128xf32>
    %92 = tpu.matmul %89, %91, %cst_52 {dimension_numbers = #tpu.dot_dimension_numbers<[1], [0], [0], [1], [0, 0, 1, 1], [], []>} : vector<64x144xbf16>, vector<144x128xbf16>, vector<64x128xf32> -> vector<64x128xf32>
    %93 = vector.extract_strided_slice %87 {offsets = [1, 0], sizes = [64, 144], strides = [1, 1]} : vector<72x144xf32> to vector<64x144xf32>
    %94 = arith.truncf %93 : vector<64x144xf32> to vector<64x144xbf16>
    %c1_53 = arith.constant 1 : index
    %c0_54 = arith.constant 0 : index
    %c0_55 = arith.constant 0 : index
    %95 = vector.load %arg8[%c1_53, %c0_54, %c0_55] : memref<5x144x128xbf16, #tpu.memory_space<vmem>>, vector<1x144x128xbf16>
    %96 = vector.shape_cast %95 : vector<1x144x128xbf16> to vector<144x128xbf16>
    %cst_56 = arith.constant dense<0.000000e+00> : vector<64x128xf32>
    %97 = tpu.matmul %94, %96, %cst_56 {dimension_numbers = #tpu.dot_dimension_numbers<[1], [0], [0], [1], [0, 0, 1, 1], [], []>} : vector<64x144xbf16>, vector<144x128xbf16>, vector<64x128xf32> -> vector<64x128xf32>
    %98 = arith.addf %92, %97 : vector<64x128xf32>
    %99 = vector.extract_strided_slice %87 {offsets = [2, 0], sizes = [64, 144], strides = [1, 1]} : vector<72x144xf32> to vector<64x144xf32>
    %100 = arith.truncf %99 : vector<64x144xf32> to vector<64x144xbf16>
    %c2_57 = arith.constant 2 : index
    %c0_58 = arith.constant 0 : index
    %c0_59 = arith.constant 0 : index
    %101 = vector.load %arg8[%c2_57, %c0_58, %c0_59] : memref<5x144x128xbf16, #tpu.memory_space<vmem>>, vector<1x144x128xbf16>
    %102 = vector.shape_cast %101 : vector<1x144x128xbf16> to vector<144x128xbf16>
    %cst_60 = arith.constant dense<0.000000e+00> : vector<64x128xf32>
    %103 = tpu.matmul %100, %102, %cst_60 {dimension_numbers = #tpu.dot_dimension_numbers<[1], [0], [0], [1], [0, 0, 1, 1], [], []>} : vector<64x144xbf16>, vector<144x128xbf16>, vector<64x128xf32> -> vector<64x128xf32>
    %104 = arith.addf %98, %103 : vector<64x128xf32>
    %105 = vector.extract_strided_slice %87 {offsets = [3, 0], sizes = [64, 144], strides = [1, 1]} : vector<72x144xf32> to vector<64x144xf32>
    %106 = arith.truncf %105 : vector<64x144xf32> to vector<64x144xbf16>
    %c3_61 = arith.constant 3 : index
    %c0_62 = arith.constant 0 : index
    %c0_63 = arith.constant 0 : index
    %107 = vector.load %arg8[%c3_61, %c0_62, %c0_63] : memref<5x144x128xbf16, #tpu.memory_space<vmem>>, vector<1x144x128xbf16>
    %108 = vector.shape_cast %107 : vector<1x144x128xbf16> to vector<144x128xbf16>
    %cst_64 = arith.constant dense<0.000000e+00> : vector<64x128xf32>
    %109 = tpu.matmul %106, %108, %cst_64 {dimension_numbers = #tpu.dot_dimension_numbers<[1], [0], [0], [1], [0, 0, 1, 1], [], []>} : vector<64x144xbf16>, vector<144x128xbf16>, vector<64x128xf32> -> vector<64x128xf32>
    %110 = arith.addf %104, %109 : vector<64x128xf32>
    %111 = vector.extract_strided_slice %87 {offsets = [4, 0], sizes = [64, 144], strides = [1, 1]} : vector<72x144xf32> to vector<64x144xf32>
    %112 = arith.truncf %111 : vector<64x144xf32> to vector<64x144xbf16>
    %c4_65 = arith.constant 4 : index
    %c0_66 = arith.constant 0 : index
    %c0_67 = arith.constant 0 : index
    %113 = vector.load %arg8[%c4_65, %c0_66, %c0_67] : memref<5x144x128xbf16, #tpu.memory_space<vmem>>, vector<1x144x128xbf16>
    %114 = vector.shape_cast %113 : vector<1x144x128xbf16> to vector<144x128xbf16>
    %cst_68 = arith.constant dense<0.000000e+00> : vector<64x128xf32>
    %115 = tpu.matmul %112, %114, %cst_68 {dimension_numbers = #tpu.dot_dimension_numbers<[1], [0], [0], [1], [0, 0, 1, 1], [], []>} : vector<64x144xbf16>, vector<144x128xbf16>, vector<64x128xf32> -> vector<64x128xf32>
    %116 = arith.addf %110, %115 : vector<64x128xf32>
    %c0_69 = arith.constant 0 : index
    %c0_70 = arith.constant 0 : index
    %117 = vector.load %arg9[%c0_69, %c0_70] : memref<8x64xbf16, #tpu.memory_space<vmem>>, vector<8x64xbf16>
    %118 = arith.truncf %116 : vector<64x128xf32> to vector<64x128xbf16>
    %cst_71 = arith.constant dense<0.000000e+00> : vector<8x128xf32>
    %119 = tpu.matmul %117, %118, %cst_71 {dimension_numbers = #tpu.dot_dimension_numbers<[1], [0], [0], [1], [0, 0, 1, 1], [], []>} : vector<8x64xbf16>, vector<64x128xbf16>, vector<8x128xf32> -> vector<8x128xf32>
    %c0_72 = arith.constant 0 : index
    %c0_73 = arith.constant 0 : index
    %120 = vector.load %arg10[%c0_72, %c0_73] : memref<1x128xf32, #tpu.memory_space<vmem>>, vector<1x128xf32>
    %121 = vector.broadcast %120 : vector<1x128xf32> to vector<8x128xf32>
    %122 = arith.addf %119, %121 : vector<8x128xf32>
    %cst_74 = arith.constant 0.000000e+00 : f32
    %123 = vector.broadcast %cst_74 : f32 to vector<8x128xf32>
    %124 = arith.maximumf %122, %123 : vector<8x128xf32>
    %125 = arith.truncf %124 : vector<8x128xf32> to vector<8x128xbf16>
    %c0_75 = arith.constant 0 : index
    %c0_76 = arith.constant 0 : index
    %126 = vector.load %arg11[%c0_75, %c0_76] : memref<128x128xbf16, #tpu.memory_space<vmem>>, vector<128x128xbf16>
    %cst_77 = arith.constant dense<0.000000e+00> : vector<8x128xf32>
    %127 = tpu.matmul %125, %126, %cst_77 {dimension_numbers = #tpu.dot_dimension_numbers<[1], [0], [0], [1], [0, 0, 1, 1], [], []>} : vector<8x128xbf16>, vector<128x128xbf16>, vector<8x128xf32> -> vector<8x128xf32>
    %c0_78 = arith.constant 0 : index
    %c0_79 = arith.constant 0 : index
    %128 = vector.load %arg12[%c0_78, %c0_79] : memref<1x128xf32, #tpu.memory_space<vmem>>, vector<1x128xf32>
    %129 = vector.broadcast %128 : vector<1x128xf32> to vector<8x128xf32>
    %130 = arith.addf %127, %129 : vector<8x128xf32>
    %cst_80 = arith.constant 0.000000e+00 : f32
    %131 = vector.broadcast %cst_80 : f32 to vector<8x128xf32>
    %132 = arith.maximumf %130, %131 : vector<8x128xf32>
    %133 = arith.truncf %132 : vector<8x128xf32> to vector<8x128xbf16>
    %c0_81 = arith.constant 0 : index
    %c0_82 = arith.constant 0 : index
    %134 = vector.load %arg13[%c0_81, %c0_82] : memref<128x128xbf16, #tpu.memory_space<vmem>>, vector<128x128xbf16>
    %cst_83 = arith.constant dense<0.000000e+00> : vector<8x128xf32>
    %135 = tpu.matmul %133, %134, %cst_83 {dimension_numbers = #tpu.dot_dimension_numbers<[1], [0], [0], [1], [0, 0, 1, 1], [], []>} : vector<8x128xbf16>, vector<128x128xbf16>, vector<8x128xf32> -> vector<8x128xf32>
    %c0_84 = arith.constant 0 : index
    %c0_85 = arith.constant 0 : index
    %136 = vector.load %arg14[%c0_84, %c0_85] : memref<1x128xf32, #tpu.memory_space<vmem>>, vector<1x128xf32>
    %137 = vector.broadcast %136 : vector<1x128xf32> to vector<8x128xf32>
    %138 = arith.addf %135, %137 : vector<8x128xf32>
    %c0_86 = arith.constant 0 : index
    %c0_87 = arith.constant 0 : index
    %139 = vector.load %arg15[%c0_86, %c0_87] : memref<8x128xf32, #tpu.memory_space<vmem>>, vector<8x128xf32>
    tpu.vector_store %arg15[%c0_86, %c0_87], %138 {strides = array<i32>} : memref<8x128xf32, #tpu.memory_space<vmem>>, vector<8x128xf32>,
    return
  }
  func.func @transform_0(%arg0: i32) -> (i32, i32, i32) {
    %c0_i32 = arith.constant 0 : i32
    %c0_i32_0 = arith.constant 0 : i32
    %c0_i32_1 = arith.constant 0 : i32
    return %arg0, %c0_i32, %c0_i32_0 : i32, i32, i32
  }
  func.func @transform_1(%arg0: i32) -> (i32, i32, i32) {
    %c0_i32 = arith.constant 0 : i32
    %c0_i32_0 = arith.constant 0 : i32
    %c0_i32_1 = arith.constant 0 : i32
    %c0_i32_2 = arith.constant 0 : i32
    return %c0_i32, %c0_i32_0, %c0_i32_1 : i32, i32, i32
  }
  func.func @transform_2(%arg0: i32) -> (i32, i32) {
    %c0_i32 = arith.constant 0 : i32
    %c0_i32_0 = arith.constant 0 : i32
    %c0_i32_1 = arith.constant 0 : i32
    return %c0_i32, %c0_i32_0 : i32, i32
  }
  func.func @transform_3(%arg0: i32) -> (i32, i32) {
    %c0_i32 = arith.constant 0 : i32
    %c0_i32_0 = arith.constant 0 : i32
    %c0_i32_1 = arith.constant 0 : i32
    return %c0_i32, %c0_i32_0 : i32, i32
  }
  func.func @transform_4(%arg0: i32) -> (i32, i32, i32) {
    %c0_i32 = arith.constant 0 : i32
    %c0_i32_0 = arith.constant 0 : i32
    %c0_i32_1 = arith.constant 0 : i32
    %c0_i32_2 = arith.constant 0 : i32
    return %c0_i32, %c0_i32_0, %c0_i32_1 : i32, i32, i32
  }
  func.func @transform_5(%arg0: i32) -> (i32, i32) {
    %c0_i32 = arith.constant 0 : i32
    %c0_i32_0 = arith.constant 0 : i32
    %c0_i32_1 = arith.constant 0 : i32
    return %c0_i32, %c0_i32_0 : i32, i32
  }
  func.func @transform_6(%arg0: i32) -> (i32, i32) {
    %c0_i32 = arith.constant 0 : i32
    %c0_i32_0 = arith.constant 0 : i32
    %c0_i32_1 = arith.constant 0 : i32
    return %c0_i32, %c0_i32_0 : i32, i32
  }
  func.func @transform_7(%arg0: i32) -> (i32, i32, i32) {
    %c0_i32 = arith.constant 0 : i32
    %c0_i32_0 = arith.constant 0 : i32
    %c0_i32_1 = arith.constant 0 : i32
    %c0_i32_2 = arith.constant 0 : i32
    return %c0_i32, %c0_i32_0, %c0_i32_1 : i32, i32, i32
  }
  func.func @transform_8(%arg0: i32) -> (i32, i32) {
    %c0_i32 = arith.constant 0 : i32
    %c0_i32_0 = arith.constant 0 : i32
    %c0_i32_1 = arith.constant 0 : i32
    return %c0_i32, %c0_i32_0 : i32, i32
  }
  func.func @transform_9(%arg0: i32) -> (i32, i32) {
    %c0_i32 = arith.constant 0 : i32
    %c0_i32_0 = arith.constant 0 : i32
    %c0_i32_1 = arith.constant 0 : i32
    return %c0_i32, %c0_i32_0 : i32, i32
  }
  func.func @transform_10(%arg0: i32) -> (i32, i32) {
    %c0_i32 = arith.constant 0 : i32
    %c0_i32_0 = arith.constant 0 : i32
    %c0_i32_1 = arith.constant 0 : i32
    return %c0_i32, %c0_i32_0 : i32, i32
  }
  func.func @transform_11(%arg0: i32) -> (i32, i32) {
    %c0_i32 = arith.constant 0 : i32
    %c0_i32_0 = arith.constant 0 : i32
    %c0_i32_1 = arith.constant 0 : i32
    return %c0_i32, %c0_i32_0 : i32, i32
  }
  func.func @transform_12(%arg0: i32) -> (i32, i32) {
    %c0_i32 = arith.constant 0 : i32
    %c0_i32_0 = arith.constant 0 : i32
    %c0_i32_1 = arith.constant 0 : i32
    return %c0_i32, %c0_i32_0 : i32, i32
  }
  func.func @transform_13(%arg0: i32) -> (i32, i32) {
    %c0_i32 = arith.constant 0 : i32
    %c0_i32_0 = arith.constant 0 : i32
    %c0_i32_1 = arith.constant 0 : i32
    return %c0_i32, %c0_i32_0 : i32, i32
  }
  func.func @transform_14(%arg0: i32) -> (i32, i32) {
    %c0_i32 = arith.constant 0 : i32
    %c0_i32_0 = arith.constant 0 : i32
    return %arg0, %c0_i32 : i32, i32
  }
}

</mosaic_0001>

<bundles_post_ra>
// kernel: net_forward.1
= control target key start
LH: loop header
LB: loop body
LE: loop exit
PB: predicated region body
PF: predicated region fallthrough
CT: control target
= control target key end

     0   :  { %19 = vsyncpa [#allocation3], 0  ;;  %s12116_s0 = inlined_call_operand.vmem [shape: f32[2,264,128], index: 0, kind: input, shape index: {}]   ;;  %s12117_s1 = inlined_call_operand.vmem [shape: bf16[5,128,168], index: 1, kind: input, shape index: {}]   ;;  %s12118_s2 = inlined_call_operand.vmem [shape: f32[1,168], index: 2, kind: input, shape index: {}]   ;;  %s12119_s3 = inlined_call_operand.vmem [shape: bf16[136,255], index: 3, kind: input, shape index: {}]   ;;  %s12120_s4 = inlined_call_operand.vmem [shape: bf16[5,162,160], index: 4, kind: input, shape index: {}]   ;;  %s12121_s5 = inlined_call_operand.vmem [shape: f32[1,160], index: 5, kind: input, shape index: {}]   ;;  %s12122_s6 = inlined_call_operand.vmem [shape: bf16[72,127], index: 6, kind: input, shape index: {}]   ;;  %s12123_s7 = inlined_call_operand.vmem [shape: bf16[5,144,128], index: 7, kind: input, shape index: {}]   ;;  %s12124_s8 = inlined_call_operand.vmem [shape: bf16[8,64], index: 8, kind: input, shape index: {}]   ;;  %s12125_s9 = inlined_call_operand.vmem [shape: f32[1,128], index: 9, kind: input, shape index: {}]   ;;  %s12126_s10 = inlined_call_operand.vmem [shape: bf16[128,128], index: 10, kind: input, shape index: {}]   ;;  %s12127_s11 = inlined_call_operand.vmem [shape: f32[1,128], index: 11, kind: input, shape index: {}]   ;;  %s12128_s12 = inlined_call_operand.vmem [shape: bf16[128,128], index: 12, kind: input, shape index: {}]   ;;  %s12129_s13 = inlined_call_operand.vmem [shape: f32[1,128], index: 13, kind: input, shape index: {}]   ;;  %s12130_s14 = inlined_call_operand.hbm [shape: f32[16,128], index: 14, kind: output, shape index: {}]  }
   0x1   :  { %21 = vsyncpa [#allocation3 + $0x1], 0  ;;  %s8377_s29 = smov 0   ;;  %s8379_s30 = smov 0  }
   0x2   :  { %s8381_s15 = smov 0   ;;  %s8383_s16 = smov 0  }
   0x3 LB: > { %12165 = sst [smem:[#allocation5_spill]] %s8281_s29  ;;  %s8398_s17 = sadd.s32 4294967295, %s8293_s16   ;;  %s8293_s16 = sphi %s8383_s16, %s12405_s16   ;;  %s8289_s15 = sphi %s8381_s15, %s12407_s15   ;;  %s8285_s30 = sphi %s8379_s30, %s12409_s30   ;;  %s8281_s29 = sphi %s8377_s29, %s12408_s29  }
   0x4   : > { %12166 = sst [smem:[#allocation6_spill]] %s8289_s15  ;;  %s7023_s18 = sadd.s32 4294967294, %s8293_s16  }
   0x5   : > { %s8402_s19 = sadd.s32 1, %s8293_s16   ;;  %s333_s20 = sadd.s32 1, %s8289_s15 }
   0x6   : > { %12167 = sst [smem:[#allocation7_spill]] %s8402_s19  ;;  %s330_s21 = ssub.s32 %s8293_s16, %s8402_s19 }
   0x7   : > { %p343_p0 = scmp.ne.s32.totalorder %s8289_s15, %s8285_s30  ;;  %p331_p1 = scmp.eq.s32.totalorder %s330_s21, 0 }
   0x8   : > { %p344_p2 = scmp.eq.s32.totalorder %s8398_s17, 1  ;;  %p349_p3 = scmp.ne.s32.totalorder %s8285_s30, %s8281_s29 }
   0x9   : > { %p350_p4 = scmp.eq.s32.totalorder %s7023_s18, 1  ;;  %p7026_p7 = scmp.ge.s32.totalorder %s8293_s16, 1 }
   0xa   : > { %s8413_s22 = scalar_select %p331_p1, %s8289_s15, %s333_s20  }
   0xb   : > { %p8415_p5 = por %p344_p2, %p343_p0  ;;  %p8419_p6 = por %p350_p4, %p349_p3 }
   0xc   : > { %12168 = sst [smem:[#allocation8_spill]] %s8413_s22  ;;  %p415_p8 = scmp.lt.s32.totalorder %s8293_s16, 3 }
   0xd   : > { %s12170_s24 = scalar_select %p8419_p6, 1, 0 }
   0xe   : > { %p416_p9 = pnand %p7026_p7, %p415_p8 }
   0xf   : > { %12171 = sst [smem:[#allocation9_spill]] %s12170_s24 }
  0x10   : > { %419 = sbr.rel (%p416_p9) target bundleno = 2699 (0xa8b), region = 76 }
  0x15   : > { %v7861_v0 = vld [vmem:[%s12117_s1 + $0xf4] ss:$8 sps:$4 sm:$0xff]   ;;  %v12136_v2 = vmov 0   ;;  %v7865_v3 = vld [vmem:[%s12117_s1 + $0xf0] ss:$8 sps:$4 sm:$0xff]   ;;  %p461_p10 = scmp.lt.s32.totalorder %s8398_s17, 1 }
  0x16   : > { %v7863_v1 = vld [vmem:[%s12117_s1 + $0x74] ss:$8 sps:$4 sm:$0xff]   ;;  %811 = vmatprep.mubr.bf16.mxu0 %v12136_v2  ;;  %1084 = vmatprep.mubr.bf16.mxu1 %v12136_v2  ;;  %v7866_v4 = vld [vmem:[%s12117_s1 + $0x70] ss:$8 sps:$4 sm:$0xff]   ;;  %v7867_v5 = vld [vmem:[%s12117_s1 + $0xe4] ss:$8 sps:$4 sm:$0xff]  }
  0x17   : > { %779 = vmatprep.subr.bf16.mxu0 %v7861_v0  ;;  %1052 = vmatprep.subr.bf16.mxu1 %v7863_v1  ;;  %v7869_v6 = vld [vmem:[%s12117_s1 + $0x64] ss:$8 sps:$4 sm:$0xff]   ;;  %v7871_v7 = vld [vmem:[%s12117_s1 + $0xe0] ss:$8 sps:$4 sm:$0xff]   ;;  %v7873_v9 = vld [vmem:[%s12117_s1 + $0xd4] ss:$8 sps:$4 sm:$0xff]  }
  0x18   : > { %780 = vmatpush1.bf16.msra.mxu0 %v7865_v3  ;;  %1053 = vmatpush1.bf16.msra.mxu1 %v7866_v4  ;;  %v7872_v8 = vld [vmem:[%s12117_s1 + $0x60] ss:$8 sps:$4 sm:$0xff]   ;;  %v7875_v10 = vld [vmem:[%s12117_s1 + $0x54] ss:$8 sps:$4 sm:$0xff]   ;;  %v7877_v11 = vld [vmem:[%s12117_s1 + $0xd0] ss:$8 sps:$4 sm:$0xff]  }
  0x19   : > { %781 = vmatprep.subr.bf16.mxu0 %v7867_v5  ;;  %1054 = vmatprep.subr.bf16.mxu1 %v7869_v6  ;;  %v7878_v12 = vld [vmem:[%s12117_s1 + $0x50] ss:$8 sps:$4 sm:$0xff]   ;;  %v7879_v13 = vld [vmem:[%s12117_s1 + $0xc4] ss:$8 sps:$4 sm:$0xff]   ;;  %s462_s25 = scalar_select %p461_p10, %s8398_s17, 1  ;;  %vm1279_vm2 = vcmask 1046528  }
  0x1a   : > { %v7881_v14 = vld [vmem:[%s12117_s1 + $0x44] ss:$8 sps:$4 sm:$0xff]   ;;  %v7883_v15 = vld [vmem:[%s12117_s1 + $0xc0] ss:$8 sps:$4 sm:$0xff]   ;;  %v7885_v17 = vld [vmem:[%s12117_s1 + $0xb4] ss:$8 sps:$4 sm:$0xff]  }
  0x1b   : > { %v7884_v16 = vld [vmem:[%s12117_s1 + $0x40] ss:$8 sps:$4 sm:$0xff]   ;;  %v7887_v18 = vld [vmem:[%s12117_s1 + $0x34] ss:$8 sps:$4 sm:$0xff]   ;;  %s7685_s21 = smul.u32 264, %s462_s25  ;;  %vm2123_vm3 = vcmask 1045504  }
  0x1c   : > { %782 = vmatpush1.bf16.msra.mxu0 %v7871_v7  ;;  %1055 = vmatpush1.bf16.msra.mxu1 %v7872_v8  ;;  %v7889_v19 = vld [vmem:[%s12117_s1 + $0xb0] ss:$8 sps:$4 sm:$0xff]   ;;  %v7891_v21 = vld [vmem:[%s12117_s1 + $0xa4] ss:$8 sps:$4 sm:$0xff]   ;;  %v7895_v23 = vld [vmem:[%s12117_s1 + $0xa0] ss:$8 sps:$4 sm:$0xff]  }
  0x1d   : > { %783 = vmatprep.subr.bf16.mxu0 %v7873_v9  ;;  %1056 = vmatprep.subr.bf16.mxu1 %v7875_v10  ;;  %v7890_v20 = vld [vmem:[%s12117_s1 + $0x30] ss:$8 sps:$4 sm:$0xff]   ;;  %v7893_v22 = vld [vmem:[%s12117_s1 + $0x24] ss:$8 sps:$4 sm:$0xff]   ;;  %s8498_s24 = scalar_lea.vmem %s12116_s0, %s7685_s21  ;;  %v7896_v24 = vld [vmem:[%s12117_s1 + $0x20] ss:$8 sps:$4 sm:$0xff]  }
  0x1e   : > { %v7897_v25 = vld [vmem:[%s12117_s1 + $0x94] ss:$8 sps:$4 sm:$0xff]   ;;  %v467_v27 = vld [vmem:[%s8498_s24] sm:$0xff]  ;;  %v468_v28 = vld [vmem:[%s8498_s24 + $0x8] sm:$0xff]  ;;  %vm550_vm0 = vsmask.f32 7424 }
  0x1f   : > { %v7899_v26 = vld [vmem:[%s12117_s1 + $0x14] ss:$8 sps:$4 sm:$0xff]   ;;  %v8516_v31 = vpack.c.bf16 %v468_v28, %v467_v27  ;;  %v7901_v32 = vld [vmem:[%s12117_s1 + $0x90] ss:$8 sps:$4 sm:$0xff]   ;;  %v7903_v34 = vld [vmem:[%s12117_s1 + $0x84] ss:$8 sps:$4 sm:$0xff]  }
  0x20   : > { %784 = vmatpush1.bf16.msra.mxu0 %v7877_v11  ;;  %1057 = vmatpush1.bf16.msra.mxu1 %v7878_v12  ;;  %v469_v29 = vld [vmem:[%s8498_s24 + $0x10] sm:$0xff]  ;;  %v470_v30 = vld [vmem:[%s8498_s24 + $0x18] sm:$0xff]  ;;  %v7905_v36 = vld [vmem:[%s12117_s1 + $0x4] ss:$8 sps:$4 sm:$0xff]   ;;  %vm1683_vm1 = vsmask.f32 6400 }
  0x21   : > { %785 = vmatprep.subr.bf16.mxu0 %v7879_v13  ;;  %1058 = vmatprep.subr.bf16.mxu1 %v7881_v14  ;;  %v7902_v33 = vld [vmem:[%s12117_s1 + $0x10] ss:$8 sps:$4 sm:$0xff]   ;;  %v8527_v35 = vpack.c.bf16 %v470_v30, %v469_v29  ;;  %v552_v37 = vshrl.u32 %v8516_v31, 16  ;;  %v554_v38 = vshll.u32 %v8516_v31, 16  ;;  %v471_v39 = vld [vmem:[%s8498_s24 + $0x20] sm:$0xff]  ;;  %v472_v41 = vld [vmem:[%s8498_s24 + $0x28] sm:$0xff] }
  0x22   : > { %v7907_v43 = vld [vmem:[%s12117_s1 + $0x80] ss:$8 sps:$4 sm:$0xff]   ;;  %v8547_v47 = vpack.c.bf16 %v472_v41, %v471_v39  ;;  %v7911_v48 = vld [vmem:[%s12117_s1 + $0x174] ss:$8 sps:$4 sm:$0xff]   ;;  %v7909_v54 = vld [vmem:[%s12117_s1 + $0x170] ss:$8 sps:$4 sm:$0xff]  }
  0x23   : > { %v559_v40 = vshll.u32 %v8527_v35, 16  ;;  %v556_v42 = vrot.slane %v554_v38, 1  ;;  %v7908_v44 = vld [vmem:[%s12117_s1] ss:$8 sps:$4 sm:$0xff]   ;;  %v563_v50 = vshrl.u32 %v8527_v35, 16  ;;  %v473_v52 = vld [vmem:[%s8498_s24 + $0x30] sm:$0xff] }
  0x24   : > { %786 = vmatpush1.bf16.msra.mxu0 %v7883_v15  ;;  %1059 = vmatpush1.bf16.msra.mxu1 %v7884_v16  ;;  %v567_v51 = vshll.u32 %v8547_v47, 16  ;;  %v474_v53 = vld [vmem:[%s8498_s24 + $0x38] sm:$0xff]  ;;  %v7914_v55 = vld [vmem:[%s12117_s1 + $0x164] ss:$8 sps:$4 sm:$0xff]   ;;  %v7912_v59 = vld [vmem:[%s12117_s1 + $0x160] ss:$8 sps:$4 sm:$0xff]  }
  0x25   : > { %787 = vmatprep.subr.bf16.mxu0 %v7885_v17  ;;  %1060 = vmatprep.subr.bf16.mxu1 %v7887_v18  ;;  %v557_v45 = vor.u32 %v556_v42, %v552_v37  ;;  %v561_v46 = vrot.slane %v559_v40, 1  ;;  %v8568_v58 = vpack.c.bf16 %v474_v53, %v473_v52  ;;  %v7917_v60 = vld [vmem:[%s12117_s1 + $0x154] ss:$8 sps:$4 sm:$0xff]   ;;  %v1688_v61 = vrot.slane %v559_v40, 2  ;;  %v475_v63 = vld [vmem:[%s8498_s24 + $0x40] sm:$0xff]  ;;  %v476_v5 = vld [vmem:[%s8498_s24 + $0x48] sm:$0xff] }
  0x26   : > { %v569_v57 = vrot.slane %v567_v51, 1  ;;  %v571_v62 = vshrl.u32 %v8547_v47, 16  ;;  %v1687_v1 = vrot.slane %v563_v50, 1  ;;  %v7926_v4 = vld [vmem:[%s12117_s1 + $0x1f4] ss:$8 sps:$4 sm:$0xff]   ;;  %v8601_v12 = vpack.c.bf16 %v476_v5, %v475_v63  ;;  %v479_v42 = vld [vmem:[%s8498_s24 + $0x60] sm:$0xff] }
  0x27   : > { %v562_v49 = vsel %vm550_vm0, %v557_v45, %v561_v46  ;;  %v565_v56 = vor.u32 %v563_v50, %v561_v46  ;;  %v575_v3 = vshll.u32 %v8568_v58, 16  ;;  %v7915_v6 = vld [vmem:[%s12117_s1 + $0x150] ss:$8 sps:$4 sm:$0xff]   ;;  %v7920_v8 = vld [vmem:[%s12117_s1 + $0x144] ss:$8 sps:$4 sm:$0xff]   ;;  %v1685_v29 = vrot.slane %v554_v38, 2 }
  0x28   : > { %788 = vmatpush1.bf16.msra.mxu0 %v7889_v19  ;;  %1061 = vmatpush1.bf16.msra.mxu1 %v7890_v20  ;;  %v7924_v7 = vld [vmem:[%s12117_s1 + $0x1f0] ss:$8 sps:$4 sm:$0xff]   ;;  %v7929_v9 = vld [vmem:[%s12117_s1 + $0x1e4] ss:$8 sps:$4 sm:$0xff]   ;;  %v573_v10 = vor.u32 %v571_v62, %v569_v57  ;;  %v8603_v13 = vor.u32 %v1688_v61, %v1687_v1  ;;  %v7918_v14 = vld [vmem:[%s12117_s1 + $0x140] ss:$8 sps:$4 sm:$0xff]  }
  0x29   : > { %789 = vmatprep.subr.bf16.mxu0 %v7891_v21  ;;  %1062 = vmatprep.subr.bf16.mxu1 %v7893_v22  ;;  %v570_v0 = vsel %vm550_vm0, %v565_v56, %v569_v57  ;;  %v577_v11 = vrot.slane %v575_v3, 1  ;;  %v7923_v15 = vld [vmem:[%s12117_s1 + $0x134] ss:$8 sps:$4 sm:$0xff]   ;;  %v7927_v16 = vld [vmem:[%s12117_s1 + $0x1e0] ss:$8 sps:$4 sm:$0xff]   ;;  %v579_v20 = vshrl.u32 %v8568_v58, 16 }
  0x2a   : > { %v7932_v17 = vld [vmem:[%s12117_s1 + $0x1d4] ss:$8 sps:$4 sm:$0xff]   ;;  %v583_v21 = vshll.u32 %v8601_v12, 16  ;;  %v7938_v27 = vld [vmem:[%s12117_s1 + $0x124] ss:$8 sps:$4 sm:$0xff]   ;;  %v1691_v38 = vrot.slane %v571_v62, 1 }
  0x2b   : > { %v477_v18 = vld [vmem:[%s8498_s24 + $0x50] sm:$0xff]  ;;  %v578_v19 = vsel %vm550_vm0, %v573_v10, %v577_v11  ;;  %v478_v22 = vld [vmem:[%s8498_s24 + $0x58] sm:$0xff]  ;;  %v7933_v28 = vld [vmem:[%s12117_s1 + $0x1c0] ss:$8 sps:$4 sm:$0xff]   ;;  %v581_v30 = vor.u32 %v579_v20, %v577_v11  ;;  %v1692_v40 = vrot.slane %v567_v51, 2  ;;  %v587_v41 = vshrl.u32 %v8601_v12, 16 }
  0x2c   : > { %790 = vmatpush1.bf16.msra.mxu0 %v7895_v23  ;;  %1063 = vmatpush1.bf16.msra.mxu1 %v7896_v24  ;;  %v7921_v23 = vld [vmem:[%s12117_s1 + $0x130] ss:$8 sps:$4 sm:$0xff]   ;;  %v1684_v24 = vrot.slane %v552_v37, 1  ;;  %v7947_v39 = vld [vmem:[%s12117_s1 + $0x114] ss:$8 sps:$4 sm:$0xff]   ;;  %v1700_v56 = vrot.slane %v583_v21, 2 }
  0x2d   : > { %791 = vmatprep.subr.bf16.mxu0 %v7897_v25  ;;  %1064 = vmatprep.subr.bf16.mxu1 %v7899_v26  ;;  %v7930_v25 = vld [vmem:[%s12117_s1 + $0x1d0] ss:$8 sps:$4 sm:$0xff]   ;;  %v7935_v26 = vld [vmem:[%s12117_s1 + $0x1c4] ss:$8 sps:$4 sm:$0xff]   ;;  %v1693_v53 = vor.u32 %v1692_v40, %v1691_v38  ;;  %v7951_v61 = vld [vmem:[%s12117_s1 + $0x100] ss:$8 sps:$4 sm:$0xff]  }
  0x2e   : > { %v1686_v37 = vor.u32 %v1685_v29, %v1684_v24  ;;  %v7945_v45 = vld [vmem:[%s12117_s1 + $0x110] ss:$8 sps:$4 sm:$0xff]   ;;  %v7944_v51 = vld [vmem:[%s12117_s1 + $0x1a4] ss:$8 sps:$4 sm:$0xff]   ;;  %vm3096_vm4 = vcmask 1039360   ;;  %vm3124_vm5 = vcmask 1047552  }
  0x2f   : > { %v7953_v52 = vld [vmem:[%s12117_s1 + $0x104] ss:$8 sps:$4 sm:$0xff]   ;;  %v8682_v57 = vsel %vm1683_vm1, %v8603_v13, %v1693_v53  ;;  %v486_v40 = vld [vmem:[%s8498_s24 + $0x98] sm:$0xff]  ;;  %vm3777_vm6 = vcmask 1040384   ;;  %s8297_s19 = smov 122   ;;  %vm3356_vm7 = vcmask 998400  }
  0x30   : > { %792 = vmatpush1.bf16.msra.mxu0 %v7901_v32  ;;  %1065 = vmatpush1.bf16.msra.mxu1 %v7902_v33  ;;  %v585_v32 = vrot.slane %v583_v21, 1  ;;  %v8644_v33 = vpack.c.bf16 %v478_v22, %v477_v18  ;;  %v8668_v46 = vsel %vm1683_vm1, %v1686_v37, %v8603_v13  ;;  %v7956_v13 = vld [vmem:[%s12117_s1 + $0x184] ss:$8 sps:$4 sm:$0xff]   ;;  %v7959_v18 = vld [vmem:[%s12117_s1 + $0x274] ss:$8 sps:$4 sm:$0xff]   ;;  %vm3752_vm8 = vcmask 277504  }
  0x31   : > { %793 = vmatprep.subr.bf16.mxu0 %v7903_v34  ;;  %1066 = vmatprep.subr.bf16.mxu1 %v7905_v36  ;;  %v7936_v34 = vld [vmem:[%s12117_s1 + $0x120] ss:$8 sps:$4 sm:$0xff]   ;;  %v7941_v36 = vld [vmem:[%s12117_s1 + $0x1b4] ss:$8 sps:$4 sm:$0xff]   ;;  %s8298_s28 = smov 112   ;;  %vm5665_vm9 = vcmask 916480  }
  0x32   : > { %v591_v50 = vshll.u32 %v8644_v33, 16  ;;  %v589_v63 = vor.u32 %v587_v41, %v585_v32  ;;  %v483_v24 = vld [vmem:[%s8498_s24 + $0x80] sm:$0xff]  ;;  %vm5888_vm10 = vcmask 130048   ;;  %vm8300_vm11 = vmmov 0   ;;  %s458_s18 = sand.u32 1, %s8285_s30   ;;  %s7607_s22 = sshll.u32 %s8398_s17, 7 }
  0x33   : > { %vm6679_vm12 = vcmask 523264   ;;  %s6951_s15 = scalar_lea.sflag [#allocation3], %s458_s18  ;;  %s8301_s17 = smov [#allocation2]  }
  0x34   : > { %794 = vmatpush1.bf16.msra.mxu0 %v7907_v43  ;;  %1067 = vmatpush1.bf16.msra.mxu1 %v7908_v44  ;;  %v480_v43 = vld [vmem:[%s8498_s24 + $0x68] sm:$0xff]  ;;  %v7939_v44 = vld [vmem:[%s12117_s1 + $0x1b0] ss:$8 sps:$4 sm:$0xff]  }
  0x35   : > { %1409 = vmatprep.subr.bf16.mxu0 %v7911_v48  ;;  %1849 = vmatprep.subr.bf16.mxu1 %v7926_v4  ;;  %v1695_v48 = vrot.slane %v579_v20, 1  ;;  %v8693_v1 = vpack.c.bf16 %v480_v43, %v479_v42 }
  0x37   : > { %812 = vmatmul.mubr.bf16.vlgmr.msra.gmra.mxu0 %v562_v49  ;;  %1085 = vmatmul.mubr.bf16.vlgmr.msra.gmra.mxu1 %v8516_v31  ;;  %v586_v49 = vsel %vm550_vm0, %v581_v30, %v585_v32  ;;  %v599_v11 = vshll.u32 %v8693_v1, 16 }
  0x38   : > { %821 = vmatprep.mubr.bf16.mxu0 %v12136_v2  ;;  %1094 = vmatprep.mubr.bf16.mxu1 %v12136_v2 }
  0x39   : > { %1410 = vmatpush1.bf16.msra.mxu0 %v7909_v54  ;;  %1850 = vmatpush1.bf16.msra.mxu1 %v7924_v7  ;;  %v1696_v54 = vrot.slane %v575_v3, 2  ;;  %v7950_v3 = vld [vmem:[%s12117_s1 + $0x194] ss:$8 sps:$4 sm:$0xff]   ;;  %v601_v20 = vrot.slane %v599_v11, 1  ;;  %v1708_v29 = vrot.slane %v599_v11, 2  ;;  %v492_v11 = vld [vmem:[%s8498_s24 + $0xc8] sm:$0xff] }
  0x3a   : > { %1411 = vmatprep.subr.bf16.mxu0 %v7914_v55  ;;  %1851 = vmatprep.subr.bf16.mxu1 %v7929_v9  ;;  %v1699_v55 = vrot.slane %v587_v41, 1  ;;  %v481_v7 = vld [vmem:[%s8498_s24 + $0x70] sm:$0xff] }
  0x3b   : > { %v7948_v9 = vld [vmem:[%s12117_s1 + $0x190] ss:$8 sps:$4 sm:$0xff]  }
  0x3c   : > { %v1701_v62 = vor.u32 %v1700_v56, %v1699_v55 }
  0x3d   : > { %1412 = vmatpush1.bf16.msra.mxu0 %v7912_v59  ;;  %1852 = vmatpush1.bf16.msra.mxu1 %v7927_v16  ;;  %v1697_v59 = vor.u32 %v1696_v54, %v1695_v48  ;;  %v488_v54 = vld [vmem:[%s8498_s24 + $0xa8] sm:$0xff] }
  0x3e   : > { %1413 = vmatprep.subr.bf16.mxu0 %v7917_v60  ;;  %1853 = vmatprep.subr.bf16.mxu1 %v7932_v17  ;;  %v7942_v60 = vld [vmem:[%s12117_s1 + $0x1a0] ss:$8 sps:$4 sm:$0xff]  }
  0x3f   : > { %822 = vmatmul.mubr.bf16.gmra.mxu0 %v570_v0  ;;  %1095 = vmatmul.mubr.bf16.gmra.mxu1 %v8527_v35  ;;  %v593_v0 = vrot.slane %v591_v50, 1  ;;  %v8699_v4 = vsel %vm1683_vm1, %v1693_v53, %v1697_v59  ;;  %v8702_v5 = vsel %vm1683_vm1, %v1697_v59, %v1701_v62  ;;  %v7954_v17 = vld [vmem:[%s12117_s1 + $0x180] ss:$8 sps:$4 sm:$0xff]  }
  0x40   : > { %831 = vmatprep.mubr.bf16.mxu0 %v12136_v2  ;;  %1104 = vmatprep.mubr.bf16.mxu1 %v12136_v2  ;;  %v487_v53 = vld [vmem:[%s8498_s24 + $0xa0] sm:$0xff] }
  0x41   : > { %1414 = vmatpush1.bf16.msra.mxu0 %v7915_v6  ;;  %1854 = vmatpush1.bf16.msra.mxu1 %v7930_v25  ;;  %v595_v6 = vshrl.u32 %v8644_v33, 16  ;;  %v594_v10 = vsel %vm550_vm0, %v589_v63, %v593_v0  ;;  %v484_v25 = vld [vmem:[%s8498_s24 + $0x88] sm:$0xff] }
  0x42   : > { %1415 = vmatprep.subr.bf16.mxu0 %v7920_v8  ;;  %1855 = vmatprep.subr.bf16.mxu1 %v7935_v26  ;;  %v482_v8 = vld [vmem:[%s8498_s24 + $0x78] sm:$0xff] }
  0x43   : > { %v8724_v21 = vpack.c.bf16 %v482_v8, %v481_v7 }
  0x45   : > { %1416 = vmatpush1.bf16.msra.mxu0 %v7918_v14  ;;  %1856 = vmatpush1.bf16.msra.mxu1 %v7933_v28  ;;  %v1703_v14 = vrot.slane %v595_v6, 1  ;;  %v611_v38 = vshrl.u32 %v8724_v21, 16 }
  0x46   : > { %1417 = vmatprep.subr.bf16.mxu0 %v7923_v15  ;;  %1857 = vmatprep.subr.bf16.mxu1 %v7941_v36  ;;  %v1704_v15 = vrot.slane %v591_v50, 2  ;;  %v8737_v36 = vpack.c.bf16 %v484_v25, %v483_v24 }
  0x47   : > { %832 = vmatmul.mubr.bf16.gmra.mxu0 %v578_v19  ;;  %1105 = vmatmul.mubr.bf16.gmra.mxu1 %v8547_v47  ;;  %v597_v19 = vor.u32 %v595_v6, %v593_v0  ;;  %v1711_v43 = vrot.slane %v611_v38, 1  ;;  %v8765_v6 = vpack.c.bf16 %v488_v54, %v487_v53 }
  0x48   : > { %841 = vmatprep.mubr.bf16.mxu0 %v12136_v2  ;;  %1114 = vmatprep.mubr.bf16.mxu1 %v12136_v2  ;;  %v1705_v16 = vor.u32 %v1704_v15, %v1703_v14  ;;  %v615_v42 = vshll.u32 %v8737_v36, 16 }
  0x49   : > { %1418 = vmatpush1.bf16.msra.mxu0 %v7921_v23  ;;  %1858 = vmatpush1.bf16.msra.mxu1 %v7939_v44  ;;  %v603_v23 = vshrl.u32 %v8693_v1, 16  ;;  %v602_v26 = vsel %vm550_vm0, %v597_v19, %v601_v20  ;;  %v631_v14 = vshll.u32 %v8765_v6, 16  ;;  %v635_v25 = vshrl.u32 %v8765_v6, 16 }
  0x4a   : > { %1419 = vmatprep.subr.bf16.mxu0 %v7938_v27  ;;  %1859 = vmatprep.subr.bf16.mxu1 %v7944_v51  ;;  %v8727_v22 = vsel %vm1683_vm1, %v1701_v62, %v1705_v16  ;;  %v607_v27 = vshll.u32 %v8724_v21, 16  ;;  %v490_v62 = vld [vmem:[%s8498_s24 + $0xb8] sm:$0xff] }
  0x4b   : > { %v1707_v28 = vrot.slane %v603_v23, 1  ;;  %v605_v32 = vor.u32 %v603_v23, %v601_v20  ;;  %v633_v20 = vrot.slane %v631_v14, 1 }
  0x4c   : > { %v1712_v44 = vrot.slane %v607_v27, 2 }
  0x4d   : > { %1420 = vmatpush1.bf16.msra.mxu0 %v7936_v34  ;;  %1860 = vmatpush1.bf16.msra.mxu1 %v7942_v60  ;;  %v1709_v30 = vor.u32 %v1708_v29, %v1707_v28  ;;  %v609_v34 = vrot.slane %v607_v27, 1  ;;  %v1716_v60 = vrot.slane %v615_v42, 2  ;;  %v493_v28 = vld [vmem:[%s8498_s24 + $0xd0] sm:$0xff] }
  0x4e   : > { %1421 = vmatprep.subr.bf16.mxu0 %v7947_v39  ;;  %1861 = vmatprep.subr.bf16.mxu1 %v7950_v3  ;;  %v485_v39 = vld [vmem:[%s8498_s24 + $0x90] sm:$0xff] }
  0x4f   : > { %842 = vmatmul.mubr.bf16.gmra.mxu0 %v586_v49  ;;  %1115 = vmatmul.mubr.bf16.gmra.mxu1 %v8568_v58  ;;  %v8740_v37 = vsel %vm1683_vm1, %v1705_v16, %v1709_v30  ;;  %v610_v41 = vsel %vm550_vm0, %v605_v32, %v609_v34  ;;  %v613_v48 = vor.u32 %v611_v38, %v609_v34  ;;  %v617_v49 = vrot.slane %v615_v42, 1  ;;  %v494_v32 = vld [vmem:[%s8498_s24 + $0xd8] sm:$0xff] }
  0x50   : > { %851 = vmatprep.mubr.bf16.mxu0 %v12136_v2  ;;  %1124 = vmatprep.mubr.bf16.mxu1 %v12136_v2  ;;  %v8750_v50 = vpack.c.bf16 %v486_v40, %v485_v39  ;;  %v1723_v34 = vrot.slane %v635_v25, 1  ;;  %v1724_v38 = vrot.slane %v631_v14, 2  ;;  %v637_v40 = vor.u32 %v635_v25, %v633_v20 }
  0x51   : > { %1422 = vmatpush1.bf16.msra.mxu0 %v7945_v45  ;;  %1862 = vmatpush1.bf16.msra.mxu1 %v7948_v9  ;;  %v1713_v45 = vor.u32 %v1712_v44, %v1711_v43  ;;  %v618_v55 = vsel %vm550_vm0, %v613_v48, %v617_v49  ;;  %v495_v48 = vld [vmem:[%s8498_s24 + $0xe0] sm:$0xff] }
  0x52   : > { %1423 = vmatprep.subr.bf16.mxu0 %v7953_v52  ;;  %1863 = vmatprep.subr.bf16.mxu1 %v7956_v13  ;;  %v619_v52 = vshrl.u32 %v8737_v36, 16  ;;  %v623_v56 = vshll.u32 %v8750_v50, 16  ;;  %v627_v8 = vshrl.u32 %v8750_v50, 16  ;;  %v8794_v39 = vor.u32 %v1724_v38, %v1723_v34 }
  0x53   : > { %v8753_v51 = vsel %vm1683_vm1, %v1709_v30, %v1713_v45  ;;  %v1280_v34 = vrot.slane %v8516_v31, 1  ;;  %v1281_v38 = vrot.slane %v8527_v35, 1 }
  0x54   : > { %v1715_v59 = vrot.slane %v619_v52, 1  ;;  %v621_v0 = vor.u32 %v619_v52, %v617_v49  ;;  %v625_v3 = vrot.slane %v623_v56, 1  ;;  %v1719_v15 = vrot.slane %v627_v8, 1  ;;  %v496_v49 = vld [vmem:[%s8498_s24 + $0xe8] sm:$0xff] }
  0x55   : > { %1424 = vmatpush1.bf16.msra.mxu0 %v7951_v61  ;;  %1864 = vmatpush1.bf16.msra.mxu1 %v7954_v17  ;;  %v489_v61 = vld [vmem:[%s8498_s24 + $0xb0] sm:$0xff]  ;;  %v1720_v16 = vrot.slane %v623_v56, 2  ;;  %v8816_v53 = vpack.c.bf16 %v496_v49, %v495_v48  ;;  %v1283_v48 = vrot.slane %v8547_v47, 1  ;;  %v7960_v49 = vld [vmem:[%s12117_s1 + $0x260] ss:$8 sps:$4 sm:$0xff]  }
  0x56   : > { %2253 = vmatprep.subr.bf16.mxu0 %v7959_v18  ;;  %v1717_v63 = vor.u32 %v1716_v60, %v1715_v59  ;;  %v8771_v9 = vpack.c.bf16 %v490_v62, %v489_v61  ;;  %v626_v13 = vsel %vm550_vm0, %v621_v0, %v625_v3  ;;  %v629_v19 = vor.u32 %v627_v8, %v625_v3  ;;  %v497_v60 = vld [vmem:[%s8498_s24 + $0xf0] sm:$0xff]  ;;  %v498_v61 = vld [vmem:[%s8498_s24 + $0xf8] sm:$0xff] }
  0x57   : > { %852 = vmatmul.mubr.bf16.gmra.mxu0 %v594_v10  ;;  %1125 = vmatmul.mubr.bf16.gmra.mxu1 %v8601_v12  ;;  %v491_v10 = vld [vmem:[%s8498_s24 + $0xc0] sm:$0xff]  ;;  %v1721_v18 = vor.u32 %v1720_v16, %v1719_v15  ;;  %v663_v59 = vshll.u32 %v8816_v53, 16  ;;  %v667_v16 = vshrl.u32 %v8816_v53, 16 }
  0x58   : > { %861 = vmatprep.mubr.bf16.mxu0 %v12136_v2  ;;  %1134 = vmatprep.mubr.bf16.mxu1 %v12136_v2  ;;  %v8768_v7 = vsel %vm1683_vm1, %v1713_v45, %v1717_v63  ;;  %v639_v17 = vshll.u32 %v8771_v9, 16  ;;  %v8781_v23 = vpack.c.bf16 %v492_v11, %v491_v10  ;;  %v643_v27 = vshrl.u32 %v8771_v9, 16  ;;  %v499_v11 = vld [vmem:[%s8498_s24 + $0x100] sm:$0xff] }
  0x59   : > { %v8784_v24 = vsel %vm1683_vm1, %v1717_v63, %v1721_v18  ;;  %v634_v29 = vsel %vm550_vm0, %v629_v19, %v633_v20  ;;  %v8803_v42 = vsel %vm1683_vm1, %v1721_v18, %v8794_v39  ;;  %v8830_v63 = vpack.c.bf16 %v498_v61, %v497_v60  ;;  %v7966_v61 = vld [vmem:[%s12117_s1 + $0x240] ss:$8 sps:$4 sm:$0xff]  }
  0x5a   : > { %v647_v30 = vshll.u32 %v8781_v23, 16  ;;  %v651_v54 = vshrl.u32 %v8781_v23, 16  ;;  %v665_v8 = vrot.slane %v663_v59, 1  ;;  %v8843_v14 = vpack.c.bf16 %v499_v11, %v499_v11 }
  0x5b   : > { %v671_v10 = vshll.u32 %v8830_v63, 16  ;;  %v1285_v60 = vrot.slane %v8568_v58, 1  ;;  %v1287_v11 = vrot.slane %v8601_v12, 1 }
  0x5c   : > { %v649_v44 = vrot.slane %v647_v30, 1  ;;  %v679_v19 = vshll.u32 %v8843_v14, 16  ;;  %v669_v20 = vor.u32 %v667_v16, %v665_v8 }
  0x5d   : > { %v673_v18 = vrot.slane %v671_v10, 1 }
  0x5e   : > { %v653_v62 = vor.u32 %v651_v54, %v649_v44 }
  0x5f   : > { %862 = vmatmul.mubr.bf16.gmra.mxu0 %v602_v26  ;;  %1135 = vmatmul.mubr.bf16.gmra.mxu1 %v8644_v33  ;;  %v641_v26 = vrot.slane %v639_v17, 1  ;;  %v674_v25 = vsel %vm550_vm0, %v669_v20, %v673_v18  ;;  %v7980_v20 = vld [vmem:[%s12117_s1 + $0x204] ss:$8 sps:$4 sm:$0xff]  }
  0x60   : > { %871 = vmatprep.mubr.bf16.mxu0 %v12136_v2  ;;  %1144 = vmatprep.mubr.bf16.mxu1 %v12136_v2 }
  0x61   : > { %v642_v43 = vsel %vm550_vm0, %v637_v40, %v641_v26  ;;  %v645_v52 = vor.u32 %v643_v27, %v641_v26  ;;  %v675_v26 = vshrl.u32 %v8830_v63, 16  ;;  %v1282_v40 = vsel %vm1279_vm2, %v1280_v34, %v1281_v38 }
  0x62   : > { %v1293_v34 = vrot.slane %v8724_v21, 1 }
  0x67   : > { %872 = vmatmul.mubr.bf16.gmra.mxu0 %v610_v41  ;;  %1145 = vmatmul.mubr.bf16.gmra.mxu1 %v8693_v1  ;;  %v8799_v41 = vpack.c.bf16 %v494_v32, %v493_v28  ;;  %v681_v28 = vrot.slane %v679_v19, 1 }
  0x68   : > { %881 = vmatprep.mubr.bf16.mxu0 %v12136_v2  ;;  %1154 = vmatprep.mubr.bf16.mxu1 %v12136_v2 }
  0x69   : > { %v655_v45 = vshll.u32 %v8799_v41, 16  ;;  %v659_v3 = vshrl.u32 %v8799_v41, 16 }
  0x6b   : > { %v657_v56 = vrot.slane %v655_v45, 1 }
  0x6d   : > { %v658_v0 = vsel %vm550_vm0, %v653_v62, %v657_v56  ;;  %v7971_v62 = vld [vmem:[%s12117_s1 + $0x234] ss:$8 sps:$4 sm:$0xff]  }
  0x6f   : > { %882 = vmatmul.mubr.bf16.gmra.mxu0 %v618_v55  ;;  %1155 = vmatmul.mubr.bf16.gmra.mxu1 %v8724_v21  ;;  %v650_v55 = vsel %vm550_vm0, %v645_v52, %v649_v44  ;;  %v7962_v44 = vld [vmem:[%s12117_s1 + $0x264] ss:$8 sps:$4 sm:$0xff]   ;;  %v7965_v52 = vld [vmem:[%s12117_s1 + $0x254] ss:$8 sps:$4 sm:$0xff]  }
  0x70   : > { %891 = vmatprep.mubr.bf16.mxu0 %v12136_v2  ;;  %1164 = vmatprep.mubr.bf16.mxu1 %v12136_v2 }
  0x77   : > { %892 = vmatmul.mubr.bf16.gmra.mxu0 %v626_v13  ;;  %1165 = vmatmul.mubr.bf16.gmra.mxu1 %v8737_v36  ;;  %v661_v13 = vor.u32 %v659_v3, %v657_v56  ;;  %v7968_v56 = vld [vmem:[%s12117_s1 + $0x244] ss:$8 sps:$4 sm:$0xff]  }
  0x78   : > { %901 = vmatprep.mubr.bf16.mxu0 %v12136_v2  ;;  %1174 = vmatprep.mubr.bf16.mxu1 %v12136_v2 }
  0x79   : > { %v666_v15 = vsel %vm550_vm0, %v661_v13, %v665_v8  ;;  %v7974_v8 = vld [vmem:[%s12117_s1 + $0x224] ss:$8 sps:$4 sm:$0xff]   ;;  %v7972_v13 = vld [vmem:[%s12117_s1 + $0x220] ss:$8 sps:$4 sm:$0xff]  }
  0x7f   : > { %902 = vmatmul.mubr.bf16.gmra.mxu0 %v634_v29  ;;  %1175 = vmatmul.mubr.bf16.gmra.mxu1 %v8750_v50  ;;  %v677_v29 = vor.u32 %v675_v26, %v673_v18  ;;  %v1288_v18 = vsel %vm1279_vm2, %v1285_v60, %v1287_v11 }
  0x80   : > { %911 = vmatprep.mubr.bf16.mxu0 %v12136_v2  ;;  %1184 = vmatprep.mubr.bf16.mxu1 %v12136_v2 }
  0x81   : > { %v682_v32 = vsel %vm550_vm0, %v677_v29, %v681_v28  ;;  %v7978_v28 = vld [vmem:[%s12117_s1 + $0x200] ss:$8 sps:$4 sm:$0xff]  }
  0x87   : > { %912 = vmatmul.mubr.bf16.gmra.mxu0 %v642_v43  ;;  %1185 = vmatmul.mubr.bf16.gmra.mxu1 %v8765_v6  ;;  %v7957_v43 = vld [vmem:[%s12117_s1 + $0x270] ss:$8 sps:$4 sm:$0xff]  }
  0x88   : > { %921 = vmatprep.mubr.bf16.mxu0 %v12136_v2  ;;  %1194 = vmatprep.mubr.bf16.mxu1 %v12136_v2 }
  0x8f   : > { %922 = vmatmul.mubr.bf16.gmra.mxu0 %v650_v55  ;;  %1195 = vmatmul.mubr.bf16.gmra.mxu1 %v8771_v9  ;;  %v1284_v55 = vsel %vm1279_vm2, %v1281_v38, %v1283_v48 }
  0x90   : > { %931 = vmatprep.mubr.bf16.mxu0 %v12136_v2  ;;  %1204 = vmatprep.mubr.bf16.mxu1 %v12136_v2 }
  0x97   : > { %932 = vmatmul.mubr.bf16.gmra.mxu0 %v658_v0  ;;  %1205 = vmatmul.mubr.bf16.gmra.mxu1 %v8781_v23  ;;  %v1286_v0 = vsel %vm1279_vm2, %v1283_v48, %v1285_v60 }
  0x98   : > { %941 = vmatprep.mubr.bf16.mxu0 %v12136_v2  ;;  %1214 = vmatprep.mubr.bf16.mxu1 %v12136_v2 }
  0x9f   : > { %942 = vmatmul.mubr.bf16.gmra.mxu0 %v666_v15  ;;  %1215 = vmatmul.mubr.bf16.gmra.mxu1 %v8799_v41  ;;  %v7977_v15 = vld [vmem:[%s12117_s1 + $0x214] ss:$8 sps:$4 sm:$0xff]  }
  0xa0   : > { %951 = vmatprep.mubr.bf16.mxu0 %v12136_v2  ;;  %1224 = vmatprep.mubr.bf16.mxu1 %v12136_v2 }
  0xa7   : > { %952 = vmatmul.mubr.bf16.gmra.mxu0 %v674_v25  ;;  %1225 = vmatmul.mubr.bf16.gmra.mxu1 %v8816_v53  ;;  %v1289_v25 = vrot.slane %v8644_v33, 1 }
  0xa8   : > { %961 = vmatprep.mubr.bf16.mxu0 %v12136_v2  ;;  %1234 = vmatprep.mubr.bf16.mxu1 %v12136_v2 }
  0xa9   : > { %v1290_v29 = vsel %vm1279_vm2, %v1287_v11, %v1289_v25 }
  0xaf   : > { %962 = vmatmul.mubr.bf16.gmra.mxu0 %v682_v32  ;;  %1235 = vmatmul.mubr.bf16.gmra.mxu1 %v8830_v63 }
  0xb0   : > { %1441 = vmatprep.mubr.bf16.mxu0 %v12136_v2  ;;  %1881 = vmatprep.mubr.bf16.mxu1 %v12136_v2 }
  0xb7   : > { %1442 = vmatmul.mubr.bf16.vlgmr.msra.gmra.mxu0 %v1282_v40  ;;  %1882 = vmatmul.mubr.bf16.vlgmr.msra.gmra.mxu1 %v8668_v46  ;;  %v7963_v46 = vld [vmem:[%s12117_s1 + $0x250] ss:$8 sps:$4 sm:$0xff]  }
  0xb8   : > { %1451 = vmatprep.mubr.bf16.mxu0 %v12136_v2  ;;  %1891 = vmatprep.mubr.bf16.mxu1 %v12136_v2 }
  0xb9   : > { %2254 = vmatpush1.bf16.msra.mxu0 %v7957_v43 }
  0xba   : > { %2255 = vmatprep.subr.bf16.mxu0 %v7962_v44 }
  0xbd   : > { %2256 = vmatpush1.bf16.msra.mxu0 %v7960_v49  ;;  %v1299_v49 = vrot.slane %v8765_v6, 1 }
  0xbe   : > { %2257 = vmatprep.subr.bf16.mxu0 %v7965_v52 }
  0xbf   : > { %1452 = vmatmul.mubr.bf16.gmra.mxu0 %v1284_v55  ;;  %1892 = vmatmul.mubr.bf16.gmra.mxu1 %v8682_v57  ;;  %v7969_v57 = vld [vmem:[%s12117_s1 + $0x230] ss:$8 sps:$4 sm:$0xff]  }
  0xc0   : > { %1461 = vmatprep.mubr.bf16.mxu0 %v12136_v2  ;;  %1901 = vmatprep.mubr.bf16.mxu1 %v12136_v2 }
  0xc1   : > { %2258 = vmatpush1.bf16.msra.mxu0 %v7963_v46 }
  0xc2   : > { %2259 = vmatprep.subr.bf16.mxu0 %v7968_v56 }
  0xc5   : > { %2260 = vmatpush1.bf16.msra.mxu0 %v7966_v61 }
  0xc6   : > { %2261 = vmatprep.subr.bf16.mxu0 %v7971_v62  ;;  %v1728_v62 = vrot.slane %v639_v17, 2 }
  0xc7   : > { %1462 = vmatmul.mubr.bf16.gmra.mxu0 %v1286_v0  ;;  %1902 = vmatmul.mubr.bf16.gmra.mxu1 %v8699_v4  ;;  %v7975_v4 = vld [vmem:[%s12117_s1 + $0x210] ss:$8 sps:$4 sm:$0xff]  }
  0xc8   : > { %1471 = vmatprep.mubr.bf16.mxu0 %v12136_v2  ;;  %1911 = vmatprep.mubr.bf16.mxu1 %v12136_v2 }
  0xc9   : > { %2262 = vmatpush1.bf16.msra.mxu0 %v7969_v57 }
  0xca   : > { %2263 = vmatprep.subr.bf16.mxu0 %v7974_v8 }
  0xcd   : > { %2264 = vmatpush1.bf16.msra.mxu0 %v7972_v13 }
  0xce   : > { %2265 = vmatprep.subr.bf16.mxu0 %v7977_v15  ;;  %v1301_v15 = vrot.slane %v8771_v9, 1 }
  0xcf   : > { %1472 = vmatmul.mubr.bf16.gmra.mxu0 %v1288_v18  ;;  %1912 = vmatmul.mubr.bf16.gmra.mxu1 %v8702_v5  ;;  %v1291_v5 = vrot.slane %v8693_v1, 1 }
  0xd0   : > { %1481 = vmatprep.mubr.bf16.mxu0 %v12136_v2  ;;  %1921 = vmatprep.mubr.bf16.mxu1 %v12136_v2 }
  0xd1   : > { %2266 = vmatpush1.bf16.msra.mxu0 %v7975_v4  ;;  %v1292_v32 = vsel %vm1279_vm2, %v1289_v25, %v1291_v5  ;;  %v1294_v38 = vsel %vm1279_vm2, %v1291_v5, %v1293_v34 }
  0xd2   : > { %2267 = vmatprep.subr.bf16.mxu0 %v7980_v20 }
  0xd5   : > { %2268 = vmatpush1.bf16.msra.mxu0 %v7978_v28 }
  0xd7   : > { %1482 = vmatmul.mubr.bf16.gmra.mxu0 %v1290_v29  ;;  %1922 = vmatmul.mubr.bf16.gmra.mxu1 %v8727_v22  ;;  %v1295_v22 = vrot.slane %v8737_v36, 1  ;;  %v1302_v29 = vsel %vm1279_vm2, %v1299_v49, %v1301_v15 }
  0xd8   : > { %1491 = vmatprep.mubr.bf16.mxu0 %v12136_v2  ;;  %1931 = vmatprep.mubr.bf16.mxu1 %v12136_v2 }
  0xd9   : > { %v1296_v40 = vsel %vm1279_vm2, %v1293_v34, %v1295_v22  ;;  %v1732_v34 = vrot.slane %v647_v30, 2 }
  0xdf   : > { %1492 = vmatmul.mubr.bf16.gmra.mxu0 %v1292_v32  ;;  %1932 = vmatmul.mubr.bf16.gmra.mxu1 %v8740_v37  ;;  %v1297_v37 = vrot.slane %v8750_v50, 1  ;;  %v1731_v32 = vrot.slane %v651_v54, 1 }
  0xe0   : > { %1501 = vmatprep.mubr.bf16.mxu0 %v12136_v2  ;;  %1941 = vmatprep.mubr.bf16.mxu1 %v12136_v2 }
  0xe1   : > { %v1298_v43 = vsel %vm1279_vm2, %v1295_v22, %v1297_v37  ;;  %v1300_v61 = vsel %vm1279_vm2, %v1297_v37, %v1299_v49 }
  0xe7   : > { %1502 = vmatmul.mubr.bf16.gmra.mxu0 %v1294_v38  ;;  %1942 = vmatmul.mubr.bf16.gmra.mxu1 %v8753_v51 }
  0xe8   : > { %1511 = vmatprep.mubr.bf16.mxu0 %v12136_v2  ;;  %1951 = vmatprep.mubr.bf16.mxu1 %v12136_v2 }
  0xef   : > { %1512 = vmatmul.mubr.bf16.gmra.mxu0 %v1296_v40  ;;  %1952 = vmatmul.mubr.bf16.gmra.mxu1 %v8768_v7 }
  0xf0   : > { %1521 = vmatprep.mubr.bf16.mxu0 %v12136_v2  ;;  %1961 = vmatprep.mubr.bf16.mxu1 %v12136_v2 }
  0xf7   : > { %v813_v51 = vpop.f32.mrf.mxu0  ;;  %v1086_v44 = vpop.f32.mrf.mxu1  ;;  %1522 = vmatmul.mubr.bf16.gmra.mxu0 %v1298_v43  ;;  %1962 = vmatmul.mubr.bf16.gmra.mxu1 %v8784_v24  ;;  %v1727_v24 = vrot.slane %v643_v27, 1 }
  0xf8   : > { %v8957_v48 = vadd.f32 %v1086_v44, %v813_v51  ;;  %1531 = vmatprep.mubr.bf16.mxu0 %v12136_v2  ;;  %1971 = vmatprep.mubr.bf16.mxu1 %v12136_v2  ;;  %v1303_v51 = vrot.slane %v8781_v23, 1 }
  0xf9   : > { %v815_v7 = vpop.f32.mrf.mxu0  ;;  %v1088_v52 = vpop.f32.mrf.mxu1  ;;  %v1729_v27 = vor.u32 %v1728_v62, %v1727_v24  ;;  %v1735_v24 = vrot.slane %v659_v3, 1  ;;  %v1736_v62 = vrot.slane %v655_v45, 2 }
  0xfa   : > { %v8962_v55 = vadd.f32 %v1088_v52, %v815_v7 }
  0xfb   : > { %v817_v46 = vpop.f32.mrf.mxu0  ;;  %v1090_v56 = vpop.f32.mrf.mxu1  ;;  %v1737_v3 = vor.u32 %v1736_v62, %v1735_v24 }
  0xfc   : > { %v8964_v60 = vadd.f32 %v1090_v56, %v817_v46  ;;  %v1304_v46 = vsel %vm1279_vm2, %v1301_v15, %v1303_v51  ;;  %v1305_v15 = vrot.slane %v8799_v41, 1 }
  0xfd   : > { %v819_v0 = vpop.f32.mrf.mxu0  ;;  %v1092_v57 = vpop.f32.mrf.mxu1 }
  0xfe   : > { %v8971_v8 = vadd.f32 %v1092_v57, %v819_v0 }
  0xff   : > { %v823_v11 = vpop.f32.mrf.mxu0  ;;  %v1096_v13 = vpop.f32.mrf.mxu1  ;;  %1532 = vmatmul.mubr.bf16.gmra.mxu0 %v1300_v61  ;;  %1972 = vmatmul.mubr.bf16.gmra.mxu1 %v8803_v42  ;;  %v1730_v42 = vsel %vm1683_vm1, %v8794_v39, %v1729_v27  ;;  %v1733_v39 = vor.u32 %v1732_v34, %v1731_v32 }
 0x100   : > { %v8975_v18 = vadd.f32 %v1096_v13, %v823_v11  ;;  %1541 = vmatprep.mubr.bf16.mxu0 %v12136_v2  ;;  %1981 = vmatprep.mubr.bf16.mxu1 %v12136_v2 }
 0x101   : > { %v825_v4 = vpop.f32.mrf.mxu0  ;;  %v1098_v17 = vpop.f32.mrf.mxu1  ;;  %v1734_v61 = vsel %vm1683_vm1, %v1729_v27, %v1733_v39  ;;  %v1738_v34 = vsel %vm1683_vm1, %v1733_v39, %v1737_v3 }
 0x102   : > { %v8979_v20 = vadd.f32 %v1098_v17, %v825_v4 }
 0x103   : > { %v827_v25 = vpop.f32.mrf.mxu0  ;;  %v1100_v28 = vpop.f32.mrf.mxu1 }
 0x104   : > { %v8982_v5 = vadd.f32 %v1100_v28, %v827_v25 }
 0x105   : > { %v829_v38 = vpop.f32.mrf.mxu0  ;;  %v1102_v22 = vpop.f32.mrf.mxu1 }
 0x106   : > { %v8990_v40 = vadd.f32 %v1102_v22, %v829_v38  ;;  %v1739_v38 = vrot.slane %v667_v16, 1  ;;  %v1740_v22 = vrot.slane %v663_v59, 2 }
 0x107   : > { %v833_v37 = vpop.f32.mrf.mxu0  ;;  %v1106_v43 = vpop.f32.mrf.mxu1  ;;  %1542 = vmatmul.mubr.bf16.gmra.mxu0 %v1302_v29  ;;  %1982 = vmatmul.mubr.bf16.gmra.mxu1 %v1730_v42  ;;  %v1306_v42 = vsel %vm1279_vm2, %v1303_v51, %v1305_v15  ;;  %v1307_v51 = vrot.slane %v8816_v53, 1 }
 0x108   : > { %v8993_v44 = vadd.f32 %v1106_v43, %v833_v37  ;;  %1551 = vmatprep.mubr.bf16.mxu0 %v12136_v2  ;;  %1991 = vmatprep.mubr.bf16.mxu1 %v12136_v2  ;;  %v1741_v16 = vor.u32 %v1740_v22, %v1739_v38 }
 0x109   : > { %v835_v54 = vpop.f32.mrf.mxu0  ;;  %v1108_v49 = vpop.f32.mrf.mxu1  ;;  %v1308_v62 = vsel %vm1279_vm2, %v1305_v15, %v1307_v51  ;;  %v1309_v15 = vrot.slane %v8830_v63, 1 }
 0x10a   : > { %v8997_v30 = vadd.f32 %v1108_v49, %v835_v54 }
 0x10b   : > { %v837_v7 = vpop.f32.mrf.mxu0  ;;  %v1110_v52 = vpop.f32.mrf.mxu1 }
 0x10c   : > { %v9000_v56 = vadd.f32 %v1110_v52, %v837_v7 }
 0x10d   : > { %v839_v0 = vpop.f32.mrf.mxu0  ;;  %v1112_v57 = vpop.f32.mrf.mxu1 }
 0x10e   : > { %v9007_v11 = vadd.f32 %v1112_v57, %v839_v0  ;;  %v1742_v57 = vsel %vm1683_vm1, %v1737_v3, %v1741_v16  ;;  %v1747_v3 = vshrl.u32 %v8843_v14, 16 }
 0x10f   : > { %v843_v13 = vpop.f32.mrf.mxu0  ;;  %v1116_v4 = vpop.f32.mrf.mxu1  ;;  %1552 = vmatmul.mubr.bf16.gmra.mxu0 %v1304_v46  ;;  %1992 = vmatmul.mubr.bf16.gmra.mxu1 %v1734_v61 }
 0x110   : > { %v9010_v17 = vadd.f32 %v1116_v4, %v843_v13  ;;  %1561 = vmatprep.mubr.bf16.mxu0 %v12136_v2  ;;  %2001 = vmatprep.mubr.bf16.mxu1 %v12136_v2  ;;  %v1743_v13 = vrot.slane %v675_v26, 1  ;;  %v1744_v4 = vrot.slane %v671_v10, 2 }
 0x111   : > { %v845_v27 = vpop.f32.mrf.mxu0  ;;  %v1118_v25 = vpop.f32.mrf.mxu1 }
 0x112   : > { %v9014_v45 = vadd.f32 %v1118_v25, %v845_v27  ;;  %v1745_v26 = vor.u32 %v1744_v4, %v1743_v13 }
 0x113   : > { %v847_v28 = vpop.f32.mrf.mxu0  ;;  %v1120_v29 = vpop.f32.mrf.mxu1 }
 0x114   : > { %v9017_v32 = vadd.f32 %v1120_v29, %v847_v28 }
 0x115   : > { %v849_v37 = vpop.f32.mrf.mxu0  ;;  %v1122_v43 = vpop.f32.mrf.mxu1 }
 0x116   : > { %v9024_v54 = vadd.f32 %v1122_v43, %v849_v37  ;;  %v1310_v43 = vsel %vm1279_vm2, %v1307_v51, %v1309_v15  ;;  %v1311_v51 = vrot.slane %v8843_v14, 1 }
 0x117   : > { %v853_v49 = vpop.f32.mrf.mxu0  ;;  %v1126_v7 = vpop.f32.mrf.mxu1  ;;  %1562 = vmatmul.mubr.bf16.gmra.mxu0 %v1306_v42  ;;  %2002 = vmatmul.mubr.bf16.gmra.mxu1 %v1738_v34 }
 0x118   : > { %v9027_v52 = vadd.f32 %v1126_v7, %v853_v49  ;;  %1571 = vmatprep.mubr.bf16.mxu0 %v12136_v2  ;;  %2011 = vmatprep.mubr.bf16.mxu1 %v12136_v2  ;;  %v1746_v7 = vsel %vm1683_vm1, %v1741_v16, %v1745_v26 }
 0x119   : > { %v855_v39 = vpop.f32.mrf.mxu0  ;;  %v1128_v46 = vpop.f32.mrf.mxu1 }
 0x11a   : > { %v9031_v59 = vadd.f32 %v1128_v46, %v855_v39  ;;  %v1749_v39 = vrot.slane %v1747_v3, 1  ;;  %v1750_v46 = vrot.slane %v679_v19, 2 }
 0x11b   : > { %v857_v61 = vpop.f32.mrf.mxu0  ;;  %v1130_v24 = vpop.f32.mrf.mxu1 }
 0x11c   : > { %v9034_v0 = vadd.f32 %v1130_v24, %v857_v61  ;;  %v1751_v16 = vor.u32 %v1750_v46, %v1749_v39  ;;  %v2124_v46 = vrot.slane %v8516_v31, 2 }
 0x11d   : > { %v9041_v27 = vpop.f32.mrf.mxu0  ;;  %v9043_v25 = vpop.f32.mrf.mxu1 }
 0x11e   : > { %12172 = vst [vmem:[#allocation10_spill] sm:$0xff] %v9041_v27  ;;  %12173 = vst [vmem:[#allocation11_spill] sm:$0xff] %v9043_v25 }
 0x11f   : > { %v863_v28 = vpop.f32.mrf.mxu0  ;;  %v1136_v29 = vpop.f32.mrf.mxu1  ;;  %1572 = vmatmul.mubr.bf16.gmra.mxu0 %v1308_v62  ;;  %2012 = vmatmul.mubr.bf16.gmra.mxu1 %v1742_v57 }
 0x120   : > { %v9046_v42 = vadd.f32 %v1136_v29, %v863_v28  ;;  %1581 = vmatprep.mubr.bf16.mxu0 %v12136_v2  ;;  %2021 = vmatprep.mubr.bf16.mxu1 %v12136_v2 }
 0x121   : > { %v865_v10 = vpop.f32.mrf.mxu0  ;;  %v1138_v34 = vpop.f32.mrf.mxu1 }
 0x122   : > { %v9051_v38 = vadd.f32 %v1138_v34, %v865_v10  ;;  %v1312_v34 = vsel %vm1279_vm2, %v1309_v15, %v1311_v51 }
 0x123   : > { %v867_v22 = vpop.f32.mrf.mxu0  ;;  %v1140_v37 = vpop.f32.mrf.mxu1 }
 0x124   : > { %v9054_v49 = vadd.f32 %v1140_v37, %v867_v22  ;;  %v1752_v22 = vsel %vm1683_vm1, %v1745_v26, %v1751_v16 }
 0x125   : > { %v9059_v61 = vpop.f32.mrf.mxu0  ;;  %v9061_v24 = vpop.f32.mrf.mxu1 }
 0x126   : > { %12174 = vst [vmem:[#allocation12_spill] sm:$0xff] %v9059_v61  ;;  %12175 = vst [vmem:[#allocation13_spill] sm:$0xff] %v9061_v24 }
 0x127   : > { %v873_v62 = vpop.f32.mrf.mxu0  ;;  %v1146_v57 = vpop.f32.mrf.mxu1  ;;  %1582 = vmatmul.mubr.bf16.gmra.mxu0 %v1310_v43  ;;  %2022 = vmatmul.mubr.bf16.gmra.mxu1 %v1746_v7 }
 0x128   : > { %v9063_v13 = vadd.f32 %v1146_v57, %v873_v62  ;;  %1591 = vmatprep.mubr.bf16.mxu0 %v12136_v2  ;;  %2031 = vmatprep.mubr.bf16.mxu1 %v12136_v2  ;;  %v2125_v57 = vrot.slane %v8527_v35, 2  ;;  %v2127_v35 = vrot.slane %v8547_v47, 2  ;;  %v2129_v47 = vrot.slane %v8568_v58, 2 }
 0x129   : > { %v875_v4 = vpop.f32.mrf.mxu0  ;;  %v1148_v28 = vpop.f32.mrf.mxu1  ;;  %v2131_v58 = vrot.slane %v8601_v12, 2  ;;  %v2133_v12 = vrot.slane %v8644_v33, 2  ;;  %v2135_v33 = vrot.slane %v8693_v1, 2  ;;  %v2137_v1 = vrot.slane %v8724_v21, 2 }
 0x12a   : > { %v9068_v19 = vadd.f32 %v1148_v28, %v875_v4  ;;  %v2139_v21 = vrot.slane %v8737_v36, 2  ;;  %v2141_v36 = vrot.slane %v8750_v50, 2  ;;  %v2143_v50 = vrot.slane %v8765_v6, 2 }
 0x12b   : > { %v877_v29 = vpop.f32.mrf.mxu0  ;;  %v1150_v3 = vpop.f32.mrf.mxu1 }
 0x12c   : > { %v9070_v10 = vadd.f32 %v1150_v3, %v877_v29  ;;  %v2126_v29 = vsel %vm2123_vm3, %v2124_v46, %v2125_v57 }
 0x12d   : > { %v9074_v37 = vpop.f32.mrf.mxu0  ;;  %v9076_v43 = vpop.f32.mrf.mxu1 }
 0x12e   : > { %12176 = vst [vmem:[#allocation14_spill] sm:$0xff] %v9074_v37  ;;  %12177 = vst [vmem:[#allocation15_spill] sm:$0xff] %v9076_v43 }
 0x12f   : > { %v883_v7 = vpop.f32.mrf.mxu0  ;;  %v1156_v62 = vpop.f32.mrf.mxu1  ;;  %1592 = vmatmul.mubr.bf16.gmra.mxu0 %v1312_v34  ;;  %2032 = vmatmul.mubr.bf16.gmra.mxu1 %v1752_v22 }
 0x130   : > { %v9078_v39 = vadd.f32 %v1156_v62, %v883_v7  ;;  %2285 = vmatprep.mubr.bf16.mxu0 %v12136_v2 }
 0x131   : > { %v885_v4 = vpop.f32.mrf.mxu0  ;;  %v1158_v15 = vpop.f32.mrf.mxu1 }
 0x132   : > { %v9083_v26 = vadd.f32 %v1158_v15, %v885_v4 }
 0x133   : > { %v887_v51 = vpop.f32.mrf.mxu0  ;;  %v1160_v16 = vpop.f32.mrf.mxu1 }
 0x134   : > { %v9085_v28 = vadd.f32 %v1160_v16, %v887_v51 }
 0x135   : > { %v9088_v3 = vpop.f32.mrf.mxu0  ;;  %v9090_v34 = vpop.f32.mrf.mxu1 }
 0x136   : > { %12178 = vst [vmem:[#allocation16_spill] sm:$0xff] %v9088_v3  ;;  %12179 = vst [vmem:[#allocation17_spill] sm:$0xff] %v9090_v34  ;;  %v2128_v3 = vsel %vm2123_vm3, %v2125_v57, %v2127_v35 }
 0x137   : > { %v893_v22 = vpop.f32.mrf.mxu0  ;;  %v1166_v7 = vpop.f32.mrf.mxu1  ;;  %2286 = vmatmul.mubr.bf16.vlgmr.msra.gmra.mxu0 %v2126_v29 }
 0x138   : > { %v9092_v31 = vadd.f32 %v1166_v7, %v893_v22  ;;  %2295 = vmatprep.mubr.bf16.mxu0 %v12136_v2 }
 0x139   : > { %v895_v62 = vpop.f32.mrf.mxu0  ;;  %v1168_v4 = vpop.f32.mrf.mxu1 }
 0x13a   : > { %v9096_v15 = vadd.f32 %v1168_v4, %v895_v62 }
 0x13b   : > { %v897_v51 = vpop.f32.mrf.mxu0  ;;  %v1170_v16 = vpop.f32.mrf.mxu1 }
 0x13c   : > { %v9098_v46 = vadd.f32 %v1170_v16, %v897_v51 }
 0x13d   : > { %v9101_v34 = vpop.f32.mrf.mxu0  ;;  %v9103_v43 = vpop.f32.mrf.mxu1 }
 0x13e   : > { %12180 = vst [vmem:[#allocation18_spill] sm:$0xff] %v9101_v34  ;;  %12181 = vst [vmem:[#allocation19_spill] sm:$0xff] %v9103_v43  ;;  %v2130_v34 = vsel %vm2123_vm3, %v2127_v35, %v2129_v47 }
 0x13f   : > { %v903_v29 = vpop.f32.mrf.mxu0  ;;  %v1176_v22 = vpop.f32.mrf.mxu1  ;;  %2296 = vmatmul.mubr.bf16.gmra.mxu0 %v2128_v3 }
 0x140   : > { %v9105_v7 = vadd.f32 %v1176_v22, %v903_v29  ;;  %2305 = vmatprep.mubr.bf16.mxu0 %v12136_v2 }
 0x141   : > { %v905_v62 = vpop.f32.mrf.mxu0  ;;  %v1178_v4 = vpop.f32.mrf.mxu1 }
 0x142   : > { %v9109_v37 = vadd.f32 %v1178_v4, %v905_v62 }
 0x143   : > { %v907_v51 = vpop.f32.mrf.mxu0  ;;  %v1180_v16 = vpop.f32.mrf.mxu1 }
 0x144   : > { %v9111_v57 = vadd.f32 %v1180_v16, %v907_v51 }
 0x145   : > { %v9114_v43 = vpop.f32.mrf.mxu0  ;;  %v9116_v24 = vpop.f32.mrf.mxu1 }
 0x146   : > { %12182 = vst [vmem:[#allocation20_spill] sm:$0xff] %v9114_v43  ;;  %12183 = vst [vmem:[#allocation21_spill] sm:$0xff] %v9116_v24  ;;  %v2132_v43 = vsel %vm2123_vm3, %v2129_v47, %v2131_v58 }
 0x147   : > { %v913_v3 = vpop.f32.mrf.mxu0  ;;  %v1186_v29 = vpop.f32.mrf.mxu1  ;;  %2306 = vmatmul.mubr.bf16.gmra.mxu0 %v2130_v34 }
 0x148   : > { %v9118_v22 = vadd.f32 %v1186_v29, %v913_v3  ;;  %2315 = vmatprep.mubr.bf16.mxu0 %v12136_v2 }
 0x149   : > { %v915_v62 = vpop.f32.mrf.mxu0  ;;  %v1188_v4 = vpop.f32.mrf.mxu1 }
 0x14a   : > { %v9122_v61 = vadd.f32 %v1188_v4, %v915_v62 }
 0x14b   : > { %v917_v51 = vpop.f32.mrf.mxu0  ;;  %v1190_v16 = vpop.f32.mrf.mxu1 }
 0x14c   : > { %v9124_v35 = vadd.f32 %v1190_v16, %v917_v51 }
 0x14d   : > { %v9127_v24 = vpop.f32.mrf.mxu0  ;;  %v9129_v25 = vpop.f32.mrf.mxu1 }
 0x14e   : > { %12184 = vst [vmem:[#allocation22_spill] sm:$0xff] %v9124_v35  ;;  %12185 = vst [vmem:[#allocation23_spill] sm:$0xff] %v9127_v24  ;;  %v2134_v24 = vsel %vm2123_vm3, %v2131_v58, %v2133_v12 }
 0x14f   : > { %12186 = vst [vmem:[#allocation24_spill] sm:$0xff] %v9129_v25  ;;  %v923_v34 = vpop.f32.mrf.mxu0  ;;  %v1196_v3 = vpop.f32.mrf.mxu1  ;;  %2316 = vmatmul.mubr.bf16.gmra.mxu0 %v2132_v43 }
 0x150   : > { %v9131_v29 = vadd.f32 %v1196_v3, %v923_v34  ;;  %2325 = vmatprep.mubr.bf16.mxu0 %v12136_v2 }
 0x151   : > { %v925_v62 = vpop.f32.mrf.mxu0  ;;  %v1198_v4 = vpop.f32.mrf.mxu1 }
 0x152   : > { %v9135_v27 = vadd.f32 %v1198_v4, %v925_v62 }
 0x153   : > { %v927_v51 = vpop.f32.mrf.mxu0  ;;  %v1200_v16 = vpop.f32.mrf.mxu1 }
 0x154   : > { %12187 = vst [vmem:[#allocation25_spill] sm:$0xff] %v9135_v27  ;;  %v9137_v47 = vadd.f32 %v1200_v16, %v927_v51 }
 0x155   : > { %v9140_v25 = vpop.f32.mrf.mxu0  ;;  %v9142_v35 = vpop.f32.mrf.mxu1 }
 0x156   : > { %12188 = vst [vmem:[#allocation26_spill] sm:$0xff] %v9137_v47  ;;  %12189 = vst [vmem:[#allocation27_spill] sm:$0xff] %v9140_v25  ;;  %v2136_v25 = vsel %vm2123_vm3, %v2133_v12, %v2135_v33 }
 0x157   : > { %12190 = vst [vmem:[#allocation28_spill] sm:$0xff] %v9142_v35  ;;  %v933_v43 = vpop.f32.mrf.mxu0  ;;  %v1206_v34 = vpop.f32.mrf.mxu1  ;;  %2326 = vmatmul.mubr.bf16.gmra.mxu0 %v2134_v24 }
 0x158   : > { %v9144_v3 = vadd.f32 %v1206_v34, %v933_v43  ;;  %2335 = vmatprep.mubr.bf16.mxu0 %v12136_v2 }
 0x159   : > { %v935_v62 = vpop.f32.mrf.mxu0  ;;  %v1208_v4 = vpop.f32.mrf.mxu1 }
 0x15a   : > { %v9148_v27 = vadd.f32 %v1208_v4, %v935_v62 }
 0x15b   : > { %v937_v51 = vpop.f32.mrf.mxu0  ;;  %v1210_v16 = vpop.f32.mrf.mxu1 }
 0x15c   : > { %12191 = vst [vmem:[#allocation29_spill] sm:$0xff] %v9148_v27  ;;  %v9150_v58 = vadd.f32 %v1210_v16, %v937_v51 }
 0x15d   : > { %v9153_v35 = vpop.f32.mrf.mxu0  ;;  %v9155_v47 = vpop.f32.mrf.mxu1 }
 0x15e   : > { %12192 = vst [vmem:[#allocation30_spill] sm:$0xff] %v9150_v58  ;;  %12193 = vst [vmem:[#allocation31_spill] sm:$0xff] %v9153_v35  ;;  %v2138_v35 = vsel %vm2123_vm3, %v2135_v33, %v2137_v1 }
 0x15f   : > { %12194 = vst [vmem:[#allocation32_spill] sm:$0xff] %v9155_v47  ;;  %v943_v24 = vpop.f32.mrf.mxu0  ;;  %v1216_v43 = vpop.f32.mrf.mxu1  ;;  %2336 = vmatmul.mubr.bf16.gmra.mxu0 %v2136_v25 }
 0x160   : > { %v9157_v34 = vadd.f32 %v1216_v43, %v943_v24  ;;  %2345 = vmatprep.mubr.bf16.mxu0 %v12136_v2 }
 0x161   : > { %v945_v62 = vpop.f32.mrf.mxu0  ;;  %v1218_v4 = vpop.f32.mrf.mxu1 }
 0x162   : > { %v9161_v27 = vadd.f32 %v1218_v4, %v945_v62 }
 0x163   : > { %v947_v51 = vpop.f32.mrf.mxu0  ;;  %v1220_v16 = vpop.f32.mrf.mxu1 }
 0x164   : > { %12195 = vst [vmem:[#allocation33_spill] sm:$0xff] %v9161_v27  ;;  %v9163_v12 = vadd.f32 %v1220_v16, %v947_v51 }
 0x165   : > { %v9166_v47 = vpop.f32.mrf.mxu0  ;;  %v9168_v58 = vpop.f32.mrf.mxu1 }
 0x166   : > { %12196 = vst [vmem:[#allocation34_spill] sm:$0xff] %v9163_v12  ;;  %12197 = vst [vmem:[#allocation35_spill] sm:$0xff] %v9166_v47  ;;  %v2140_v47 = vsel %vm2123_vm3, %v2137_v1, %v2139_v21 }
 0x167   : > { %12198 = vst [vmem:[#allocation36_spill] sm:$0xff] %v9168_v58  ;;  %v953_v25 = vpop.f32.mrf.mxu0  ;;  %v1226_v24 = vpop.f32.mrf.mxu1  ;;  %2346 = vmatmul.mubr.bf16.gmra.mxu0 %v2138_v35 }
 0x168   : > { %v9170_v43 = vadd.f32 %v1226_v24, %v953_v25  ;;  %2355 = vmatprep.mubr.bf16.mxu0 %v12136_v2 }
 0x169   : > { %v955_v62 = vpop.f32.mrf.mxu0  ;;  %v1228_v4 = vpop.f32.mrf.mxu1 }
 0x16a   : > { %v9174_v27 = vadd.f32 %v1228_v4, %v955_v62 }
 0x16b   : > { %v957_v51 = vpop.f32.mrf.mxu0  ;;  %v1230_v16 = vpop.f32.mrf.mxu1 }
 0x16c   : > { %12199 = vst [vmem:[#allocation37_spill] sm:$0xff] %v9174_v27  ;;  %v9176_v33 = vadd.f32 %v1230_v16, %v957_v51 }
 0x16d   : > { %v9179_v58 = vpop.f32.mrf.mxu0  ;;  %v9181_v12 = vpop.f32.mrf.mxu1 }
 0x16e   : > { %12200 = vst [vmem:[#allocation38_spill] sm:$0xff] %v9176_v33  ;;  %12201 = vst [vmem:[#allocation39_spill] sm:$0xff] %v9179_v58  ;;  %v2142_v58 = vsel %vm2123_vm3, %v2139_v21, %v2141_v36 }
 0x16f   : > { %12202 = vst [vmem:[#allocation40_spill] sm:$0xff] %v9181_v12  ;;  %v963_v35 = vpop.f32.mrf.mxu0  ;;  %v1236_v25 = vpop.f32.mrf.mxu1  ;;  %2356 = vmatmul.mubr.bf16.gmra.mxu0 %v2140_v47 }
 0x170   : > { %v9183_v24 = vadd.f32 %v1236_v25, %v963_v35  ;;  %2365 = vmatprep.mubr.bf16.mxu0 %v12136_v2 }
 0x171   : > { %v965_v62 = vpop.f32.mrf.mxu0  ;;  %v1238_v4 = vpop.f32.mrf.mxu1 }
 0x172   : > { %v9187_v27 = vadd.f32 %v1238_v4, %v965_v62 }
 0x173   : > { %v967_v51 = vpop.f32.mrf.mxu0  ;;  %v1240_v16 = vpop.f32.mrf.mxu1 }
 0x174   : > { %12203 = vst [vmem:[#allocation41_spill] sm:$0xff] %v9187_v27  ;;  %v9189_v1 = vadd.f32 %v1240_v16, %v967_v51 }
 0x175   : > { %v9192_v12 = vpop.f32.mrf.mxu0  ;;  %v9194_v33 = vpop.f32.mrf.mxu1 }
 0x176   : > { %12204 = vst [vmem:[#allocation42_spill] sm:$0xff] %v9189_v1  ;;  %12205 = vst [vmem:[#allocation43_spill] sm:$0xff] %v9192_v12 }
 0x177   : > { %12206 = vst [vmem:[#allocation44_spill] sm:$0xff] %v9194_v33  ;;  %v1443_v47 = vpop.f32.mrf.mxu0  ;;  %2366 = vmatmul.mubr.bf16.gmra.mxu0 %v2142_v58  ;;  %v1883_v35 = vpop.f32.mrf.mxu1  ;;  %v2144_v58 = vsel %vm2123_vm3, %v2141_v36, %v2143_v50 }
 0x178   : > { %v1602_v25 = vadd.f32 %v1443_v47, %v8957_v48  ;;  %2375 = vmatprep.mubr.bf16.mxu0 %v12136_v2 }
 0x179   : > { %v1445_v62 = vpop.f32.mrf.mxu0  ;;  %v1885_v4 = vpop.f32.mrf.mxu1 }
 0x17a   : > { %v1603_v51 = vadd.f32 %v1445_v62, %v8962_v55  ;;  %v9200_v16 = vadd.f32 %v1883_v35, %v1602_v25  ;;  %v12208_v25 = vmov 0  }
 0x17b   : > { %v1447_v21 = vpop.f32.mrf.mxu0  ;;  %v1887_v1 = vpop.f32.mrf.mxu1 }
 0x17c   : > { %v1604_v12 = vadd.f32 %v1447_v21, %v8964_v60  ;;  %v9203_v33 = vadd.f32 %v1885_v4, %v1603_v51  ;;  %v2145_v60 = vrot.slane %v8771_v9, 2 }
 0x17d   : > { %v1449_v27 = vpop.f32.mrf.mxu0  ;;  %v9206_v48 = vpop.f32.mrf.mxu1 }
 0x17e   : > { %v9209_v47 = vadd.f32 %v1449_v27, %v8971_v8  ;;  %v9211_v6 = vadd.f32 %v1887_v1, %v1604_v12  ;;  %v2146_v1 = vsel %vm2123_vm3, %v2143_v50, %v2145_v60 }
 0x17f   : > { %v1453_v2 = vpop.f32.mrf.mxu0  ;;  %2376 = vmatmul.mubr.bf16.gmra.mxu0 %v2144_v58  ;;  %v1893_v55 = vpop.f32.mrf.mxu1 }
 0x180   : > { %12207 = vst [vmem:[#allocation45_spill] sm:$0xff] %v9211_v6  ;;  %v1606_v35 = vadd.f32 %v1453_v2, %v8975_v18  ;;  %2385 = vmatprep.mubr.bf16.mxu0 %v12208_v25 }
 0x181   : > { %v1455_v62 = vpop.f32.mrf.mxu0  ;;  %v1895_v4 = vpop.f32.mrf.mxu1 }
 0x182   : > { %v1607_v36 = vadd.f32 %v1455_v62, %v8979_v20  ;;  %v9217_v51 = vadd.f32 %v1893_v55, %v1606_v35 }
 0x183   : > { %v1457_v21 = vpop.f32.mrf.mxu0  ;;  %v1897_v8 = vpop.f32.mrf.mxu1 }
 0x184   : > { %v1608_v27 = vadd.f32 %v1457_v21, %v8982_v5  ;;  %v9220_v12 = vadd.f32 %v1895_v4, %v1607_v36  ;;  %v2147_v5 = vrot.slane %v8781_v23, 2 }
 0x185   : > { %v1459_v58 = vpop.f32.mrf.mxu0  ;;  %v9223_v2 = vpop.f32.mrf.mxu1 }
 0x186   : > { %v9226_v18 = vadd.f32 %v1459_v58, %v8990_v40  ;;  %v9228_v9 = vadd.f32 %v1897_v8, %v1608_v27  ;;  %v2148_v27 = vsel %vm2123_vm3, %v2145_v60, %v2147_v5 }
 0x187   : > { %v1463_v6 = vpop.f32.mrf.mxu0  ;;  %2386 = vmatmul.mubr.bf16.gmra.mxu0 %v2146_v1  ;;  %v1903_v20 = vpop.f32.mrf.mxu1 }
 0x188   : > { %v1610_v55 = vadd.f32 %v1463_v6, %v8993_v44  ;;  %2395 = vmatprep.mubr.bf16.mxu0 %v12208_v25 }
 0x189   : > { %v1465_v35 = vpop.f32.mrf.mxu0  ;;  %v1905_v62 = vpop.f32.mrf.mxu1 }
 0x18a   : > { %v1611_v50 = vadd.f32 %v1465_v35, %v8997_v30  ;;  %v9234_v4 = vadd.f32 %v1903_v20, %v1610_v55 }
 0x18b   : > { %v1467_v36 = vpop.f32.mrf.mxu0  ;;  %v1907_v40 = vpop.f32.mrf.mxu1 }
 0x18c   : > { %v1612_v21 = vadd.f32 %v1467_v36, %v9000_v56  ;;  %v9237_v8 = vadd.f32 %v1905_v62, %v1611_v50  ;;  %v2149_v56 = vrot.slane %v8799_v41, 2 }
 0x18d   : > { %v1469_v1 = vpop.f32.mrf.mxu0  ;;  %v9240_v44 = vpop.f32.mrf.mxu1 }
 0x18e   : > { %v9243_v6 = vadd.f32 %v1469_v1, %v9007_v11  ;;  %v9245_v23 = vadd.f32 %v1907_v40, %v1612_v21  ;;  %v2150_v36 = vsel %vm2123_vm3, %v2147_v5, %v2149_v56 }
 0x18f   : > { %v1473_v58 = vpop.f32.mrf.mxu0  ;;  %2396 = vmatmul.mubr.bf16.gmra.mxu0 %v2148_v27  ;;  %v9247_v30 = vpop.f32.mrf.mxu1 }
 0x190   : > { %v9250_v20 = vadd.f32 %v1473_v58, %v9010_v17  ;;  %2405 = vmatprep.mubr.bf16.mxu0 %v12208_v25 }
 0x191   : > { %v1475_v60 = vpop.f32.mrf.mxu0  ;;  %v9254_v55 = vpop.f32.mrf.mxu1 }
 0x192   : > { %v9257_v35 = vadd.f32 %v1475_v60, %v9014_v45 }
 0x193   : > { %v1477_v11 = vpop.f32.mrf.mxu0  ;;  %v9259_v62 = vpop.f32.mrf.mxu1 }
 0x194   : > { %v9262_v50 = vadd.f32 %v1477_v11, %v9017_v32  ;;  %v2151_v32 = vrot.slane %v8816_v53, 2 }
 0x195   : > { %v1479_v17 = vpop.f32.mrf.mxu0  ;;  %v9265_v40 = vpop.f32.mrf.mxu1 }
 0x196   : > { %v9268_v21 = vadd.f32 %v1479_v17, %v9024_v54 }
 0x197   : > { %v1483_v41 = vpop.f32.mrf.mxu0  ;;  %2406 = vmatmul.mubr.bf16.gmra.mxu0 %v2150_v36  ;;  %v9270_v27 = vpop.f32.mrf.mxu1  ;;  %v2152_v36 = vsel %vm2123_vm3, %v2149_v56, %v2151_v32 }
 0x198   : > { %v9273_v45 = vadd.f32 %v1483_v41, %v9027_v52  ;;  %2415 = vmatprep.mubr.bf16.mxu0 %v12208_v25 }
 0x199   : > { %v1485_v1 = vpop.f32.mrf.mxu0  ;;  %v9277_v58 = vpop.f32.mrf.mxu1 }
 0x19a   : > { %12209 = vst [vmem:[#allocation46_spill] sm:$0xff] %v9277_v58  ;;  %v9280_v5 = vadd.f32 %v1485_v1, %v9031_v59  ;;  %v2153_v59 = vrot.slane %v8830_v63, 2 }
 0x19b   : > { %v1487_v60 = vpop.f32.mrf.mxu0  ;;  %v9282_v54 = vpop.f32.mrf.mxu1 }
 0x19c   : > { %12210 = vst [vmem:[#allocation47_spill] sm:$0xff] %v9282_v54  ;;  %v9285_v11 = vadd.f32 %v1487_v60, %v9034_v0 }
 0x19d   : > { %v9288_v52 = vpop.f32.mrf.mxu0  ;;  %v9290_v17 = vpop.f32.mrf.mxu1 }
 0x19f   : > { %v1493_v41 = vpop.f32.mrf.mxu0  ;;  %2416 = vmatmul.mubr.bf16.gmra.mxu0 %v2152_v36  ;;  %v9292_v53 = vpop.f32.mrf.mxu1 }
 0x1a0   : > { %12211 = vst [vmem:[#allocation48_spill] sm:$0xff] %v9292_v53  ;;  %v9295_v58 = vadd.f32 %v1493_v41, %v9046_v42  ;;  %2425 = vmatprep.mubr.bf16.mxu0 %v12208_v25  ;;  %v2154_v53 = vsel %vm2123_vm3, %v2151_v32, %v2153_v59 }
 0x1a1   : > { %v1495_v1 = vpop.f32.mrf.mxu0  ;;  %v9299_v0 = vpop.f32.mrf.mxu1 }
 0x1a2   : > { %12212 = vst [vmem:[#allocation49_spill] sm:$0xff] %v9295_v58  ;;  %12213 = vst [vmem:[#allocation50_spill] sm:$0xff] %v9299_v0  ;;  %v9302_v56 = vadd.f32 %v1495_v1, %v9051_v38  ;;  %v2155_v38 = vrot.slane %v8843_v14, 2 }
 0x1a3   : > { %v1497_v60 = vpop.f32.mrf.mxu0  ;;  %v9304_v54 = vpop.f32.mrf.mxu1 }
 0x1a4   : > { %12214 = vst [vmem:[#allocation51_spill] sm:$0xff] %v9304_v54  ;;  %v9307_v36 = vadd.f32 %v1497_v60, %v9054_v49 }
 0x1a5   : > { %v9310_v42 = vpop.f32.mrf.mxu0  ;;  %v9312_v41 = vpop.f32.mrf.mxu1 }
 0x1a7   : > { %v1503_v58 = vpop.f32.mrf.mxu0  ;;  %2426 = vmatmul.mubr.bf16.gmra.mxu0 %v2154_v53  ;;  %v9314_v63 = vpop.f32.mrf.mxu1 }
 0x1a8   : > { %12215 = vst [vmem:[#allocation52_spill] sm:$0xff] %v9314_v63  ;;  %v9317_v0 = vadd.f32 %v1503_v58, %v9063_v13  ;;  %2435 = vmatprep.mubr.bf16.mxu0 %v12208_v25  ;;  %v2156_v63 = vsel %vm2123_vm3, %v2153_v59, %v2155_v38 }
 0x1a9   : > { %v1505_v1 = vpop.f32.mrf.mxu0  ;;  %v9321_v49 = vpop.f32.mrf.mxu1 }
 0x1aa   : > { %12216 = vst [vmem:[#allocation53_spill] sm:$0xff] %v9321_v49  ;;  %v9324_v32 = vadd.f32 %v1505_v1, %v9068_v19 }
 0x1ab   : > { %v1507_v60 = vpop.f32.mrf.mxu0  ;;  %v9326_v54 = vpop.f32.mrf.mxu1 }
 0x1ac   : > { %12217 = vst [vmem:[#allocation54_spill] sm:$0xff] %v9326_v54  ;;  %v9329_v53 = vadd.f32 %v1507_v60, %v9070_v10 }
 0x1ad   : > { %v9332_v13 = vpop.f32.mrf.mxu0  ;;  %v9334_v58 = vpop.f32.mrf.mxu1 }
 0x1ae   : > { %12218 = vst [vmem:[#allocation55_spill] sm:$0xff] %v9334_v58 }
 0x1af   : > { %v1513_v25 = vpop.f32.mrf.mxu0  ;;  %2436 = vmatmul.mubr.bf16.gmra.mxu0 %v2156_v63  ;;  %v9336_v14 = vpop.f32.mrf.mxu1 }
 0x1b0   : > { %12219 = vst [vmem:[#allocation56_spill] sm:$0xff] %v9336_v14  ;;  %v9339_v49 = vadd.f32 %v1513_v25, %v9078_v39 }
 0x1b1   : > { %v1515_v19 = vpop.f32.mrf.mxu0  ;;  %v9341_v1 = vpop.f32.mrf.mxu1 }
 0x1b2   : > { %12220 = vst [vmem:[#allocation57_spill] sm:$0xff] %v9341_v1  ;;  %v9344_v54 = vadd.f32 %v1515_v19, %v9083_v26 }
 0x1b3   : > { %v1517_v10 = vpop.f32.mrf.mxu0  ;;  %v9346_v60 = vpop.f32.mrf.mxu1 }
 0x1b4   : > { %12221 = vst [vmem:[#allocation58_spill] sm:$0xff] %v9344_v54  ;;  %12222 = vst [vmem:[#allocation59_spill] sm:$0xff] %v9346_v60  ;;  %v9349_v59 = vadd.f32 %v1517_v10, %v9085_v28 }
 0x1b5   : > { %v9351_v38 = vpop.f32.mrf.mxu0  ;;  %v9353_v63 = vpop.f32.mrf.mxu1 }
 0x1b6   : > { %12223 = vst [vmem:[#allocation60_spill] sm:$0xff] %v9349_v59  ;;  %12224 = vst [vmem:[#allocation61_spill] sm:$0xff] %v9353_v63 }
 0x1b7   : > { %v1523_v14 = vpop.f32.mrf.mxu0  ;;  %v9355_v58 = vpop.f32.mrf.mxu1 }
 0x1b8   : > { %12225 = vst [vmem:[#allocation62_spill] sm:$0xff] %v9355_v58  ;;  %v9358_v39 = vadd.f32 %v1523_v14, %v9092_v31 }
 0x1b9   : > { %v1525_v25 = vpop.f32.mrf.mxu0  ;;  %v9360_v1 = vpop.f32.mrf.mxu1 }
 0x1ba   : > { %12226 = vst [vmem:[#allocation63_spill] sm:$0xff] %v9358_v39  ;;  %12227 = vst [vmem:[#allocation64_spill] sm:$0xff] %v9360_v1  ;;  %v9363_v26 = vadd.f32 %v1525_v25, %v9096_v15 }
 0x1bb   : > { %v1527_v19 = vpop.f32.mrf.mxu0  ;;  %v1967_v60 = vpop.f32.mrf.mxu1 }
 0x1bc   : > { %12228 = vst [vmem:[#allocation65_spill] sm:$0xff] %v9363_v26  ;;  %v1636_v28 = vadd.f32 %v1527_v19, %v9098_v46 }
 0x1bd   : > { %v9366_v10 = vpop.f32.mrf.mxu0  ;;  %v9368_v59 = vpop.f32.mrf.mxu1 }
 0x1be   : > { %12229 = vst [vmem:[#allocation66_spill] sm:$0xff] %v9366_v10  ;;  %12230 = vst [vmem:[#allocation67_spill] sm:$0xff] %v9368_v59  ;;  %v9370_v63 = vadd.f32 %v1967_v60, %v1636_v28 }
 0x1bf   : > { %v1533_v58 = vpop.f32.mrf.mxu0  ;;  %v1973_v54 = vpop.f32.mrf.mxu1 }
 0x1c0   : > { %12231 = vst [vmem:[#allocation68_spill] sm:$0xff] %v9370_v63  ;;  %v1638_v31 = vadd.f32 %v1533_v58, %v9105_v7 }
 0x1c1   : > { %v1535_v14 = vpop.f32.mrf.mxu0  ;;  %v1975_v39 = vpop.f32.mrf.mxu1 }
 0x1c2   : > { %v1639_v1 = vadd.f32 %v1535_v14, %v9109_v37  ;;  %v9374_v15 = vadd.f32 %v1973_v54, %v1638_v31 }
 0x1c3   : > { %v1537_v25 = vpop.f32.mrf.mxu0  ;;  %v1977_v26 = vpop.f32.mrf.mxu1 }
 0x1c4   : > { %v1640_v46 = vadd.f32 %v1537_v25, %v9111_v57  ;;  %v9377_v19 = vadd.f32 %v1975_v39, %v1639_v1  ;;  %v12235_v1 = vld [vmem:[#allocation22_spill] sm:$0xff] }
 0x1c5   : > { %v9379_v10 = vpop.f32.mrf.mxu0  ;;  %v9381_v60 = vpop.f32.mrf.mxu1 }
 0x1c6   : > { %12232 = vst [vmem:[#allocation69_spill] sm:$0xff] %v9377_v19  ;;  %12233 = vst [vmem:[#allocation70_spill] sm:$0xff] %v9381_v60  ;;  %v9383_v28 = vadd.f32 %v1977_v26, %v1640_v46 }
 0x1c7   : > { %v1543_v63 = vpop.f32.mrf.mxu0  ;;  %v1983_v7 = vpop.f32.mrf.mxu1 }
 0x1c8   : > { %12234 = vst [vmem:[#allocation71_spill] sm:$0xff] %v9383_v28  ;;  %v1642_v58 = vadd.f32 %v1543_v63, %v9118_v22  ;;  %v12237_v63 = vld [vmem:[#allocation25_spill] sm:$0xff] }
 0x1c9   : > { %v1545_v59 = vpop.f32.mrf.mxu0  ;;  %v1985_v37 = vpop.f32.mrf.mxu1 }
 0x1ca   : > { %v1643_v54 = vadd.f32 %v1545_v59, %v9122_v61  ;;  %v9387_v31 = vadd.f32 %v1983_v7, %v1642_v58  ;;  %v12239_v59 = vld [vmem:[#allocation26_spill] sm:$0xff] }
 0x1cb   : > { %v1547_v14 = vpop.f32.mrf.mxu0  ;;  %v1987_v57 = vpop.f32.mrf.mxu1 }
 0x1cc   : > { %v1644_v39 = vadd.f32 %v1547_v14, %v12235_v1  ;;  %v9390_v25 = vadd.f32 %v1985_v37, %v1643_v54 }
 0x1cd   : > { %v9392_v19 = vpop.f32.mrf.mxu0 }
 0x1ce   : > { %v9394_v26 = vadd.f32 %v1987_v57, %v1644_v39  ;;  %v12243_v57 = vld [vmem:[#allocation29_spill] sm:$0xff]  ;;  %v12245_v39 = vld [vmem:[#allocation30_spill] sm:$0xff] }
 0x1cf   : > { %v1553_v46 = vpop.f32.mrf.mxu0 }
 0x1d0   : > { %12236 = vst [vmem:[#allocation22_spill] sm:$0xff] %v9394_v26  ;;  %v9397_v28 = vadd.f32 %v1553_v46, %v9131_v29 }
 0x1d1   : > { %v1555_v22 = vpop.f32.mrf.mxu0 }
 0x1d2   : > { %v9400_v60 = vadd.f32 %v1555_v22, %v12237_v63 }
 0x1d3   : > { %v1557_v61 = vpop.f32.mrf.mxu0 }
 0x1d4   : > { %12238 = vst [vmem:[#allocation25_spill] sm:$0xff] %v9400_v60  ;;  %v9403_v7 = vadd.f32 %v1557_v61, %v12239_v59 }
 0x1d5   : > { %v9405_v58 = vpop.f32.mrf.mxu0 }
 0x1d6   : > { %12240 = vst [vmem:[#allocation26_spill] sm:$0xff] %v9403_v7  ;;  %12241 = vst [vmem:[#allocation72_spill] sm:$0xff] %v9405_v58  ;;  %v12249_v7 = vld [vmem:[#allocation33_spill] sm:$0xff] }
 0x1d7   : > { %v1563_v37 = vpop.f32.mrf.mxu0 }
 0x1d8   : > { %v9408_v54 = vadd.f32 %v1563_v37, %v9144_v3  ;;  %v12251_v37 = vld [vmem:[#allocation34_spill] sm:$0xff] }
 0x1d9   : > { %v1565_v14 = vpop.f32.mrf.mxu0 }
 0x1da   : > { %12242 = vst [vmem:[#allocation73_spill] sm:$0xff] %v9408_v54  ;;  %v9411_v1 = vadd.f32 %v1565_v14, %v12243_v57 }
 0x1db   : > { %v1567_v29 = vpop.f32.mrf.mxu0 }
 0x1dc   : > { %12244 = vst [vmem:[#allocation29_spill] sm:$0xff] %v9411_v1  ;;  %v9414_v46 = vadd.f32 %v1567_v29, %v12245_v39 }
 0x1dd   : > { %v9416_v22 = vpop.f32.mrf.mxu0 }
 0x1de   : > { %12246 = vst [vmem:[#allocation30_spill] sm:$0xff] %v9414_v46  ;;  %12247 = vst [vmem:[#allocation74_spill] sm:$0xff] %v9416_v22  ;;  %v12255_v46 = vld [vmem:[#allocation37_spill] sm:$0xff] }
 0x1df   : > { %v1573_v63 = vpop.f32.mrf.mxu0 }
 0x1e0   : > { %v9419_v61 = vadd.f32 %v1573_v63, %v9157_v34  ;;  %v2512_v34 = vlaneseq }
 0x1e1   : > { %v1575_v59 = vpop.f32.mrf.mxu0 }
 0x1e2   : > { %12248 = vst [vmem:[#allocation75_spill] sm:$0xff] %v9419_v61  ;;  %v9422_v58 = vadd.f32 %v1575_v59, %v12249_v7  ;;  %v12257_v61 = vld [vmem:[#allocation38_spill] sm:$0xff]  ;;  %v9440_v59 = vshrl.u32 %v2512_v34, 7 }
 0x1e3   : > { %v1577_v3 = vpop.f32.mrf.mxu0 }
 0x1e4   : > { %12250 = vst [vmem:[#allocation33_spill] sm:$0xff] %v9422_v58  ;;  %v9425_v54 = vadd.f32 %v1577_v3, %v12251_v37  ;;  %12260 = vst [vmem:[#allocation79_spill] sm:$0xff] %v9440_v59  ;;  %v12140_v34 = vsub.s32 1, %v9440_v59 }
 0x1e5   : > { %v9427_v14 = vpop.f32.mrf.mxu0 }
 0x1e6   : > { %12252 = vst [vmem:[#allocation34_spill] sm:$0xff] %v9425_v54  ;;  %12253 = vst [vmem:[#allocation76_spill] sm:$0xff] %v9427_v14 }
 0x1e7   : > { %v1583_v57 = vpop.f32.mrf.mxu0 }
 0x1e8   : > { %v9430_v29 = vadd.f32 %v1583_v57, %v9170_v43  ;;  %v12262_v43 = vld [vmem:[#allocation41_spill] sm:$0xff] }
 0x1e9   : > { %v1585_v39 = vpop.f32.mrf.mxu0 }
 0x1ea   : > { %12254 = vst [vmem:[#allocation77_spill] sm:$0xff] %v9430_v29  ;;  %v9433_v1 = vadd.f32 %v1585_v39, %v12255_v46  ;;  %v12139_v46 = vsub.s32 0, %v9440_v59 }
 0x1eb   : > { %v1587_v63 = vpop.f32.mrf.mxu0 }
 0x1ec   : > { %12256 = vst [vmem:[#allocation37_spill] sm:$0xff] %v9433_v1  ;;  %v9436_v22 = vadd.f32 %v1587_v63, %v12257_v61  ;;  %v2510_v61 = vld [vmem:[%s12118_s2] sm:$0x3]  ;;  %v12264_v63 = vld [vmem:[#allocation42_spill] sm:$0xff] }
 0x1ed   : > { %v9438_v7 = vpop.f32.mrf.mxu0 }
 0x1ee   : > { %12258 = vst [vmem:[#allocation38_spill] sm:$0xff] %v9436_v22  ;;  %12259 = vst [vmem:[#allocation78_spill] sm:$0xff] %v9438_v7 }
 0x1ef   : > { %v1593_v3 = vpop.f32.mrf.mxu0 }
 0x1f0   : > { %v9443_v37 = vadd.f32 %v1593_v3, %v9183_v24  ;;  %v9460_v24 = vrot.slane %v2510_v61, %v12139_v46  ;;  %v12267_v46 = vld [vmem:[#allocation45_spill] sm:$0xff] }
 0x1f1   : > { %v1595_v54 = vpop.f32.mrf.mxu0 }
 0x1f2   : > { %12261 = vst [vmem:[#allocation80_spill] sm:$0xff] %v9443_v37  ;;  %v9446_v57 = vadd.f32 %v1595_v54, %v12262_v43  ;;  %v9465_v43 = vrot.slane %v2510_v61, %v12140_v34 }
 0x1f3   : > { %v1597_v39 = vpop.f32.mrf.mxu0 }
 0x1f4   : > { %12263 = vst [vmem:[#allocation41_spill] sm:$0xff] %v9446_v57  ;;  %v9453_v22 = vadd.f32 %v1597_v39, %v12264_v63 }
 0x1f5   : > { %v9456_v7 = vpop.f32.mrf.mxu0 }
 0x1f6   : > { %12265 = vst [vmem:[#allocation42_spill] sm:$0xff] %v9453_v22  ;;  %12266 = vst [vmem:[#allocation81_spill] sm:$0xff] %v9456_v7  ;;  %v2045_v22 = vadd.f32 %v9206_v48, %v9209_v47 }
 0x1f7   : > { %v2287_v54 = vpop.f32.mrf.mxu0 }
 0x1f8   : > { %v2446_v3 = vadd.f32 %v2287_v54, %v9200_v16 }
 0x1f9   : > { %v2289_v57 = vpop.f32.mrf.mxu0 }
 0x1fa   : > { %v2522_v37 = vadd.f32 %v9460_v24, %v2446_v3  ;;  %v2447_v39 = vadd.f32 %v2289_v57, %v9203_v33 }
 0x1fb   : > { %v2291_v63 = vpop.f32.mrf.mxu0 }
 0x1fc   : > { %v2523_v7 = vadd.f32 %v9465_v43, %v2447_v39  ;;  %v2448_v1 = vadd.f32 %v2291_v63, %v12267_v46  ;;  %v2586_v29 = vmax.f32 %v2522_v37, 0.0  ;;  %v2049_v37 = vadd.f32 %v9223_v2, %v9226_v18 }
 0x1fd   : > { %v2293_v58 = vpop.f32.mrf.mxu0 }
 0x1fe   : > { %v2524_v16 = vadd.f32 %v9460_v24, %v2448_v1  ;;  %v2449_v54 = vadd.f32 %v2293_v58, %v2045_v22  ;;  %v2587_v61 = vmax.f32 %v2523_v7, 0.0  ;;  %v2715_v57 = vrot.slane %v2586_v29, 1 }
 0x1ff   : > { %v2297_v34 = vpop.f32.mrf.mxu0 }
 0x200   : > { %v2588_v59 = vmax.f32 %v2524_v16, 0.0  ;;  %v2525_v3 = vadd.f32 %v9465_v43, %v2449_v54  ;;  %v2450_v33 = vadd.f32 %v2297_v34, %v9217_v51  ;;  %v2718_v1 = vrot.slane %v2587_v61, 1 }
 0x201   : > { %v2299_v14 = vpop.f32.mrf.mxu0 }
 0x202   : > { %v2716_v26 = vrot.slane %v2588_v59, 1  ;;  %v2589_v48 = vmax.f32 %v2525_v3, 0.0  ;;  %v2526_v47 = vadd.f32 %v9460_v24, %v2450_v33  ;;  %v2451_v46 = vadd.f32 %v2299_v14, %v9220_v12 }
 0x203   : > { %v2301_v58 = vpop.f32.mrf.mxu0 }
 0x204   : > { %v2717_v22 = vsel %vm1279_vm2, %v2715_v57, %v2716_v26  ;;  %v2719_v7 = vrot.slane %v2589_v48, 1  ;;  %v2590_v39 = vmax.f32 %v2526_v47, 0.0  ;;  %v2527_v63 = vadd.f32 %v9465_v43, %v2451_v46 }
 0x205   : > { %v2452_v51 = vadd.f32 %v2301_v58, %v9228_v9  ;;  %v2303_v34 = vpop.f32.mrf.mxu0  ;;  %v9483_v16 = vmax.f32 %v2586_v29, %v2717_v22  ;;  %v12270_v58 = vld [vmem:[#allocation10_spill] sm:$0xff]  ;;  %v12271_v29 = vld [vmem:[#allocation11_spill] sm:$0xff] }
 0x206   : > { %v2721_v54 = vrot.slane %v2590_v39, 1  ;;  %v2591_v3 = vmax.f32 %v2527_v63, 0.0  ;;  %v2453_v33 = vadd.f32 %v2303_v34, %v2049_v37  ;;  %v2720_v12 = vsel %vm1279_vm2, %v2718_v1, %v2719_v7 }
 0x207   : > { %12268 = vst [vmem:[#allocation45_spill] sm:$0xff] %v9483_v16  ;;  %v2528_v2 = vadd.f32 %v9460_v24, %v2452_v51  ;;  %v2307_v18 = vpop.f32.mrf.mxu0  ;;  %v9487_v14 = vmax.f32 %v2587_v61, %v2720_v12  ;;  %v1133_v22 = vadd.f32 %v12271_v29, %v12270_v58 }
 0x208   : > { %v2722_v57 = vsel %vm1279_vm2, %v2716_v26, %v2721_v54  ;;  %v2723_v47 = vrot.slane %v2591_v3, 1  ;;  %v2529_v46 = vadd.f32 %v9465_v43, %v2453_v33  ;;  %v2454_v9 = vadd.f32 %v2307_v18, %v9234_v4 }
 0x209   : > { %12269 = vst [vmem:[#allocation82_spill] sm:$0xff] %v9487_v14  ;;  %v2592_v60 = vmax.f32 %v2528_v2, 0.0  ;;  %v2309_v63 = vpop.f32.mrf.mxu0  ;;  %v9494_v37 = vmax.f32 %v2588_v59, %v2722_v57  ;;  %v2053_v26 = vadd.f32 %v9240_v44, %v9243_v6  ;;  %v2054_v44 = vadd.f32 %v9247_v30, %v9250_v20  ;;  %v12307_v14 = vld [vmem:[#allocation62_spill] sm:$0xff] }
 0x20a   : > { %v2593_v1 = vmax.f32 %v2529_v46, 0.0  ;;  %v2530_v51 = vadd.f32 %v9460_v24, %v2454_v9  ;;  %v2455_v61 = vadd.f32 %v2309_v63, %v9237_v8  ;;  %v2724_v34 = vsel %vm1279_vm2, %v2719_v7, %v2723_v47  ;;  %v12274_v9 = vld [vmem:[#allocation12_spill] sm:$0xff]  ;;  %v12275_v8 = vld [vmem:[#allocation13_spill] sm:$0xff] }
 0x20b   : > { %12272 = vst [vmem:[#allocation10_spill] sm:$0xff] %v9494_v37  ;;  %v2725_v33 = vrot.slane %v2592_v60, 1  ;;  %v2311_v12 = vpop.f32.mrf.mxu0  ;;  %v9501_v4 = vmax.f32 %v2589_v48, %v2724_v34  ;;  %v9509_v58 = vadd.f32 %v12275_v8, %v12274_v9  ;;  %v2056_v34 = vadd.f32 %v9259_v62, %v9262_v50 }
 0x20c   : > { %v2727_v18 = vrot.slane %v2593_v1, 1  ;;  %v2594_v59 = vmax.f32 %v2530_v51, 0.0  ;;  %v2531_v57 = vadd.f32 %v9465_v43, %v2455_v61  ;;  %v2456_v46 = vadd.f32 %v2311_v12, %v9245_v23 }
 0x20d   : > { %12273 = vst [vmem:[#allocation11_spill] sm:$0xff] %v9501_v4  ;;  %v2726_v6 = vsel %vm1279_vm2, %v2721_v54, %v2725_v33  ;;  %v2313_v48 = vpop.f32.mrf.mxu0  ;;  %v2055_v23 = vadd.f32 %v9254_v55, %v9257_v35 }
 0x20e   : > { %v2729_v29 = vrot.slane %v2594_v59, 1  ;;  %v2595_v63 = vmax.f32 %v2531_v57, 0.0  ;;  %v2532_v51 = vadd.f32 %v9460_v24, %v2456_v46  ;;  %v2457_v61 = vadd.f32 %v2313_v48, %v2053_v26 }
 0x20f   : > { %v2317_v12 = vpop.f32.mrf.mxu0  ;;  %v2728_v30 = vsel %vm1279_vm2, %v2723_v47, %v2727_v18  ;;  %v9522_v20 = vmax.f32 %v2590_v39, %v2726_v6  ;;  %v2057_v26 = vadd.f32 %v9265_v40, %v9268_v21 }
 0x210   : > { %v2730_v54 = vsel %vm1279_vm2, %v2725_v33, %v2729_v29  ;;  %v2731_v9 = vrot.slane %v2595_v63, 1  ;;  %v2596_v8 = vmax.f32 %v2532_v51, 0.0  ;;  %v2533_v57 = vadd.f32 %v9465_v43, %v2457_v61 }
 0x211   : > { %12276 = vst [vmem:[#allocation12_spill] sm:$0xff] %v9522_v20  ;;  %v2458_v46 = vadd.f32 %v2317_v12, %v2054_v44  ;;  %v2319_v48 = vpop.f32.mrf.mxu0  ;;  %v9528_v55 = vmax.f32 %v2591_v3, %v2728_v30  ;;  %v9530_v35 = vmax.f32 %v2592_v60, %v2730_v54  ;;  %v2058_v33 = vadd.f32 %v9270_v27, %v9273_v45 }
 0x212   : > { %v2733_v62 = vrot.slane %v2596_v8, 1  ;;  %v2597_v50 = vmax.f32 %v2533_v57, 0.0  ;;  %v2459_v47 = vadd.f32 %v2319_v48, %v2055_v23  ;;  %v2732_v39 = vsel %vm1279_vm2, %v2727_v18, %v2731_v9 }
 0x213   : > { %12277 = vst [vmem:[#allocation13_spill] sm:$0xff] %v9528_v55  ;;  %12278 = vst [vmem:[#allocation83_spill] sm:$0xff] %v9530_v35  ;;  %v2534_v6 = vadd.f32 %v9460_v24, %v2458_v46  ;;  %v2321_v51 = vpop.f32.mrf.mxu0  ;;  %v9536_v61 = vmax.f32 %v2593_v1, %v2732_v39  ;;  %v1621_v23 = vadd.f32 %v9288_v52, %v1133_v22  ;;  %v12282_v46 = vld [vmem:[#allocation15_spill] sm:$0xff] }
 0x214   : > { %v2734_v21 = vsel %vm1279_vm2, %v2729_v29, %v2733_v62  ;;  %v2735_v60 = vrot.slane %v2597_v50, 1  ;;  %v2535_v3 = vadd.f32 %v9465_v43, %v2459_v47  ;;  %v2460_v44 = vadd.f32 %v2321_v51, %v2056_v34  ;;  %v12281_v29 = vld [vmem:[#allocation14_spill] sm:$0xff] }
 0x215   : > { %12279 = vst [vmem:[#allocation84_spill] sm:$0xff] %v9536_v61  ;;  %v2598_v18 = vmax.f32 %v2534_v6, 0.0  ;;  %v2323_v12 = vpop.f32.mrf.mxu0  ;;  %v9543_v30 = vmax.f32 %v2594_v59, %v2734_v21  ;;  %v9551_v48 = vadd.f32 %v12282_v46, %v12281_v29  ;;  %v12283_v34 = vld [vmem:[#allocation46_spill] sm:$0xff]  ;;  %v2061_v29 = vadd.f32 %v9290_v17, %v1621_v23 }
 0x216   : > { %v2599_v45 = vmax.f32 %v2535_v3, 0.0  ;;  %v2536_v1 = vadd.f32 %v9460_v24, %v2460_v44  ;;  %v2461_v54 = vadd.f32 %v2323_v12, %v2057_v26  ;;  %v2736_v57 = vsel %vm1279_vm2, %v2731_v9, %v2735_v60  ;;  %v12285_v3 = vld [vmem:[#allocation16_spill] sm:$0xff]  ;;  %v12286_v26 = vld [vmem:[#allocation17_spill] sm:$0xff]  ;;  %v12287_v9 = vld [vmem:[#allocation47_spill] sm:$0xff] }
 0x217   : > { %12280 = vst [vmem:[#allocation85_spill] sm:$0xff] %v9543_v30  ;;  %v2059_v52 = vadd.f32 %v12283_v34, %v9280_v5  ;;  %v2737_v22 = vrot.slane %v2598_v18, 1  ;;  %v2327_v47 = vpop.f32.mrf.mxu0  ;;  %v9555_v59 = vmax.f32 %v2595_v63, %v2736_v57  ;;  %v9560_v44 = vadd.f32 %v12286_v26, %v12285_v3  ;;  %v12318_v30 = vld [vmem:[#allocation70_spill] sm:$0xff] }
 0x218   : > { %v2739_v39 = vrot.slane %v2599_v45, 1  ;;  %v2600_v6 = vmax.f32 %v2536_v1, 0.0  ;;  %v2537_v51 = vadd.f32 %v9465_v43, %v2461_v54  ;;  %v2462_v21 = vadd.f32 %v2327_v47, %v2058_v33  ;;  %v12288_v54 = vld [vmem:[#allocation49_spill] sm:$0xff]  ;;  %v12289_v33 = vld [vmem:[#allocation48_spill] sm:$0xff] }
 0x219   : > { %12284 = vst [vmem:[#allocation14_spill] sm:$0xff] %v9555_v59  ;;  %v2060_v12 = vadd.f32 %v12287_v9, %v9285_v11  ;;  %v2738_v5 = vsel %vm1279_vm2, %v2733_v62, %v2737_v22  ;;  %v2329_v46 = vpop.f32.mrf.mxu0  ;;  %v2062_v47 = vadd.f32 %v12289_v33, %v12288_v54  ;;  %v1625_v3 = vadd.f32 %v9310_v42, %v9509_v58 }
 0x21a   : > { %v2741_v34 = vrot.slane %v2600_v6, 1  ;;  %v2601_v63 = vmax.f32 %v2537_v51, 0.0  ;;  %v9567_v57 = vadd.f32 %v9460_v24, %v2462_v21  ;;  %v2463_v1 = vadd.f32 %v2329_v46, %v2059_v52 }
 0x21b   : > { %v2331_v26 = vpop.f32.mrf.mxu0  ;;  %v2740_v11 = vsel %vm1279_vm2, %v2735_v60, %v2739_v39  ;;  %v9574_v9 = vmax.f32 %v2596_v8, %v2738_v5  ;;  %v12292_v5 = vld [vmem:[#allocation50_spill] sm:$0xff] }
 0x21c   : > { %v2742_v17 = vsel %vm1279_vm2, %v2737_v22, %v2741_v34  ;;  %v2743_v62 = vrot.slane %v2601_v63, 1  ;;  %v2602_v23 = vmax.f32 %v9567_v57, 0.0  ;;  %v9579_v51 = vadd.f32 %v9465_v43, %v2463_v1 }
 0x21d   : > { %12290 = vst [vmem:[#allocation15_spill] sm:$0xff] %v9574_v9  ;;  %v2464_v52 = vadd.f32 %v2331_v26, %v2060_v12  ;;  %v2333_v21 = vpop.f32.mrf.mxu0  ;;  %v9581_v46 = vmax.f32 %v2598_v18, %v2742_v17  ;;  %v9583_v54 = vmax.f32 %v2597_v50, %v2740_v11  ;;  %v2063_v57 = vadd.f32 %v12292_v5, %v9302_v56  ;;  %v9596_v18 = vpop.f32.mrf.mxu1 }
 0x21e   : > { %v2745_v58 = vrot.slane %v2602_v23, 1  ;;  %v2603_v8 = vmax.f32 %v9579_v51, 0.0  ;;  %v2465_v60 = vadd.f32 %v2333_v21, %v2061_v29  ;;  %v2744_v22 = vsel %vm1279_vm2, %v2739_v39, %v2743_v62  ;;  %v12293_v39 = vld [vmem:[#allocation51_spill] sm:$0xff] }
 0x21f   : > { %12291 = vst [vmem:[#allocation46_spill] sm:$0xff] %v9583_v54  ;;  %v2540_v1 = vadd.f32 %v9460_v24, %v2464_v52  ;;  %v2337_v12 = vpop.f32.mrf.mxu0  ;;  %v9592_v33 = vmax.f32 %v2599_v45, %v2744_v22  ;;  %v2064_v51 = vadd.f32 %v12293_v39, %v9307_v36  ;;  %v2065_v56 = vadd.f32 %v9312_v41, %v1625_v3  ;;  %v9614_v41 = vpop.f32.mrf.mxu1 }
 0x220   : > { %v2746_v26 = vsel %vm1279_vm2, %v2741_v34, %v2745_v58  ;;  %v2747_v11 = vrot.slane %v2603_v8, 1  ;;  %v2541_v29 = vadd.f32 %v9465_v43, %v2465_v60  ;;  %v2466_v17 = vadd.f32 %v2337_v12, %v2062_v47  ;;  %v7983_v34 = vld [vmem:[%s12119_s3 + $0x4] ss:$8 sps:$4 sm:$0xff]  }
 0x221   : > { %v2604_v52 = vmax.f32 %v2540_v1, 0.0  ;;  %v2339_v21 = vpop.f32.mrf.mxu0  ;;  %v9603_v45 = vmax.f32 %v2600_v6, %v2746_v26  ;;  %7191 = vmatprep.mubr.msk.bf16.mxu1 %vm3096_vm4, %v7983_v34 }
 0x222   : > { %v2605_v22 = vmax.f32 %v2541_v29, 0.0  ;;  %v2542_v5 = vadd.f32 %v9460_v24, %v2466_v17  ;;  %v2467_v2 = vadd.f32 %v2339_v21, %v2063_v57  ;;  %v2748_v7 = vsel %vm1279_vm2, %v2743_v62, %v2747_v11  ;;  %v12294_v62 = vld [vmem:[#allocation52_spill] sm:$0xff]  ;;  %v12302_v17 = vld [vmem:[#allocation19_spill] sm:$0xff] }
 0x223   : > { %v2749_v47 = vrot.slane %v2604_v52, 1  ;;  %v2341_v60 = vpop.f32.mrf.mxu0  ;;  %v9610_v12 = vmax.f32 %v2601_v63, %v2748_v7  ;;  %v2066_v26 = vadd.f32 %v12294_v62, %v9317_v0  ;;  %v1629_v7 = vadd.f32 %v9332_v13, %v9551_v48  ;;  %v12296_v0 = vld [vmem:[#allocation54_spill] sm:$0xff] }
 0x224   : > { %v2751_v6 = vrot.slane %v2605_v22, 1  ;;  %v2606_v3 = vmax.f32 %v2542_v5, 0.0  ;;  %v2543_v57 = vadd.f32 %v9465_v43, %v2467_v2  ;;  %v2468_v1 = vadd.f32 %v2341_v60, %v2064_v51  ;;  %v12295_v51 = vld [vmem:[#allocation53_spill] sm:$0xff] }
 0x225   : > { %v2750_v63 = vsel %vm1279_vm2, %v2745_v58, %v2749_v47  ;;  %v2343_v29 = vpop.f32.mrf.mxu0  ;;  %v2067_v34 = vadd.f32 %v12295_v51, %v9324_v32  ;;  %v2068_v60 = vadd.f32 %v12296_v0, %v9329_v53  ;;  %v9635_v58 = vpop.f32.mrf.mxu1 }
 0x226   : > { %v2753_v39 = vrot.slane %v2606_v3, 1  ;;  %v2607_v21 = vmax.f32 %v2543_v57, 0.0  ;;  %v9626_v5 = vadd.f32 %v9460_v24, %v2468_v1  ;;  %v2469_v2 = vadd.f32 %v2343_v29, %v2065_v56  ;;  %v12297_v29 = vld [vmem:[#allocation55_spill] sm:$0xff] }
 0x227   : > { %v2347_v62 = vpop.f32.mrf.mxu0  ;;  %v2752_v13 = vsel %vm1279_vm2, %v2747_v11, %v2751_v6  ;;  %v9633_v48 = vmax.f32 %v2602_v23, %v2750_v63  ;;  %v2069_v27 = vadd.f32 %v12297_v29, %v1629_v7 }
 0x228   : > { %v2754_v40 = vsel %vm1279_vm2, %v2749_v47, %v2753_v39  ;;  %v2755_v57 = vrot.slane %v2607_v21, 1  ;;  %v2608_v1 = vmax.f32 %v9626_v5, 0.0  ;;  %v2545_v56 = vadd.f32 %v9465_v43, %v2469_v2  ;;  %v12298_v47 = vld [vmem:[#allocation56_spill] sm:$0xff] }
 0x229   : > { %v2470_v32 = vadd.f32 %v2347_v62, %v2066_v26  ;;  %v2349_v51 = vpop.f32.mrf.mxu0  ;;  %v9641_v42 = vmax.f32 %v2603_v8, %v2752_v13  ;;  %v9643_v53 = vmax.f32 %v2604_v52, %v2754_v40  ;;  %v2070_v50 = vadd.f32 %v12298_v47, %v9339_v49  ;;  %v9653_v8 = vpop.f32.mrf.mxu1  ;;  %v12305_v26 = vld [vmem:[#allocation61_spill] sm:$0xff] }
 0x22a   : > { %v2757_v11 = vrot.slane %v2608_v1, 1  ;;  %v2609_v23 = vmax.f32 %v2545_v56, 0.0  ;;  %v2471_v63 = vadd.f32 %v2349_v51, %v2067_v34  ;;  %v2756_v0 = vsel %vm1279_vm2, %v2751_v6, %v2755_v57  ;;  %v12299_v51 = vld [vmem:[#allocation58_spill] sm:$0xff] }
 0x22b   : > { %v2546_v5 = vadd.f32 %v9460_v24, %v2470_v32  ;;  %v2351_v36 = vpop.f32.mrf.mxu0  ;;  %v9649_v2 = vmax.f32 %v2605_v22, %v2756_v0  ;;  %v1633_v6 = vadd.f32 %v9351_v38, %v9560_v44  ;;  %v12300_v0 = vld [vmem:[#allocation57_spill] sm:$0xff]  ;;  %v9669_v38 = vpop.f32.mrf.mxu1 }
 0x22c   : > { %v2758_v40 = vsel %vm1279_vm2, %v2753_v39, %v2757_v11  ;;  %v2759_v52 = vrot.slane %v2609_v23, 1  ;;  %v2547_v7 = vadd.f32 %v9465_v43, %v2471_v63  ;;  %v2472_v34 = vadd.f32 %v2351_v36, %v2068_v60 }
 0x22d   : > { %v2610_v49 = vmax.f32 %v2546_v5, 0.0  ;;  %v2353_v62 = vpop.f32.mrf.mxu0  ;;  %v9659_v13 = vmax.f32 %v2606_v3, %v2758_v40  ;;  %v2071_v63 = vadd.f32 %v12300_v0, %v12299_v51  ;;  %v2073_v22 = vadd.f32 %v12305_v26, %v1633_v6  ;;  %v9686_v26 = vpop.f32.mrf.mxu1 }
 0x22e   : > { %v2611_v56 = vmax.f32 %v2547_v7, 0.0  ;;  %v2548_v29 = vadd.f32 %v9460_v24, %v2472_v34  ;;  %v2473_v32 = vadd.f32 %v2353_v62, %v2069_v27  ;;  %v2760_v39 = vsel %vm1279_vm2, %v2755_v57, %v2759_v52  ;;  %v12301_v7 = vld [vmem:[#allocation18_spill] sm:$0xff]  ;;  %v12303_v27 = vld [vmem:[#allocation60_spill] sm:$0xff]  ;;  %v12304_v62 = vld [vmem:[#allocation59_spill] sm:$0xff] }
 0x22f   : > { %v2761_v36 = vrot.slane %v2610_v49, 1  ;;  %v2357_v60 = vpop.f32.mrf.mxu0  ;;  %v9667_v47 = vmax.f32 %v2607_v21, %v2760_v39  ;;  %v1173_v34 = vadd.f32 %v12302_v17, %v12301_v7  ;;  %v2072_v57 = vadd.f32 %v12304_v62, %v12303_v27 }
 0x230   : > { %v2763_v44 = vrot.slane %v2611_v56, 1  ;;  %v2612_v3 = vmax.f32 %v2548_v29, 0.0  ;;  %v2549_v5 = vadd.f32 %v9465_v43, %v2473_v32  ;;  %v2474_v40 = vadd.f32 %v2357_v60, %v2070_v50  ;;  %v12306_v29 = vld [vmem:[#allocation63_spill] sm:$0xff]  ;;  %v12308_v50 = vld [vmem:[#allocation65_spill] sm:$0xff]  ;;  %v12309_v60 = vld [vmem:[#allocation64_spill] sm:$0xff] }
 0x231   : > { %v2762_v51 = vsel %vm1279_vm2, %v2757_v11, %v2761_v36  ;;  %v2359_v0 = vpop.f32.mrf.mxu0  ;;  %v2074_v32 = vadd.f32 %v12307_v14, %v12306_v29  ;;  %v2075_v4 = vadd.f32 %v12309_v60, %v12308_v50  ;;  %v12310_v60 = vld [vmem:[#allocation66_spill] sm:$0xff] }
 0x232   : > { %v2765_v21 = vrot.slane %v2612_v3, 1  ;;  %v2613_v39 = vmax.f32 %v2549_v5, 0.0  ;;  %v2550_v16 = vadd.f32 %v9460_v24, %v2474_v40  ;;  %v2475_v37 = vadd.f32 %v2359_v0, %v2071_v63 }
 0x233   : > { %v2361_v17 = vpop.f32.mrf.mxu0  ;;  %v2764_v7 = vsel %vm1279_vm2, %v2759_v52, %v2763_v44  ;;  %v9684_v27 = vmax.f32 %v2608_v1, %v2762_v51 }
 0x234   : > { %v2766_v11 = vsel %vm1279_vm2, %v2761_v36, %v2765_v21  ;;  %v2767_v6 = vrot.slane %v2613_v39, 1  ;;  %v2614_v5 = vmax.f32 %v2550_v16, 0.0  ;;  %v2551_v40 = vadd.f32 %v9465_v43, %v2475_v37 }
 0x235   : > { %v2476_v63 = vadd.f32 %v2361_v17, %v2072_v57  ;;  %v2363_v62 = vpop.f32.mrf.mxu0  ;;  %v9690_v0 = vmax.f32 %v2610_v49, %v2766_v11  ;;  %v9692_v14 = vmax.f32 %v2609_v23, %v2764_v7  ;;  %v1637_v36 = vadd.f32 %v12310_v60, %v1173_v34  ;;  %v9703_v23 = vpop.f32.mrf.mxu1 }
 0x236   : > { %v2769_v52 = vrot.slane %v2614_v5, 1  ;;  %v2615_v1 = vmax.f32 %v2551_v40, 0.0  ;;  %v2477_v51 = vadd.f32 %v2363_v62, %v2073_v22  ;;  %v2768_v50 = vsel %vm1279_vm2, %v2763_v44, %v2767_v6 }
 0x237   : > { %v2552_v16 = vadd.f32 %v9460_v24, %v2476_v63  ;;  %v2367_v20 = vpop.f32.mrf.mxu0  ;;  %v9699_v37 = vmax.f32 %v2611_v56, %v2768_v50  ;;  %v12311_v50 = vld [vmem:[#allocation67_spill] sm:$0xff] }
 0x238   : > { %v2770_v57 = vsel %vm1279_vm2, %v2765_v21, %v2769_v52  ;;  %v2771_v17 = vrot.slane %v2615_v1, 1  ;;  %v2553_v7 = vadd.f32 %v9465_v43, %v2477_v51  ;;  %v2478_v22 = vadd.f32 %v2367_v20, %v2074_v32  ;;  %v9716_v20 = vpop.f32.mrf.mxu1 }
 0x239   : > { %v2616_v11 = vmax.f32 %v2552_v16, 0.0  ;;  %v2369_v44 = vpop.f32.mrf.mxu0  ;;  %v9707_v40 = vmax.f32 %v2612_v3, %v2770_v57  ;;  %v2077_v60 = vadd.f32 %v12311_v50, %v1637_v36  ;;  %v12312_v16 = vld [vmem:[#allocation68_spill] sm:$0xff] }
 0x23a   : > { %v2617_v34 = vmax.f32 %v2553_v7, 0.0  ;;  %v2554_v63 = vadd.f32 %v9460_v24, %v2478_v22  ;;  %v2479_v56 = vadd.f32 %v2369_v44, %v2075_v4  ;;  %v2772_v62 = vsel %vm1279_vm2, %v2767_v6, %v2771_v17  ;;  %v12313_v4 = vld [vmem:[#allocation20_spill] sm:$0xff]  ;;  %v12314_v7 = vld [vmem:[#allocation21_spill] sm:$0xff]  ;;  %v9730_v55 = vpop.f32.mrf.mxu1 }
 0x23b   : > { %v2773_v29 = vrot.slane %v2616_v11, 1  ;;  %v2371_v49 = vpop.f32.mrf.mxu0  ;;  %v9712_v35 = vmax.f32 %v2613_v39, %v2772_v62  ;;  %v1183_v6 = vadd.f32 %v12314_v7, %v12313_v4 }
 0x23c   : > { %v2775_v32 = vrot.slane %v2617_v34, 1  ;;  %v2618_v3 = vmax.f32 %v2554_v63, 0.0  ;;  %v2555_v51 = vadd.f32 %v9465_v43, %v2479_v56  ;;  %v2480_v57 = vadd.f32 %v2371_v49, %v12312_v16 }
 0x23d   : > { %v2774_v36 = vsel %vm1279_vm2, %v2769_v52, %v2773_v29  ;;  %v2373_v22 = vpop.f32.mrf.mxu0  ;;  %v2982_v39 = vpack.c.bf16 %v9712_v35, %v9699_v37  ;;  %v1641_v63 = vadd.f32 %v9379_v10, %v1183_v6  ;;  %v12315_v37 = vld [vmem:[#allocation23_spill] sm:$0xff] }
 0x23e   : > { %v2777_v44 = vrot.slane %v2618_v3, 1  ;;  %v2619_v62 = vmax.f32 %v2555_v51, 0.0  ;;  %v9726_v50 = vadd.f32 %v9460_v24, %v2480_v57  ;;  %v2481_v21 = vadd.f32 %v2373_v22, %v2077_v60  ;;  %v12316_v51 = vld [vmem:[#allocation24_spill] sm:$0xff] }
 0x23f   : > { %v2377_v56 = vpop.f32.mrf.mxu0  ;;  %v2776_v49 = vsel %vm1279_vm2, %v2771_v17, %v2775_v32  ;;  %v2933_v16 = vmax.f32 %v2614_v5, %v2774_v36  ;;  %v1193_v57 = vadd.f32 %v12316_v51, %v12315_v37  ;;  %v12317_v36 = vld [vmem:[#allocation69_spill] sm:$0xff]  ;;  %v9745_v37 = vpop.f32.mrf.mxu1 }
 0x240   : > { %v2778_v52 = vsel %vm1279_vm2, %v2773_v29, %v2777_v44  ;;  %v2779_v4 = vrot.slane %v2619_v62, 1  ;;  %v2620_v7 = vmax.f32 %v9726_v50, 0.0  ;;  %v9735_v35 = vadd.f32 %v9465_v43, %v2481_v21 }
 0x241   : > { %v2482_v60 = vadd.f32 %v2377_v56, %v9374_v15  ;;  %v2379_v10 = vpop.f32.mrf.mxu0  ;;  %v2934_v6 = vmax.f32 %v2615_v1, %v2776_v49  ;;  %v2935_v22 = vmax.f32 %v2616_v11, %v2778_v52  ;;  %v2081_v50 = vadd.f32 %v12318_v30, %v1641_v63  ;;  %v12319_v56 = vld [vmem:[#allocation71_spill] sm:$0xff] }
 0x242   : > { %v2781_v17 = vrot.slane %v2620_v7, 1  ;;  %v2621_v5 = vmax.f32 %v9735_v35, 0.0  ;;  %v2483_v61 = vadd.f32 %v2379_v10, %v12317_v36  ;;  %v2780_v29 = vsel %vm1279_vm2, %v2775_v32, %v2779_v4 }
 0x243   : > { %v2558_v21 = vadd.f32 %v9460_v24, %v2482_v60  ;;  %v2381_v9 = vpop.f32.mrf.mxu0  ;;  %v2936_v59 = vmax.f32 %v2617_v34, %v2780_v29  ;;  %v2983_v54 = vpack.c.bf16 %v2935_v22, %v2933_v16  ;;  %v1645_v52 = vadd.f32 %v9392_v19, %v1193_v57  ;;  %v12322_v29 = vld [vmem:[#allocation31_spill] sm:$0xff] }
 0x244   : > { %v2782_v15 = vsel %vm1279_vm2, %v2777_v44, %v2781_v17  ;;  %v2783_v1 = vrot.slane %v2621_v5, 1  ;;  %v2559_v11 = vadd.f32 %v9465_v43, %v2483_v61  ;;  %v2484_v49 = vadd.f32 %v2381_v9, %v12319_v56  ;;  %v9757_v61 = vpop.f32.mrf.mxu1 }
 0x245   : > { %v2622_v35 = vmax.f32 %v2558_v21, 0.0  ;;  %v2383_v32 = vpop.f32.mrf.mxu0  ;;  %v2984_v51 = vpack.c.bf16 %v2936_v59, %v2934_v6  ;;  %v9751_v30 = vmax.f32 %v2618_v3, %v2782_v15  ;;  %v12320_v3 = vld [vmem:[#allocation27_spill] sm:$0xff]  ;;  %v12321_v6 = vld [vmem:[#allocation28_spill] sm:$0xff]  ;;  %v2085_v21 = vadd.f32 %v9596_v18, %v1645_v52 }
 0x246   : > { %v2623_v63 = vmax.f32 %v2559_v11, 0.0  ;;  %v2560_v34 = vadd.f32 %v9460_v24, %v2484_v49  ;;  %v2485_v16 = vadd.f32 %v2383_v32, %v2081_v50  ;;  %v2784_v60 = vsel %vm1279_vm2, %v2779_v4, %v2783_v1  ;;  %v12323_v50 = vld [vmem:[#allocation32_spill] sm:$0xff]  ;;  %v12324_v32 = vld [vmem:[#allocation25_spill] sm:$0xff] }
 0x247   : > { %v2785_v10 = vrot.slane %v2622_v35, 1  ;;  %v2387_v44 = vpop.f32.mrf.mxu0  ;;  %3133 = vmatprep.subr.bf16.mxu1 %v2984_v51  ;;  %v9755_v22 = vmax.f32 %v2619_v62, %v2784_v60  ;;  %v1203_v36 = vadd.f32 %v12321_v6, %v12320_v3  ;;  %v9765_v4 = vadd.f32 %v12323_v50, %v12322_v29 }
 0x248   : > { %v2787_v9 = vrot.slane %v2623_v63, 1  ;;  %v2624_v19 = vmax.f32 %v2560_v34, 0.0  ;;  %v2561_v57 = vadd.f32 %v9465_v43, %v2485_v16  ;;  %v2486_v59 = vadd.f32 %v2387_v44, %v9387_v31  ;;  %3134 = vmatpush1.bf16.msra.mxu1 %v2983_v54 }
 0x249   : > { %v2786_v62 = vsel %vm1279_vm2, %v2781_v17, %v2785_v10  ;;  %v2389_v15 = vpop.f32.mrf.mxu0  ;;  %3135 = vmatprep.subr.bf16.mxu1 %v2982_v39  ;;  %v2086_v54 = vadd.f32 %v9614_v41, %v9397_v28  ;;  %v2087_v51 = vadd.f32 %v9635_v58, %v12324_v32  ;;  %v9780_v17 = vpop.f32.mrf.mxu1  ;;  %v12325_v28 = vpack.c.bf16 %v9707_v40, %v9690_v0  ;;  %v12326_v41 = vld [vmem:[#allocation22_spill] sm:$0xff]  ;;  %v12328_v40 = vld [vmem:[#allocation72_spill] sm:$0xff] }
 0x24a   : > { %v2789_v11 = vrot.slane %v2624_v19, 1  ;;  %v2625_v56 = vmax.f32 %v2561_v57, 0.0  ;;  %v9770_v49 = vadd.f32 %v9460_v24, %v2486_v59  ;;  %v2487_v31 = vadd.f32 %v2389_v15, %v9390_v25 }
 0x24b   : > { %v2391_v34 = vpop.f32.mrf.mxu0  ;;  %v2788_v18 = vsel %vm1279_vm2, %v2783_v1, %v2787_v9  ;;  %v9778_v52 = vmax.f32 %v2620_v7, %v2786_v62  ;;  %v12327_v7 = vpack.c.bf16 %v9692_v14, %v9667_v47  ;;  %v1649_v29 = vadd.f32 %v12328_v40, %v1203_v36  ;;  %v12330_v36 = vld [vmem:[#allocation35_spill] sm:$0xff] }
 0x24c   : > { %v2790_v39 = vsel %vm1279_vm2, %v2785_v10, %v2789_v11  ;;  %v2791_v16 = vrot.slane %v2625_v56, 1  ;;  %v2626_v60 = vmax.f32 %v9770_v49, 0.0  ;;  %v9785_v25 = vadd.f32 %v9465_v43, %v2487_v31  ;;  %3136 = vmatpush1.bf16.msra.mxu1 %v12325_v28  ;;  %v12331_v31 = vld [vmem:[#allocation36_spill] sm:$0xff] }
 0x24d   : > { %v2488_v58 = vadd.f32 %v2391_v34, %v12326_v41  ;;  %v2393_v44 = vpop.f32.mrf.mxu0  ;;  %3137 = vmatprep.subr.bf16.mxu1 %v12327_v7  ;;  %v9794_v1 = vmax.f32 %v2622_v35, %v2790_v39  ;;  %v9796_v10 = vmax.f32 %v2621_v5, %v2788_v18  ;;  %v9808_v5 = vpop.f32.mrf.mxu1  ;;  %v9817_v32 = vadd.f32 %v12331_v31, %v12330_v36 }
 0x24e   : > { %v2793_v59 = vrot.slane %v2626_v60, 1  ;;  %v2627_v3 = vmax.f32 %v9785_v25, 0.0  ;;  %v2489_v6 = vadd.f32 %v2393_v44, %v2085_v21  ;;  %v2792_v0 = vsel %vm1279_vm2, %v2787_v9, %v2791_v16 }
 0x24f   : > { %v2564_v50 = vadd.f32 %v9460_v24, %v2488_v58  ;;  %v2397_v62 = vpop.f32.mrf.mxu0  ;;  %v9804_v47 = vmax.f32 %v2623_v63, %v2792_v0  ;;  %v12329_v9 = vpack.c.bf16 %v9684_v27, %v9659_v13  ;;  %v12332_v63 = vld [vmem:[#allocation26_spill] sm:$0xff]  ;;  %v2089_v41 = vadd.f32 %v9669_v38, %v1649_v29 }
 0x250   : > { %v2794_v35 = vsel %vm1279_vm2, %v2789_v11, %v2793_v59  ;;  %v2795_v15 = vrot.slane %v2627_v3, 1  ;;  %v2565_v49 = vadd.f32 %v9465_v43, %v2489_v6  ;;  %v2490_v21 = vadd.f32 %v2397_v62, %v2086_v54  ;;  %v9833_v6 = vpop.f32.mrf.mxu1 }
 0x251   : > { %3138 = vmatpush1.bf16.msra.mxu1 %v12329_v9  ;;  %v2088_v34 = vadd.f32 %v9653_v8, %v12332_v63  ;;  %v2628_v18 = vmax.f32 %v2564_v50, 0.0  ;;  %v2399_v39 = vpop.f32.mrf.mxu0  ;;  %v12333_v11 = vpack.c.bf16 %v9649_v2, %v9641_v42  ;;  %v9824_v25 = vmax.f32 %v2624_v19, %v2794_v35 }
 0x252   : > { %v2629_v54 = vmax.f32 %v2565_v49, 0.0  ;;  %v2566_v28 = vadd.f32 %v9460_v24, %v2490_v21  ;;  %v2491_v13 = vadd.f32 %v2399_v39, %v2087_v51  ;;  %v2796_v27 = vsel %vm1279_vm2, %v2791_v16, %v2795_v15  ;;  %v12335_v16 = vld [vmem:[#allocation73_spill] sm:$0xff] }
 0x253   : > { %3139 = vmatprep.subr.bf16.mxu1 %v12333_v11  ;;  %v2797_v58 = vrot.slane %v2628_v18, 1  ;;  %v2401_v44 = vpop.f32.mrf.mxu0  ;;  %v9829_v7 = vmax.f32 %v2625_v56, %v2796_v27  ;;  %v12334_v51 = vpack.c.bf16 %v9643_v53, %v9633_v48  ;;  %v2090_v38 = vadd.f32 %v9686_v26, %v12335_v16  ;;  %v12336_v56 = vld [vmem:[#allocation74_spill] sm:$0xff]  ;;  %v12338_v26 = vld [vmem:[#allocation29_spill] sm:$0xff] }
 0x254   : > { %v2799_v42 = vrot.slane %v2629_v54, 1  ;;  %v2630_v2 = vmax.f32 %v2566_v28, 0.0  ;;  %v2567_v19 = vadd.f32 %v9465_v43, %v2491_v13  ;;  %v2492_v0 = vadd.f32 %v2401_v44, %v2088_v34 }
 0x255   : > { %3140 = vmatpush1.bf16.msra.mxu1 %v12334_v51  ;;  %v1653_v40 = vadd.f32 %v12336_v56, %v9765_v4  ;;  %v2798_v29 = vsel %vm1279_vm2, %v2793_v59, %v2797_v58  ;;  %v2403_v50 = vpop.f32.mrf.mxu0  ;;  %v12337_v62 = vpack.c.bf16 %v9610_v12, %v9592_v33  ;;  %v2091_v9 = vadd.f32 %v9703_v23, %v12338_v26  ;;  %v12339_v4 = vld [vmem:[#allocation30_spill] sm:$0xff]  ;;  %v2025_v12 = vpop.f32.mrf.mxu1 }
 0x256   : > { %v2801_v49 = vrot.slane %v2630_v2, 1  ;;  %v2631_v21 = vmax.f32 %v2567_v19, 0.0  ;;  %v9850_v48 = vadd.f32 %v9460_v24, %v2492_v0  ;;  %v2493_v53 = vadd.f32 %v2403_v50, %v2089_v41 }
 0x257   : > { %3141 = vmatprep.subr.bf16.mxu1 %v12337_v62  ;;  %v2092_v59 = vadd.f32 %v9716_v20, %v12339_v4  ;;  %v2407_v36 = vpop.f32.mrf.mxu0  ;;  %v2800_v31 = vsel %vm1279_vm2, %v2795_v15, %v2799_v42  ;;  %v9857_v33 = vmax.f32 %v2626_v60, %v2798_v29  ;;  %v12340_v23 = vpack.c.bf16 %v9603_v45, %v9581_v46  ;;  %v12341_v15 = vld [vmem:[#allocation46_spill] sm:$0xff]  ;;  %v12344_v46 = vld [vmem:[#allocation75_spill] sm:$0xff]  ;;  %v9884_v56 = vpop.f32.mrf.mxu1  ;;  %v12346_v62 = vld [vmem:[#allocation85_spill] sm:$0xff] }
 0x258   : > { %v2802_v63 = vsel %vm1279_vm2, %v2797_v58, %v2801_v49  ;;  %v2803_v34 = vrot.slane %v2631_v21, 1  ;;  %v2632_v39 = vmax.f32 %v9850_v48, 0.0  ;;  %v9862_v11 = vadd.f32 %v9465_v43, %v2493_v53  ;;  %v12342_v60 = vld [vmem:[#allocation14_spill] sm:$0xff]  ;;  %v12350_v4 = vld [vmem:[#allocation13_spill] sm:$0xff] }
 0x259   : > { %3142 = vmatpush1.bf16.msra.mxu1 %v12340_v23  ;;  %v2093_v20 = vadd.f32 %v9730_v55, %v1653_v40  ;;  %v2494_v28 = vadd.f32 %v2407_v36, %v2090_v38  ;;  %v2409_v13 = vpop.f32.mrf.mxu0  ;;  %v12343_v27 = vpack.c.bf16 %v12341_v15, %v12342_v60  ;;  %v9871_v41 = vmax.f32 %v2627_v3, %v2800_v31 }
 0x25a   : > { %v9873_v58 = vmax.f32 %v2628_v18, %v2802_v63  ;;  %v2805_v44 = vrot.slane %v2632_v39, 1  ;;  %v2633_v19 = vmax.f32 %v9862_v11, 0.0  ;;  %v2495_v0 = vadd.f32 %v2409_v13, %v2091_v9  ;;  %v12349_v9 = vld [vmem:[#allocation84_spill] sm:$0xff] }
 0x25b   : > { %3143 = vmatprep.subr.bf16.mxu1 %v12343_v27  ;;  %v2804_v51 = vsel %vm1279_vm2, %v2799_v42, %v2803_v34  ;;  %v2094_v45 = vadd.f32 %v9745_v37, %v12344_v46  ;;  %v2570_v55 = vadd.f32 %v9460_v24, %v2494_v28  ;;  %v2411_v16 = vpop.f32.mrf.mxu0  ;;  %v12345_v42 = vld [vmem:[#allocation15_spill] sm:$0xff]  ;;  %v12348_v37 = vld [vmem:[#allocation76_spill] sm:$0xff]  ;;  %v12351_v36 = vpack.c.bf16 %v12349_v9, %v12350_v4  ;;  %v12352_v28 = vld [vmem:[#allocation33_spill] sm:$0xff]  ;;  %v2029_v27 = vpop.f32.mrf.mxu1 }
 0x25c   : > { %v9880_v38 = vmax.f32 %v2629_v54, %v2804_v51  ;;  %v2989_v3 = vpack.c.bf16 %v9873_v58, %v9857_v33  ;;  %v2806_v18 = vsel %vm1279_vm2, %v2801_v49, %v2805_v44  ;;  %v2807_v40 = vrot.slane %v2633_v19, 1  ;;  %v7996_v58 = vld [vmem:[%s12119_s3 + $0x54] ss:$8 sps:$4 sm:$0xff]  }
 0x25d   : > { %v2571_v29 = vadd.f32 %v9465_v43, %v2495_v0  ;;  %v2496_v50 = vadd.f32 %v2411_v16, %v2092_v59  ;;  %v12347_v48 = vpack.c.bf16 %v12345_v42, %v12346_v62  ;;  %v1657_v53 = vadd.f32 %v12348_v37, %v9817_v32  ;;  %v2413_v26 = vpop.f32.mrf.mxu0  ;;  %v12354_v16 = vld [vmem:[#allocation12_spill] sm:$0xff]  ;;  %v12360_v37 = vld [vmem:[#allocation82_spill] sm:$0xff] }
 0x25e   : > { %v2634_v54 = vmax.f32 %v2570_v55, 0.0  ;;  %v9896_v31 = vmax.f32 %v2630_v2, %v2806_v18  ;;  %v2990_v49 = vpack.c.bf16 %v9880_v38, %v9871_v41  ;;  %v2497_v11 = vadd.f32 %v2413_v26, %v2093_v20  ;;  %v12353_v55 = vld [vmem:[#allocation83_spill] sm:$0xff]  ;;  %v7981_v41 = vld [vmem:[%s12119_s3] ss:$8 sps:$4 sm:$0xff]  }
 0x25f   : > { %3144 = vmatpush1.bf16.msra.mxu1 %v12347_v48  ;;  %v2635_v63 = vmax.f32 %v2571_v29, 0.0  ;;  %v2572_v59 = vadd.f32 %v9460_v24, %v2496_v50  ;;  %v2808_v23 = vsel %vm1279_vm2, %v2803_v34, %v2807_v40  ;;  %v2095_v32 = vadd.f32 %v9757_v61, %v12352_v28  ;;  %v2417_v15 = vpop.f32.mrf.mxu0  ;;  %v12356_v20 = vld [vmem:[#allocation39_spill] sm:$0xff]  ;;  %v12357_v29 = vld [vmem:[#allocation40_spill] sm:$0xff]  ;;  %v12358_v50 = vld [vmem:[#allocation34_spill] sm:$0xff] }
 0x260   : > { %3145 = vmatprep.subr.bf16.mxu1 %v12351_v36  ;;  %v2809_v13 = vrot.slane %v2634_v54, 1  ;;  %v9904_v60 = vmax.f32 %v2631_v21, %v2808_v23  ;;  %v2573_v51 = vadd.f32 %v9465_v43, %v2497_v11  ;;  %v2498_v46 = vadd.f32 %v2417_v15, %v2094_v45  ;;  %v12359_v48 = vld [vmem:[#allocation11_spill] sm:$0xff]  ;;  %v12363_v23 = vld [vmem:[#allocation37_spill] sm:$0xff] }
 0x261   : > { %v2811_v0 = vrot.slane %v2635_v63, 1  ;;  %v2636_v2 = vmax.f32 %v2572_v59, 0.0  ;;  %v12355_v18 = vpack.c.bf16 %v12353_v55, %v12354_v16  ;;  %v1233_v34 = vadd.f32 %v12357_v29, %v12356_v20  ;;  %v2419_v62 = vpop.f32.mrf.mxu0  ;;  %v12362_v59 = vld [vmem:[#allocation77_spill] sm:$0xff]  ;;  %v12364_v16 = vld [vmem:[#allocation10_spill] sm:$0xff] }
 0x262   : > { %v2096_v61 = vadd.f32 %v9780_v17, %v12358_v50  ;;  %v2097_v42 = vadd.f32 %v9808_v5, %v1657_v53  ;;  %v2810_v21 = vsel %vm1279_vm2, %v2805_v44, %v2809_v13  ;;  %v12361_v26 = vpack.c.bf16 %v12359_v48, %v12360_v37  ;;  %v2033_v53 = vpop.f32.mrf.mxu1  ;;  %v7998_v38 = vld [vmem:[%s12119_s3 + $0x50] ss:$8 sps:$4 sm:$0xff]  }
 0x263   : > { %3146 = vmatpush1.bf16.msra.mxu1 %v12355_v18  ;;  %v2813_v45 = vrot.slane %v2636_v2, 1  ;;  %v2637_v9 = vmax.f32 %v2573_v51, 0.0  ;;  %v9920_v4 = vadd.f32 %v9460_v24, %v2498_v46  ;;  %v2499_v36 = vadd.f32 %v2419_v62, %v2095_v32  ;;  %v2421_v28 = vpop.f32.mrf.mxu0  ;;  %v12365_v32 = vld [vmem:[#allocation45_spill] sm:$0xff]  ;;  %v12367_v62 = vld [vmem:[#allocation78_spill] sm:$0xff] }
 0x264   : > { %3147 = vmatprep.subr.bf16.mxu1 %v12361_v26  ;;  %v2098_v11 = vadd.f32 %v9833_v6, %v12362_v59  ;;  %v2099_v17 = vadd.f32 %v2025_v12, %v12363_v23  ;;  %v2812_v5 = vsel %vm1279_vm2, %v2807_v40, %v2811_v0  ;;  %v9926_v44 = vmax.f32 %v2632_v39, %v2810_v21 }
 0x265   : > { %v2814_v15 = vsel %vm1279_vm2, %v2809_v13, %v2813_v45  ;;  %v2815_v55 = vrot.slane %v2637_v9, 1  ;;  %v2638_v51 = vmax.f32 %v9920_v4, 0.0  ;;  %v2575_v46 = vadd.f32 %v9465_v43, %v2499_v36  ;;  %v2423_v20 = vpop.f32.mrf.mxu0 }
 0x266   : > { %v12366_v18 = vpack.c.bf16 %v12364_v16, %v12365_v32  ;;  %v2500_v6 = vadd.f32 %v2421_v28, %v2096_v61  ;;  %v9934_v12 = vmax.f32 %v2634_v54, %v2814_v15  ;;  %v9936_v29 = vmax.f32 %v2633_v19, %v2812_v5  ;;  %v2035_v19 = vpop.f32.mrf.mxu1 }
 0x267   : > { %v2991_v39 = vpack.c.bf16 %v9926_v44, %v9896_v31  ;;  %v2817_v40 = vrot.slane %v2638_v51, 1  ;;  %v2639_v13 = vmax.f32 %v2575_v46, 0.0  ;;  %v2501_v50 = vadd.f32 %v2423_v20, %v2097_v42  ;;  %v2427_v26 = vpop.f32.mrf.mxu0  ;;  %v12368_v42 = vld [vmem:[#allocation38_spill] sm:$0xff] }
 0x268   : > { %3148 = vmatpush1.bf16.msra.mxu1 %v12366_v18  ;;  %v2816_v21 = vsel %vm1279_vm2, %v2811_v0, %v2815_v55  ;;  %v1661_v48 = vadd.f32 %v12367_v62, %v1233_v34  ;;  %v2576_v37 = vadd.f32 %v9460_v24, %v2500_v6  ;;  %v2992_v54 = vpack.c.bf16 %v9936_v29, %v9904_v60  ;;  %v2037_v20 = vpop.f32.mrf.mxu1  ;;  %v12369_v62 = vld [vmem:[#allocation43_spill] sm:$0xff]  ;;  %v3017_v29 = vld [vmem:[%s12119_s3 + $0x80] sm:$0xff] }
 0x269   : > { %v9943_v4 = vmax.f32 %v2635_v63, %v2816_v21  ;;  %v2818_v61 = vsel %vm1279_vm2, %v2813_v45, %v2817_v40  ;;  %v2819_v36 = vrot.slane %v2639_v13, 1  ;;  %v2577_v59 = vadd.f32 %v9465_v43, %v2501_v50  ;;  %v2429_v34 = vpop.f32.mrf.mxu0  ;;  %v8002_v44 = vld [vmem:[%s12119_s3 + $0x74] ss:$8 sps:$4 sm:$0xff]  }
 0x26a   : > { %v2502_v23 = vadd.f32 %v2427_v26, %v2098_v11  ;;  %v2100_v0 = vadd.f32 %v9884_v56, %v12368_v42  ;;  %v2640_v28 = vmax.f32 %v2576_v37, 0.0  ;;  %v9951_v5 = vmax.f32 %v2636_v2, %v2818_v61  ;;  %v12370_v37 = vld [vmem:[#allocation44_spill] sm:$0xff] }
 0x26b   : > { %v2641_v15 = vmax.f32 %v2577_v59, 0.0  ;;  %v2503_v46 = vadd.f32 %v2429_v34, %v2099_v17  ;;  %v2820_v16 = vsel %vm1279_vm2, %v2815_v55, %v2819_v36  ;;  %v2101_v32 = vadd.f32 %v2029_v27, %v1661_v48  ;;  %v2431_v45 = vpop.f32.mrf.mxu0  ;;  %v12371_v17 = vld [vmem:[#allocation80_spill] sm:$0xff]  ;;  %v12372_v34 = vld [vmem:[#allocation41_spill] sm:$0xff] }
 0x26c   : > { %v2578_v63 = vadd.f32 %v9460_v24, %v2502_v23  ;;  %v2821_v18 = vrot.slane %v2640_v28, 1  ;;  %v9955_v6 = vmax.f32 %v2637_v9, %v2820_v16  ;;  %v2993_v11 = vpack.c.bf16 %v9951_v5, %v9934_v12  ;;  %v8007_v5 = vld [vmem:[%s12120_s4 + $0x70] ss:$8 sps:$4 sm:$0xff]  }
 0x26d   : > { %v2823_v56 = vrot.slane %v2641_v15, 1  ;;  %v2579_v2 = vadd.f32 %v9465_v43, %v2503_v46  ;;  %v2504_v21 = vadd.f32 %v2431_v45, %v2100_v0  ;;  %v1243_v26 = vadd.f32 %v12370_v37, %v12369_v62  ;;  %v2433_v55 = vpop.f32.mrf.mxu0  ;;  %v12373_v46 = vld [vmem:[#allocation81_spill] sm:$0xff] }
 0x26e   : > { %v2642_v50 = vmax.f32 %v2578_v63, 0.0  ;;  %v2102_v61 = vadd.f32 %v2033_v53, %v12371_v17  ;;  %v2822_v27 = vsel %vm1279_vm2, %v2817_v40, %v2821_v18  ;;  %v2994_v9 = vpack.c.bf16 %v9955_v6, %v9943_v4  ;;  %v2039_v53 = vpop.f32.mrf.mxu1  ;;  %v8009_v6 = vld [vmem:[%s12120_s4 + $0x74] ss:$8 sps:$4 sm:$0xff]  }
 0x26f   : > { %v2643_v59 = vmax.f32 %v2579_v2, 0.0  ;;  %v2580_v23 = vadd.f32 %v9460_v24, %v2504_v21  ;;  %v2505_v42 = vadd.f32 %v2433_v55, %v2101_v32  ;;  %v2103_v63 = vadd.f32 %v2035_v19, %v12372_v34  ;;  %v2437_v16 = vpop.f32.mrf.mxu0  ;;  %v12374_v2 = vld [vmem:[#allocation42_spill] sm:$0xff]  ;;  %4024 = vmatprep.subr.bf16.mxu0 %v8009_v6 }
 0x270   : > { %v2825_v48 = vrot.slane %v2642_v50, 1  ;;  %v1665_v0 = vadd.f32 %v12373_v46, %v1243_v26  ;;  %v2824_v45 = vsel %vm1279_vm2, %v2819_v36, %v2823_v56  ;;  %v9970_v62 = vmax.f32 %v2638_v51, %v2822_v27  ;;  %4025 = vmatpush1.bf16.msra.mxu0 %v8007_v5 }
 0x271   : > { %v2827_v37 = vrot.slane %v2643_v59, 1  ;;  %v2644_v17 = vmax.f32 %v2580_v23, 0.0  ;;  %v2581_v57 = vadd.f32 %v9465_v43, %v2505_v42  ;;  %v2104_v14 = vadd.f32 %v2037_v20, %v12374_v2  ;;  %v2439_v32 = vpop.f32.mrf.mxu0 }
 0x272   : > { %v2826_v40 = vsel %vm1279_vm2, %v2821_v18, %v2825_v48  ;;  %v2506_v21 = vadd.f32 %v2437_v16, %v2102_v61  ;;  %v2958_v55 = vmax.f32 %v2639_v13, %v2824_v45  ;;  %v2507_v46 = vadd.f32 %v2439_v32, %v2103_v63 }
 0x273   : > { %v2959_v19 = vmax.f32 %v2640_v28, %v2826_v40  ;;  %v2829_v34 = vrot.slane %v2644_v17, 1  ;;  %v2645_v26 = vmax.f32 %v2581_v57, 0.0  ;;  %v2828_v36 = vsel %vm1279_vm2, %v2823_v56, %v2827_v37  ;;  %v2441_v8 = vpop.f32.mrf.mxu0 }
 0x274   : > { %v2105_v51 = vadd.f32 %v2039_v53, %v1665_v0  ;;  %v2582_v27 = vadd.f32 %v9460_v24, %v2506_v21  ;;  %v2960_v18 = vmax.f32 %v2641_v15, %v2828_v36  ;;  %v2583_v20 = vadd.f32 %v9465_v43, %v2507_v46 }
 0x275   : > { %v2995_v23 = vpack.c.bf16 %v2959_v19, %v9970_v62  ;;  %v2830_v42 = vsel %vm1279_vm2, %v2825_v48, %v2829_v34  ;;  %v2831_v35 = vrot.slane %v2645_v26, 1  ;;  %v2508_v61 = vadd.f32 %v2441_v8, %v2104_v14  ;;  %v2443_v28 = vpop.f32.mrf.mxu0 }
 0x276   : > { %v2646_v13 = vmax.f32 %v2582_v27, 0.0  ;;  %v2961_v16 = vmax.f32 %v2642_v50, %v2830_v42  ;;  %v2996_v57 = vpack.c.bf16 %v2960_v18, %v2958_v55  ;;  %v2647_v63 = vmax.f32 %v2583_v20, 0.0  ;;  %v8021_v20 = vld [vmem:[%s12120_s4 + $0x11c] ss:$8 sps:$4 sm:$0xff]  }
 0x277   : > { %v2584_v56 = vadd.f32 %v9460_v24, %v2508_v61  ;;  %v2509_v0 = vadd.f32 %v2443_v28, %v2105_v51  ;;  %v2832_v45 = vsel %vm1279_vm2, %v2827_v37, %v2831_v35  ;;  %v12376_v12 = vpack.c.bf16 %v9829_v7, %v9804_v47  ;;  %v7984_v47 = vld [vmem:[%s12119_s3 + $0x14] ss:$8 sps:$4 sm:$0xff]   ;;  %v7995_v7 = vld [vmem:[%s12119_s3 + $0x40] ss:$8 sps:$4 sm:$0xff]  }
 0x278   : > { %v2833_v53 = vrot.slane %v2646_v13, 1  ;;  %v2962_v15 = vmax.f32 %v2643_v59, %v2832_v45  ;;  %v2835_v40 = vrot.slane %v2647_v63, 1  ;;  %v12377_v60 = vpack.c.bf16 %v9824_v25, %v9794_v1  ;;  %v7987_v1 = vld [vmem:[%s12119_s3 + $0x24] ss:$8 sps:$4 sm:$0xff]   ;;  %v8015_v61 = vld [vmem:[%s12120_s4 + $0x54] ss:$8 sps:$4 sm:$0xff]  }
 0x279   : > { %v2648_v62 = vmax.f32 %v2584_v56, 0.0  ;;  %v2585_v48 = vadd.f32 %v9465_v43, %v2509_v0  ;;  %v8296_v43 = vmov 65535   ;;  %v12378_v31 = vpack.c.bf16 %v9796_v10, %v9755_v22  ;;  %v7986_v22 = vld [vmem:[%s12119_s3 + $0x10] ss:$8 sps:$4 sm:$0xff]   ;;  %v7993_v25 = vld [vmem:[%s12119_s3 + $0x44] ss:$8 sps:$4 sm:$0xff]  }
 0x27a   : > { %v2834_v2 = vsel %vm1279_vm2, %v2829_v34, %v2833_v53  ;;  %v2836_v8 = vsel %vm1279_vm2, %v2831_v35, %v2835_v40  ;;  %v3125_v34 = vsel %vm1279_vm2, 4294967295, %v8296_v43  ;;  %v12379_v33 = vpack.c.bf16 %v9778_v52, %v9751_v30  ;;  %v7989_v30 = vld [vmem:[%s12119_s3 + $0x20] ss:$8 sps:$4 sm:$0xff]   ;;  %v7990_v52 = vld [vmem:[%s12119_s3 + $0x34] ss:$8 sps:$4 sm:$0xff]  }
 0x27b   : > { %v2837_v21 = vrot.slane %v2648_v62, 1  ;;  %v2649_v14 = vmax.f32 %v2585_v48, 0.0  ;;  %v2963_v50 = vmax.f32 %v2644_v17, %v2834_v2  ;;  %v2964_v32 = vmax.f32 %v2645_v26, %v2836_v8  ;;  %v7992_v10 = vld [vmem:[%s12119_s3 + $0x30] ss:$8 sps:$4 sm:$0xff]   ;;  %v8016_v0 = vld [vmem:[%s12120_s4 + $0x40] ss:$8 sps:$4 sm:$0xff]  }
 0x27c   : > { %v9988_v35 = vsel %vm3124_vm5, %v3125_v34, 0  ;;  %v7190_v4 = vcombine.high %v3017_v29, %v3017_v29  ;;  %v8025_v28 = vld [vmem:[%s12120_s4 + $0x108] ss:$8 sps:$4 sm:$0xff]   ;;  %v8031_v56 = vld [vmem:[%s12120_s4 + $0xf8] ss:$8 sps:$4 sm:$0xff]  }
 0x27d   : > { %v2838_v55 = vsel %vm1279_vm2, %v2833_v53, %v2837_v21  ;;  %v2967_v24 = vmax.f32 %v2648_v62, %v2837_v21  ;;  %v2839_v19 = vrot.slane %v2649_v14, 1  ;;  %v2997_v46 = vpack.c.bf16 %v2963_v50, %v2961_v16  ;;  %12375 = vst [vmem:[#allocation16_spill] sm:$0xff] %v9988_v35  ;;  %v8013_v16 = vld [vmem:[%s12120_s4 + $0x50] ss:$8 sps:$4 sm:$0xff]   ;;  %v8039_v45 = vld [vmem:[%s12120_s4 + $0xec] ss:$8 sps:$4 sm:$0xff]  }
 0x27e   : > { %v2965_v37 = vmax.f32 %v2646_v13, %v2838_v55  ;;  %v2998_v36 = vpack.c.bf16 %v2964_v32, %v2962_v15  ;;  %v8027_v13 = vld [vmem:[%s12120_s4 + $0x10c] ss:$8 sps:$4 sm:$0xff]   ;;  %v8037_v15 = vld [vmem:[%s12120_s4 + $0xe8] ss:$8 sps:$4 sm:$0xff]   ;;  %v8045_v62 = vld [vmem:[%s12120_s4 + $0xdc] ss:$8 sps:$4 sm:$0xff]  }
 0x27f   : > { %v2968_v59 = vmax.f32 %v2649_v14, %v2839_v19  ;;  %v2840_v51 = vsel %vm1279_vm2, %v2835_v40, %v2839_v19  ;;  %v8024_v53 = vld [vmem:[%s12120_s4 + $0x34] ss:$8 sps:$4 sm:$0xff]   ;;  %v8022_v40 = vld [vmem:[%s12120_s4 + $0x30] ss:$8 sps:$4 sm:$0xff]   ;;  %v8030_v48 = vld [vmem:[%s12120_s4 + $0x24] ss:$8 sps:$4 sm:$0xff]  }
 0x280   : > { %v2999_v27 = vpack.c.bf16 %v2967_v24, %v2965_v37  ;;  %v2966_v18 = vmax.f32 %v2647_v63, %v2840_v51  ;;  %v8018_v63 = vld [vmem:[%s12120_s4 + $0x44] ss:$8 sps:$4 sm:$0xff]   ;;  %v8043_v2 = vld [vmem:[%s12120_s4 + $0xd8] ss:$8 sps:$4 sm:$0xff]   ;;  %v8036_v14 = vld [vmem:[%s12120_s4 + $0x14] ss:$8 sps:$4 sm:$0xff]  }
 0x281   : > { %v8028_v21 = vld [vmem:[%s12120_s4 + $0x20] ss:$8 sps:$4 sm:$0xff]   ;;  %v8034_v8 = vld [vmem:[%s12120_s4 + $0x10] ss:$8 sps:$4 sm:$0xff]   ;;  %v8042_v50 = vld [vmem:[%s12120_s4 + $0x4] ss:$8 sps:$4 sm:$0xff]  }
 0x282   : > { %v3000_v42 = vpack.c.bf16 %v2968_v59, %v2966_v18  ;;  %v3128_v26 = vand.u32 %v9988_v35, %v2999_v27  ;;  %v3478_v32 = vld [vmem:[%s12120_s4 + $0xa0] sm:$0x11]  ;;  %v8047_v37 = vld [vmem:[%s12120_s4 + $0xc8] ss:$8 sps:$4 sm:$0xff]   ;;  %v8053_v51 = vld [vmem:[%s12120_s4 + $0x94] ss:$8 sps:$4 sm:$0xff]  }
 0x283   : > { %v8040_v55 = vld [vmem:[%s12120_s4] ss:$8 sps:$4 sm:$0xff]   ;;  %v7273_v24 = vcombine.high %v3478_v32, %v3478_v32  ;;  %v7272_v19 = vcombine.low %v3478_v32, %v3478_v32  ;;  %v8051_v59 = vld [vmem:[%s12120_s4 + $0x90] ss:$8 sps:$4 sm:$0xff]   ;;  %v8056_v43 = vld [vmem:[%s12120_s4 + $0xbc] ss:$8 sps:$4 sm:$0xff]  }
 0x284   : > { %v3131_v17 = vand.u32 %v9988_v35, %v3000_v42  ;;  %v8054_v34 = vld [vmem:[%s12120_s4 + $0xb8] ss:$8 sps:$4 sm:$0xff]   ;;  %v8059_v27 = vld [vmem:[%s12120_s4 + $0x84] ss:$8 sps:$4 sm:$0xff]  }
 0x285   : > { %v8057_v42 = vld [vmem:[%s12120_s4 + $0x80] ss:$8 sps:$4 sm:$0xff]  }
 0x286   : > { %3149 = vmatprep.subr.bf16.mxu1 %v3131_v17  ;;  %v8062_v17 = vld [vmem:[%s12120_s4 + $0xac] ss:$8 sps:$4 sm:$0xff]  }
 0x287   : > { %3150 = vmatpush2.bf16.msra.mxu1 %v3128_v26  ;;  %v8060_v26 = vld [vmem:[%s12120_s4 + $0xa8] ss:$8 sps:$4 sm:$0xff]  }
 0x288   : > { %3151 = vmatprep.subr.bf16.mxu1 %v2998_v36  ;;  %v4019_v36 = vsel %vm3777_vm6, %v7272_v19, 0 }
 0x28b   : > { %3152 = vmatpush2.bf16.msra.mxu1 %v2997_v46  ;;  %v8049_v46 = vld [vmem:[%s12120_s4 + $0xcc] ss:$8 sps:$4 sm:$0xff]  }
 0x28c   : > { %3153 = vmatprep.subr.bf16.mxu1 %v2996_v57  ;;  %v8033_v57 = vld [vmem:[%s12120_s4 + $0xfc] ss:$8 sps:$4 sm:$0xff]  }
 0x28f   : > { %3154 = vmatpush2.bf16.msra.mxu1 %v2995_v23  ;;  %v8010_v23 = vld [vmem:[%s12120_s4 + $0x60] ss:$8 sps:$4 sm:$0xff]  }
 0x290   : > { %3155 = vmatprep.subr.bf16.mxu1 %v2994_v9  ;;  %v8019_v9 = vld [vmem:[%s12120_s4 + $0x118] ss:$8 sps:$4 sm:$0xff]  }
 0x293   : > { %3156 = vmatpush2.bf16.msra.mxu1 %v2993_v11  ;;  %v8012_v11 = vld [vmem:[%s12120_s4 + $0x64] ss:$8 sps:$4 sm:$0xff]  }
 0x294   : > { %3157 = vmatprep.subr.bf16.mxu1 %v2992_v54  ;;  %v7189_v54 = vcombine.low %v3017_v29, %v3017_v29  ;;  %4026 = vmatprep.subr.bf16.mxu0 %v8012_v11 }
 0x295   : > { %4027 = vmatpush1.bf16.msra.mxu0 %v8010_v23 }
 0x296   : > { %4028 = vmatprep.subr.bf16.mxu0 %v8015_v61 }
 0x297   : > { %3158 = vmatpush2.bf16.msra.mxu1 %v2991_v39  ;;  %v8004_v39 = vld [vmem:[%s12119_s3 + $0x70] ss:$8 sps:$4 sm:$0xff]  }
 0x298   : > { %3159 = vmatprep.subr.bf16.mxu1 %v2990_v49  ;;  %v8001_v49 = vld [vmem:[%s12119_s3 + $0x60] ss:$8 sps:$4 sm:$0xff]  }
 0x299   : > { %4029 = vmatpush1.bf16.msra.mxu0 %v8013_v16 }
 0x29a   : > { %4030 = vmatprep.subr.bf16.mxu0 %v8018_v63 }
 0x29b   : > { %3160 = vmatpush2.bf16.msra.mxu1 %v2989_v3  ;;  %v7999_v3 = vld [vmem:[%s12119_s3 + $0x64] ss:$8 sps:$4 sm:$0xff]  }
 0x29c   : > { %3161 = vmatprep.subr.bf16.mxu1 %v12376_v12 }
 0x29d   : > { %4031 = vmatpush1.bf16.msra.mxu0 %v8016_v0 }
 0x29e   : > { %4032 = vmatprep.subr.bf16.mxu0 %v8024_v53 }
 0x29f   : > { %3162 = vmatpush2.bf16.msra.mxu1 %v12377_v60 }
 0x2a0   : > { %3163 = vmatprep.subr.bf16.mxu1 %v12378_v31  ;;  %v7220_v31 = vld [vmem:[%s12120_s4 + $0x148] sm:$0x11] }
 0x2a1   : > { %4033 = vmatpush1.bf16.msra.mxu0 %v8022_v40 }
 0x2a2   : > { %4034 = vmatprep.subr.bf16.mxu0 %v8030_v48 }
 0x2a3   : > { %3164 = vmatpush2.bf16.msra.mxu1 %v12379_v33  ;;  %v7242_v33 = vcombine.high %v7220_v31, %v7220_v31 }
 0x2a4   : > { %3784 = vmatprep.subr.bf16.mxu1 %v8021_v20 }
 0x2a5   : > { %4035 = vmatpush1.bf16.msra.mxu0 %v8028_v21 }
 0x2a6   : > { %3166 = vmatmul.mubr.bf16.vlgmr.msra.gmra.mxu1 %v7981_v41  ;;  %4036 = vmatprep.subr.bf16.mxu0 %v8036_v14 }
 0x2a7   : > { %7192 = vmatprep.mubr.msk.bf16.mxu1 %vm3096_vm4, %v7984_v47  ;;  %3785 = vmatpush1.bf16.msra.mxu1 %v8019_v9  ;;  %v7241_v47 = vcombine.low %v7220_v31, %v7220_v31  ;;  %v8073_v9 = vld [vmem:[%s12120_s4 + $0x26c] ss:$8 sps:$4 sm:$0xff]  }
 0x2a8   : > { %3786 = vmatprep.subr.bf16.mxu1 %v8027_v13 }
 0x2a9   : > { %4037 = vmatpush1.bf16.msra.mxu0 %v8034_v8 }
 0x2aa   : > { %4038 = vmatprep.subr.bf16.mxu0 %v8042_v50 }
 0x2ab   : > { %3787 = vmatpush1.bf16.msra.mxu1 %v8025_v28 }
 0x2ac   : > { %3788 = vmatprep.subr.bf16.mxu1 %v8033_v57 }
 0x2ad   : > { %4039 = vmatpush1.bf16.msra.mxu0 %v8040_v55 }
 0x2ae   : > { %3176 = vmatmul.mubr.bf16.gmra.mxu1 %v7986_v22  ;;  %7274 = vmatprep.subr.msk.bf16.mxu0 %vm3777_vm6, %v7273_v24 }
 0x2af   : > { %7193 = vmatprep.mubr.msk.bf16.mxu1 %vm3096_vm4, %v7987_v1  ;;  %3789 = vmatpush1.bf16.msra.mxu1 %v8031_v56  ;;  %v3779_v1 = vsel %vm3777_vm6, %v7241_v47, 0 }
 0x2b0   : > { %3790 = vmatprep.subr.bf16.mxu1 %v8039_v45  ;;  %v8085_v45 = vld [vmem:[%s12120_s4 + $0x1c4] ss:$8 sps:$4 sm:$0xff]  }
 0x2b1   : > { %4051 = vmatpush2.bf16.msra.mxu0 %v4019_v36 }
 0x2b2   : > { %4052 = vmatprep.subr.bf16.mxu0 %v8053_v51 }
 0x2b3   : > { %3791 = vmatpush1.bf16.msra.mxu1 %v8037_v15 }
 0x2b4   : > { %3792 = vmatprep.subr.bf16.mxu1 %v8045_v62 }
 0x2b5   : > { %4053 = vmatpush2.bf16.msra.mxu0 %v8051_v59 }
 0x2b6   : > { %3186 = vmatmul.mubr.bf16.gmra.mxu1 %v7989_v30  ;;  %4054 = vmatprep.subr.bf16.mxu0 %v8059_v27 }
 0x2b7   : > { %7194 = vmatprep.mubr.msk.bf16.mxu1 %vm3096_vm4, %v7990_v52  ;;  %3793 = vmatpush1.bf16.msra.mxu1 %v8043_v2 }
 0x2b8   : > { %3794 = vmatprep.subr.bf16.mxu1 %v8049_v46 }
 0x2b9   : > { %4055 = vmatpush2.bf16.msra.mxu0 %v8057_v42 }
 0x2ba   : > { %4738 = vmatprep.subr.bf16.mxu0 %v8073_v9 }
 0x2bb   : > { %3795 = vmatpush1.bf16.msra.mxu1 %v8047_v37 }
 0x2bc   : > { %3796 = vmatprep.subr.bf16.mxu1 %v8056_v43 }
 0x2be   : > { %3196 = vmatmul.mubr.bf16.gmra.mxu1 %v7992_v10  ;;  %v8067_v10 = vld [vmem:[%s12120_s4 + $0x13c] ss:$8 sps:$4 sm:$0xff]  }
 0x2bf   : > { %7195 = vmatprep.mubr.msk.bf16.mxu1 %vm3096_vm4, %v7993_v25  ;;  %3797 = vmatpush1.bf16.msra.mxu1 %v8054_v34  ;;  %v8065_v25 = vld [vmem:[%s12120_s4 + $0x138] ss:$8 sps:$4 sm:$0xff]  }
 0x2c0   : > { %3798 = vmatprep.subr.bf16.mxu1 %v8062_v17 }
 0x2c3   : > { %3799 = vmatpush1.bf16.msra.mxu1 %v8060_v26 }
 0x2c4   : > { %7243 = vmatprep.subr.msk.bf16.mxu1 %vm3777_vm6, %v7242_v33 }
 0x2c6   : > { %3206 = vmatmul.mubr.bf16.gmra.mxu1 %v7995_v7 }
 0x2c7   : > { %7196 = vmatprep.mubr.msk.bf16.mxu1 %vm3096_vm4, %v7996_v58  ;;  %3811 = vmatpush2.bf16.msra.mxu1 %v3779_v1 }
 0x2c8   : > { %3812 = vmatprep.subr.bf16.mxu1 %v8067_v10 }
 0x2cb   : > { %3813 = vmatpush2.bf16.msra.mxu1 %v8065_v25 }
 0x2ce   : > { %3216 = vmatmul.mubr.bf16.gmra.mxu1 %v7998_v38 }
 0x2cf   : > { %7197 = vmatprep.mubr.msk.bf16.mxu1 %vm3096_vm4, %v7999_v3  ;;  %v8070_v3 = vld [vmem:[%s12120_s4 + $0x12c] ss:$8 sps:$4 sm:$0xff]  }
 0x2d0   : > { %3814 = vmatprep.subr.bf16.mxu1 %v8070_v3 }
 0x2d6   : > { %3226 = vmatmul.mubr.bf16.gmra.mxu1 %v8001_v49  ;;  %v8068_v49 = vld [vmem:[%s12120_s4 + $0x128] ss:$8 sps:$4 sm:$0xff]  }
 0x2d7   : > { %7198 = vmatprep.mubr.msk.bf16.mxu1 %vm3096_vm4, %v8002_v44  ;;  %3815 = vmatpush2.bf16.msra.mxu1 %v8068_v49 }
 0x2d8   : > { %4354 = vmatprep.subr.bf16.mxu1 %v8085_v45 }
 0x2de   : > { %3236 = vmatmul.mubr.bf16.gmra.mxu1 %v8004_v39 }
 0x2df   : > { %7199 = vmatprep.mubr.msk.bf16.mxu1 %vm3096_vm4, %v7190_v4 }
 0x2e6   : > { %3246 = vmatmul.mubr.bf16.gmra.mxu1 %v7189_v54 }
 0x366   : > { %v10182_v18 = vpop.f32.mrf.mxu1 }
 0x368   : > { %v10193_v12 = vpop.f32.mrf.mxu1 }
 0x369   : > { %v7731_v60 = vpack.i.bf16 %v10193_v12, %v10182_v18 }
 0x36a   : > { %v10200_v41 = vpop.f32.mrf.mxu1 }
 0x36b   : > { %7732 = vrot.lane.b32.xlu0 %v7731_v60, %s8297_s19 }
 0x36c   : > { %v10203_v22 = vpop.f32.mrf.mxu1 }
 0x36d   : > { %v7736_v30 = vpack.i.bf16 %v10203_v22, %v10200_v41 }
 0x36e   : > { %v10209_v52 = vpop.f32.mrf.mxu1 }
 0x36f   : > { %7737 = vrot.lane.b32.xlu0 %v7736_v30, %s8297_s19 }
 0x370   : > { %v10218_v7 = vpop.f32.mrf.mxu1 }
 0x371   : > { %v7741_v58 = vpack.i.bf16 %v10218_v7, %v10209_v52 }
 0x372   : > { %v10222_v38 = vpop.f32.mrf.mxu1 }
 0x373   : > { %7742 = vrot.lane.b32.xlu1 %v7741_v58, %s8297_s19 }
 0x374   : > { %v10231_v44 = vpop.f32.mrf.mxu1 }
 0x375   : > { %v7746_v29 = vpack.i.bf16 %v10231_v44, %v10222_v38 }
 0x376   : > { %v10235_v39 = vpop.f32.mrf.mxu1 }
 0x377   : > { %7747 = vrot.lane.b32.xlu1 %v7746_v29, %s8297_s19 }
 0x378   : > { %v10238_v4 = vpop.f32.mrf.mxu1 }
 0x379   : > { %v7751_v54 = vpack.i.bf16 %v10238_v4, %v10235_v39 }
 0x37a   : > { %v10242_v5 = vpop.f32.mrf.mxu1 }
 0x37b   : > { %7752 = vrot.lane.b32.xlu0 %v7751_v54, %s8297_s19 }
 0x37c   : > { %v10245_v6 = vpop.f32.mrf.mxu1 }
 0x37d   : > { %v7756_v11 = vpack.i.bf16 %v10245_v6, %v10242_v5 }
 0x37e   : > { %v10252_v23 = vpop.f32.mrf.mxu1 }
 0x37f   : > { %7757 = vrot.lane.b32.xlu1 %v7756_v11, %s8297_s19 }
 0x380   : > { %v10255_v20 = vpop.f32.mrf.mxu1 }
 0x381   : > { %v7761_v61 = vpack.i.bf16 %v10255_v20, %v10252_v23 }
 0x382   : > { %v10259_v13 = vpop.f32.mrf.mxu1 }
 0x383   : > { %7762 = vrot.lane.b32.xlu0 %v7761_v61, %s8297_s19 }
 0x384   : > { %v10262_v28 = vpop.f32.mrf.mxu1 }
 0x385   : > { %v7766_v16 = vpack.i.bf16 %v10262_v28, %v10259_v13 }
 0x386   : > { %v10266_v57 = vpop.f32.mrf.mxu1 }
 0x387   : > { %7767 = vrot.lane.b32.xlu1 %v7766_v16, %s8297_s19  ;;  %v8071_v16 = vld [vmem:[%s12120_s4 + $0x268] ss:$8 sps:$4 sm:$0xff]  }
 0x388   : > { %v10269_v63 = vpop.f32.mrf.mxu1 }
 0x389   : > { %v7771_v56 = vpack.i.bf16 %v10269_v63, %v10266_v57 }
 0x38a   : > { %v10273_v0 = vpop.f32.mrf.mxu1 }
 0x38b   : > { %7772 = vrot.lane.b32.xlu0 %v7771_v56, %s8297_s19 }
 0x38c   : > { %v10279_v53 = vpop.f32.mrf.mxu1 }
 0x38d   : > { %v7776_v15 = vpack.i.bf16 %v10279_v53, %v10273_v0 }
 0x38e   : > { %v10283_v40 = vpop.f32.mrf.mxu1 }
 0x38f   : > { %7777 = vrot.lane.b32.xlu1 %v7776_v15, %s8297_s19 }
 0x390   : > { %v10286_v62 = vpop.f32.mrf.mxu1 }
 0x391   : > { %v7781_v48 = vpack.i.bf16 %v10286_v62, %v10283_v40 }
 0x392   : > { %v10290_v2 = vpop.f32.mrf.mxu1 }
 0x393   : > { %7782 = vrot.lane.b32.xlu0 %v7781_v48, %s8297_s19  ;;  %v8074_v48 = vld [vmem:[%s12120_s4 + $0x258] ss:$8 sps:$4 sm:$0xff]  }
 0x394   : > { %v10293_v21 = vpop.f32.mrf.mxu1 }
 0x395   : > { %v7786_v14 = vpack.i.bf16 %v10293_v21, %v10290_v2 }
 0x396   : > { %v10297_v8 = vpop.f32.mrf.mxu1 }
 0x397   : > { %7787 = vrot.lane.b32.xlu1 %v7786_v14, %s8297_s19 }
 0x398   : > { %v10300_v50 = vpop.f32.mrf.mxu1 }
 0x399   : > { %v7791_v32 = vpack.i.bf16 %v10300_v50, %v10297_v8 }
 0x39a   : > { %v10304_v55 = vpop.f32.mrf.mxu1 }
 0x39b   : > { %7792 = vrot.lane.b32.xlu0 %v7791_v32, %s8297_s19  ;;  %v8079_v32 = vld [vmem:[%s12120_s4 + $0x24c] ss:$8 sps:$4 sm:$0xff]  }
 0x39c   : > { %v10307_v24 = vpop.f32.mrf.mxu1 }
 0x39d   : > { %v7796_v19 = vpack.i.bf16 %v10307_v24, %v10304_v55 }
 0x39e   : > { %v10311_v46 = vpop.f32.mrf.mxu1 }
 0x39f   : > { %7797 = vrot.lane.b32.xlu1 %v7796_v19, %s8297_s19 }
 0x3a0   : > { %v10314_v37 = vpop.f32.mrf.mxu1 }
 0x3a1   : > { %v7801_v36 = vpack.i.bf16 %v10314_v37, %v10311_v46 }
 0x3a2   : > { %v10318_v59 = vpop.f32.mrf.mxu1 }
 0x3a3   : > { %7802 = vrot.lane.b32.xlu0 %v7801_v36, %s8297_s19 }
 0x3a4   : > { %v10321_v51 = vpop.f32.mrf.mxu1 }
 0x3a5   : > { %v7806_v43 = vpack.i.bf16 %v10321_v51, %v10318_v59 }
 0x3a6   : > { %v10325_v34 = vpop.f32.mrf.mxu1 }
 0x3a7   : > { %7807 = vrot.lane.b32.xlu1 %v7806_v43, %s8297_s19 }
 0x3a8   : > { %v10328_v27 = vpop.f32.mrf.mxu1 }
 0x3a9   : > { %v7811_v42 = vpack.i.bf16 %v10328_v27, %v10325_v34 }
 0x3aa   : > { %v3251_v17 = vpop.f32.mrf.mxu1 }
 0x3ab   : > { %7812 = vrot.lane.b32.xlu0 %v7811_v42, %s8297_s19  ;;  %s7027_s19 = sshll.u32 %s458_s18, 3 }
 0x3ac   : > { %v3252_v26 = vpop.f32.mrf.mxu1  ;;  %s460_s20 = scalar_lea.vmem [#allocation2], %s7027_s19  ;;  %s8237_s19 = sshll.u32 %s8301_s17, 4  ;;  %s8238_s19 = int_to_ptr.vmem [resolvable:$false] %s8237_s19 }
 0x3ad   : > { %s6964_s29 = sshll.u32 %s460_s20, 4  ;;  %s8239_s24 = scalar_lea.vmem %s8238_s19, 256  ;;  %s12077_s29 = int_to_ptr.vmem [resolvable:$true] %s6964_s29 }
 0x3ae   : > { %s8233_s21 = scalar_lea.vmem %s12077_s29, 128  ;;  %p8240_p0 = scmp.lt.s32.totalorder %s12077_s29, %s8238_s19 }
 0x3af   : > { %p8234_p11 = scmp.ne.s32.totalorder %s12077_s29, %s8233_s21  ;;  %p8241_p1 = scmp.lt.s32.totalorder %s8239_s24, %s8233_s21 }
 0x3b1   : > { %p8235_p12 = pnand %p8234_p11, %p8415_p5  ;;  %p8242_p2 = por %p8241_p1, %p8240_p0 }
 0x3b3   : > { %p8236_p13 = pneg %p8235_p12 }
 0x3b5   : > { %p8243_p3 = pnand %p8242_p2, %p8236_p13 }
 0x3dd   : > { %v7733_v60 = vpop.permute.xlu0 %7732 }
 0x3de   : > { %v7735_v31 = vunpack.i.h.bf16 %v7733_v60  ;;  %v7734_v33 = vunpack.i.l.bf16 %v7733_v60 }
 0x3e0   : > { %v3357_v1 = vsel %vm3356_vm7, %v7734_v33, %v7735_v31  ;;  %v3409_v25 = vmax.f32 %v10193_v12, %v7735_v31  ;;  %v8076_v12 = vld [vmem:[%s12120_s4 + $0x25c] ss:$8 sps:$4 sm:$0xff]  }
 0x3e1   : > { %v7738_v47 = vpop.permute.xlu0 %7737  ;;  %v3408_v49 = vmax.f32 %v10182_v18, %v3357_v1 }
 0x3e2   : > { %v7740_v30 = vunpack.i.h.bf16 %v7738_v47  ;;  %v7739_v10 = vunpack.i.l.bf16 %v7738_v47 }
 0x3e4   : > { %v3411_v58 = vmax.f32 %v10203_v22, %v7740_v30  ;;  %v3358_v3 = vsel %vm3356_vm7, %v7739_v10, %v7740_v30 }
 0x3e5   : > { %v3410_v29 = vmax.f32 %v10200_v41, %v3358_v3  ;;  %v7743_v54 = vpop.permute.xlu1 %7742 }
 0x3e6   : > { %v10339_v11 = vpack.c.bf16 %v3411_v58, %v3409_v25  ;;  %v7745_v9 = vunpack.i.h.bf16 %v7743_v54  ;;  %v7744_v61 = vunpack.i.l.bf16 %v7743_v54 }
 0x3e7   : > { %v10344_v56 = vpack.c.bf16 %v3410_v29, %v3408_v49 }
 0x3e8   : > { %7275 = vmatprep.mubr.msk.bf16.mxu0 %vm3752_vm8, %v10339_v11  ;;  %v3518_v41 = vshll.u32 %v10339_v11, 16  ;;  %v3359_v22 = vsel %vm3356_vm7, %v7744_v61, %v7745_v9  ;;  %v3413_v19 = vmax.f32 %v10218_v7, %v7745_v9  ;;  %v8077_v7 = vld [vmem:[%s12120_s4 + $0x248] ss:$8 sps:$4 sm:$0xff]   ;;  %v3516_v1 = vshrl.u32 %v10339_v11, 16  ;;  %v8080_v61 = vld [vmem:[%s12120_s4 + $0x238] ss:$8 sps:$4 sm:$0xff]  }
 0x3e9   : > { %4057 = vmatmul.mubr.bf16.vlgmr.msra.gmra.mxu0 %v10344_v56  ;;  %v7748_v18 = vpop.permute.xlu1 %7747  ;;  %v3506_v14 = vshll.u32 %v10344_v56, 16  ;;  %v3412_v42 = vmax.f32 %v10209_v52, %v3359_v22  ;;  %v3504_v58 = vshrl.u32 %v10344_v56, 16  ;;  %v8088_v22 = vld [vmem:[%s12120_s4 + $0x22c] ss:$8 sps:$4 sm:$0xff]  }
 0x3ea   : > { %v7750_v45 = vunpack.i.h.bf16 %v7748_v18  ;;  %v7749_v15 = vunpack.i.l.bf16 %v7748_v18  ;;  %4739 = vmatpush1.bf16.msra.mxu0 %v8071_v16  ;;  %v3520_v60 = vrot.slane %v3518_v41, 1  ;;  %v8083_v18 = vld [vmem:[%s12120_s4 + $0x1c0] ss:$8 sps:$4 sm:$0xff]  }
 0x3eb   : > { %4740 = vmatprep.subr.bf16.mxu0 %v8076_v12  ;;  %v3508_v52 = vrot.slane %v3506_v14, 1 }
 0x3ec   : > { %v3415_v36 = vmax.f32 %v10231_v44, %v7750_v45  ;;  %v3360_v43 = vsel %vm3356_vm7, %v7749_v15, %v7750_v45  ;;  %v3521_v25 = vor.u32 %v3520_v60, %v3516_v1  ;;  %v8086_v60 = vld [vmem:[%s12120_s4 + $0x228] ss:$8 sps:$4 sm:$0xff]  }
 0x3ed   : > { %v3414_v17 = vmax.f32 %v10222_v38, %v3360_v43  ;;  %v7753_v26 = vpop.permute.xlu0 %7752  ;;  %v8082_v38 = vld [vmem:[%s12120_s4 + $0x23c] ss:$8 sps:$4 sm:$0xff]   ;;  %v3509_v16 = vor.u32 %v3508_v52, %v3504_v58 }
 0x3ee   : > { %v10368_v31 = vpack.c.bf16 %v3415_v36, %v3413_v19  ;;  %v7755_v33 = vunpack.i.h.bf16 %v7753_v26  ;;  %v7754_v47 = vunpack.i.l.bf16 %v7753_v26  ;;  %4741 = vmatpush1.bf16.msra.mxu0 %v8074_v48  ;;  %v8091_v19 = vld [vmem:[%s12120_s4 + $0x1b4] ss:$8 sps:$4 sm:$0xff]   ;;  %v8097_v52 = vld [vmem:[%s12120_s4 + $0x1a4] ss:$8 sps:$4 sm:$0xff]  }
 0x3ef   : > { %v10373_v44 = vpack.c.bf16 %v3414_v17, %v3412_v42  ;;  %4742 = vmatprep.subr.bf16.mxu0 %v8079_v32 }
 0x3f0   : > { %7276 = vmatprep.mubr.msk.bf16.mxu0 %vm3752_vm8, %v10368_v31  ;;  %v3523_v30 = vshll.u32 %v10368_v31, 16  ;;  %v3361_v49 = vsel %vm3356_vm7, %v7754_v47, %v7755_v33  ;;  %v3417_v45 = vmax.f32 %v10238_v4, %v7755_v33  ;;  %v8094_v47 = vld [vmem:[%s12120_s4 + $0x21c] ss:$8 sps:$4 sm:$0xff]  }
 0x3f1   : > { %4067 = vmatmul.mubr.bf16.gmra.mxu0 %v10373_v44  ;;  %v7758_v10 = vpop.permute.xlu1 %7757  ;;  %v3511_v3 = vshll.u32 %v10373_v44, 16  ;;  %v3416_v36 = vmax.f32 %v10235_v39, %v3361_v49  ;;  %v3535_v39 = vshrl.u32 %v10368_v31, 16 }
 0x3f2   : > { %v7760_v29 = vunpack.i.h.bf16 %v7758_v10  ;;  %v7759_v54 = vunpack.i.l.bf16 %v7758_v10  ;;  %v3525_v9 = vrot.slane %v3523_v30, 1  ;;  %4743 = vmatpush1.bf16.msra.mxu0 %v8077_v7 }
 0x3f3   : > { %v3513_v12 = vrot.slane %v3511_v3, 1  ;;  %4744 = vmatprep.subr.bf16.mxu0 %v8082_v38 }
 0x3f4   : > { %v3419_v15 = vmax.f32 %v10245_v6, %v7760_v29  ;;  %v3362_v48 = vsel %vm3356_vm7, %v7759_v54, %v7760_v29  ;;  %v3526_v32 = vsel %vm550_vm0, %v3521_v25, %v3525_v9  ;;  %v3537_v10 = vor.u32 %v3535_v39, %v3525_v9 }
 0x3f5   : > { %v3418_v43 = vmax.f32 %v10242_v5, %v3362_v48  ;;  %7244 = vmatprep.mubr.msk.bf16.mxu1 %vm3752_vm8, %v3526_v32  ;;  %v7763_v42 = vpop.permute.xlu0 %7762  ;;  %v3514_v17 = vsel %vm550_vm0, %v3509_v16, %v3513_v12  ;;  %v8089_v5 = vld [vmem:[%s12120_s4 + $0x1b0] ss:$8 sps:$4 sm:$0xff]   ;;  %v3527_v25 = vshrl.u32 %v10373_v44, 16  ;;  %v4178_v48 = vrot.slane %v10373_v44, 1 }
 0x3f6   : > { %v10416_v4 = vpack.c.bf16 %v3419_v15, %v3417_v45  ;;  %v7765_v6 = vunpack.i.h.bf16 %v7763_v42  ;;  %v7764_v26 = vunpack.i.l.bf16 %v7763_v42  ;;  %3817 = vmatmul.mubr.bf16.vlgmr.msra.gmra.mxu1 %v3514_v17  ;;  %4745 = vmatpush1.bf16.msra.mxu0 %v8080_v61  ;;  %v8095_v45 = vld [vmem:[%s12120_s4 + $0x1a0] ss:$8 sps:$4 sm:$0xff]   ;;  %v8100_v15 = vld [vmem:[%s12120_s4 + $0x20c] ss:$8 sps:$4 sm:$0xff]  }
 0x3f7   : > { %v10421_v33 = vpack.c.bf16 %v3418_v43, %v3416_v36  ;;  %4355 = vmatpush1.bf16.msra.mxu1 %v8083_v18  ;;  %4746 = vmatprep.subr.bf16.mxu0 %v8088_v22  ;;  %v8092_v18 = vld [vmem:[%s12120_s4 + $0x218] ss:$8 sps:$4 sm:$0xff]   ;;  %v3529_v22 = vor.u32 %v3527_v25, %v3513_v12  ;;  %v8103_v43 = vld [vmem:[%s12120_s4 + $0x194] ss:$8 sps:$4 sm:$0xff]  }
 0x3f8   : > { %7277 = vmatprep.mubr.msk.bf16.mxu0 %vm3752_vm8, %v10416_v4  ;;  %v3539_v7 = vshll.u32 %v10416_v4, 16  ;;  %4356 = vmatprep.subr.bf16.mxu1 %v8091_v19  ;;  %v3363_v29 = vsel %vm3356_vm7, %v7764_v26, %v7765_v6  ;;  %v3421_v32 = vmax.f32 %v10255_v20, %v7765_v6 }
 0x3f9   : > { %4077 = vmatmul.mubr.bf16.gmra.mxu0 %v10421_v33  ;;  %v7768_v38 = vpop.permute.xlu1 %7767  ;;  %v3531_v49 = vshll.u32 %v10421_v33, 16  ;;  %v3420_v42 = vmax.f32 %v10252_v23, %v3363_v29 }
 0x3fa   : > { %v7770_v54 = vunpack.i.h.bf16 %v7768_v38  ;;  %v7769_v61 = vunpack.i.l.bf16 %v7768_v38  ;;  %v3541_v16 = vrot.slane %v3539_v7, 1  ;;  %4747 = vmatpush1.bf16.msra.mxu0 %v8086_v60  ;;  %v8106_v38 = vld [vmem:[%s12120_s4 + $0x1fc] ss:$8 sps:$4 sm:$0xff]  }
 0x3fb   : > { %v3533_v9 = vrot.slane %v3531_v49, 1  ;;  %4357 = vmatpush1.bf16.msra.mxu1 %v8089_v5  ;;  %4748 = vmatprep.subr.bf16.mxu0 %v8094_v47  ;;  %v8098_v47 = vld [vmem:[%s12120_s4 + $0x208] ss:$8 sps:$4 sm:$0xff]  }
 0x3fc   : > { %v3423_v19 = vmax.f32 %v10262_v28, %v7770_v54  ;;  %v3364_v12 = vsel %vm3356_vm7, %v7769_v61, %v7770_v54  ;;  %v3542_v36 = vsel %vm550_vm0, %v3537_v10, %v3541_v16  ;;  %4358 = vmatprep.subr.bf16.mxu1 %v8097_v52  ;;  %v4177_v28 = vrot.slane %v10344_v56, 1  ;;  %v8101_v52 = vld [vmem:[%s12120_s4 + $0x190] ss:$8 sps:$4 sm:$0xff]   ;;  %v8109_v54 = vld [vmem:[%s12120_s4 + $0x184] ss:$8 sps:$4 sm:$0xff]  }
 0x3fd   : > { %v3422_v17 = vmax.f32 %v10259_v13, %v3364_v12  ;;  %7245 = vmatprep.mubr.msk.bf16.mxu1 %vm3752_vm8, %v3542_v36  ;;  %v7773_v26 = vpop.permute.xlu0 %7772  ;;  %v3534_v20 = vsel %vm550_vm0, %v3529_v22, %v3533_v9  ;;  %v3551_v13 = vshrl.u32 %v10416_v4, 16  ;;  %v7355_v61 = vld [vmem:[%s12120_s4 + $0x298] sm:$0x11] }
 0x3fe   : > { %v10470_v6 = vpack.c.bf16 %v3423_v19, %v3421_v32  ;;  %v7775_v60 = vunpack.i.h.bf16 %v7773_v26  ;;  %v7774_v5 = vunpack.i.l.bf16 %v7773_v26  ;;  %3827 = vmatmul.mubr.bf16.gmra.mxu1 %v3534_v20  ;;  %4749 = vmatpush1.bf16.msra.mxu0 %v8092_v18  ;;  %v10487_v10 = vsel %vm1279_vm2, %v4177_v28, %v4178_v48 }
 0x3ff   : > { %v10475_v23 = vpack.c.bf16 %v3422_v17, %v3420_v42  ;;  %4359 = vmatpush1.bf16.msra.mxu1 %v8095_v45  ;;  %4750 = vmatprep.subr.bf16.mxu0 %v8100_v15  ;;  %v3553_v22 = vor.u32 %v3551_v13, %v3541_v16  ;;  %v3543_v45 = vshrl.u32 %v10421_v33, 16  ;;  %v8107_v17 = vld [vmem:[%s12120_s4 + $0x180] ss:$8 sps:$4 sm:$0xff]   ;;  %v7377_v26 = vcombine.high %v7355_v61, %v7355_v61 }
 0x400   : > { %7278 = vmatprep.mubr.msk.bf16.mxu0 %vm3752_vm8, %v10470_v6  ;;  %v3555_v29 = vshll.u32 %v10470_v6, 16  ;;  %4360 = vmatprep.subr.bf16.mxu1 %v8103_v43  ;;  %v3365_v32 = vsel %vm3356_vm7, %v7774_v5, %v7775_v60  ;;  %v8104_v43 = vld [vmem:[%s12120_s4 + $0x1f8] ss:$8 sps:$4 sm:$0xff]   ;;  %v7376_v20 = vcombine.low %v7355_v61, %v7355_v61  ;;  %v3425_v28 = vmax.f32 %v10269_v63, %v7775_v60 }
 0x401   : > { %4087 = vmatmul.mubr.bf16.gmra.mxu0 %v10475_v23  ;;  %v7778_v18 = vpop.permute.xlu1 %7777  ;;  %v12157_v15 = vshll.u32 %v10475_v23, 16  ;;  %v3545_v42 = vor.u32 %v3543_v45, %v3533_v9  ;;  %v8113_v9 = vld [vmem:[%s12120_s4 + $0x174] ss:$8 sps:$4 sm:$0xff]  }
 0x402   : > { %v7780_v19 = vunpack.i.h.bf16 %v7778_v18  ;;  %v7779_v12 = vunpack.i.l.bf16 %v7778_v18  ;;  %v3557_v36 = vrot.slane %v3555_v29, 1  ;;  %4751 = vmatpush1.bf16.msra.mxu0 %v8098_v47 }
 0x403   : > { %v3549_v16 = vrot.slane %v12157_v15, 1  ;;  %4361 = vmatpush1.bf16.msra.mxu1 %v8101_v52  ;;  %4752 = vmatprep.subr.bf16.mxu0 %v8106_v38  ;;  %v3424_v52 = vmax.f32 %v10266_v57, %v3365_v32  ;;  %v3567_v57 = vshrl.u32 %v10470_v6, 16  ;;  %v8117_v32 = vld [vmem:[%s12120_s4 + $0x28c] ss:$8 sps:$4 sm:$0xff]  }
 0x404   : > { %v3427_v5 = vmax.f32 %v10279_v53, %v7780_v19  ;;  %v3366_v47 = vsel %vm3356_vm7, %v7779_v12, %v7780_v19  ;;  %v3558_v18 = vsel %vm550_vm0, %v3553_v22, %v3557_v36  ;;  %4362 = vmatprep.subr.bf16.mxu1 %v8109_v54  ;;  %v8111_v54 = vld [vmem:[%s12120_s4 + $0x170] ss:$8 sps:$4 sm:$0xff]   ;;  %v4183_v12 = vrot.slane %v10421_v33, 1 }
 0x405   : > { %v3426_v38 = vmax.f32 %v10273_v0, %v3366_v47  ;;  %7246 = vmatprep.mubr.msk.bf16.mxu1 %vm3752_vm8, %v3558_v18  ;;  %v7783_v61 = vpop.permute.xlu0 %7782  ;;  %v3550_v63 = vsel %vm550_vm0, %v3545_v42, %v3549_v16  ;;  %v4733_v0 = vsel %vm3777_vm6, %v7376_v20, 0  ;;  %v8120_v42 = vld [vmem:[%s12120_s4 + $0x164] ss:$8 sps:$4 sm:$0xff]   ;;  %v3569_v20 = vor.u32 %v3567_v57, %v3557_v36 }
 0x406   : > { %v10527_v60 = vpack.c.bf16 %v3427_v5, %v3425_v28  ;;  %v7785_v53 = vunpack.i.h.bf16 %v7783_v61  ;;  %v7784_v19 = vunpack.i.l.bf16 %v7783_v61  ;;  %3837 = vmatmul.mubr.bf16.gmra.mxu1 %v3550_v63  ;;  %4753 = vmatpush1.bf16.msra.mxu0 %v8104_v43  ;;  %v12158_v28 = vshrl.u32 %v10475_v23, 16  ;;  %v8118_v63 = vld [vmem:[%s12120_s4 + $0x160] ss:$8 sps:$4 sm:$0xff]  }
 0x407   : > { %v10532_v22 = vpack.c.bf16 %v3426_v38, %v3424_v52  ;;  %4363 = vmatpush1.bf16.msra.mxu1 %v8107_v17  ;;  %7378 = vmatprep.subr.msk.bf16.mxu0 %vm3777_vm6, %v7377_v26  ;;  %v10550_v17 = vld [vmem:[%s12120_s4 + $0x1f0] sm:$0x11] }
 0x408   : > { %7279 = vmatprep.mubr.msk.bf16.mxu0 %vm3752_vm8, %v10527_v60  ;;  %v12156_v43 = vshll.u32 %v10527_v60, 16  ;;  %4364 = vmatprep.subr.bf16.mxu1 %v8113_v9  ;;  %v3367_v47 = vsel %vm3356_vm7, %v7784_v19, %v7785_v53  ;;  %v8115_v38 = vld [vmem:[%s12120_s4 + $0x288] ss:$8 sps:$4 sm:$0xff]   ;;  %v3561_v61 = vor.u32 %v12158_v28, %v3549_v16  ;;  %v8123_v19 = vld [vmem:[%s12120_s4 + $0x27c] ss:$8 sps:$4 sm:$0xff]   ;;  %v10580_v16 = vsel %vm1279_vm2, %v4178_v48, %v4183_v12 }
 0x409   : > { %4097 = vmatmul.mubr.bf16.gmra.mxu0 %v10532_v22  ;;  %v7788_v26 = vpop.permute.xlu1 %7787  ;;  %v12155_v5 = vshll.u32 %v10532_v22, 16  ;;  %v3428_v15 = vmax.f32 %v10283_v40, %v3367_v47  ;;  %v3583_v40 = vshrl.u32 %v10527_v60, 16 }
 0x40a   : > { %v7790_v18 = vunpack.i.h.bf16 %v7788_v26  ;;  %v7789_v9 = vunpack.i.l.bf16 %v7788_v26  ;;  %v3573_v52 = vrot.slane %v12156_v43, 1  ;;  %4765 = vmatpush2.bf16.msra.mxu0 %v4733_v0  ;;  %v7324_v0 = vcombine.low %v10550_v17, %v10550_v17  ;;  %v8126_v43 = vld [vmem:[%s12120_s4 + $0x154] ss:$8 sps:$4 sm:$0xff]  }
 0x40b   : > { %v3565_v36 = vrot.slane %v12155_v5, 1  ;;  %4365 = vmatpush1.bf16.msra.mxu1 %v8111_v54  ;;  %4766 = vmatprep.subr.bf16.mxu0 %v8117_v32  ;;  %v3429_v54 = vmax.f32 %v10286_v62, %v7785_v53 }
 0x40c   : > { %v3431_v32 = vmax.f32 %v10293_v21, %v7790_v18  ;;  %v3368_v26 = vsel %vm3356_vm7, %v7789_v9, %v7790_v18  ;;  %v3574_v5 = vsel %vm550_vm0, %v3569_v20, %v3573_v52  ;;  %4366 = vmatprep.subr.bf16.mxu1 %v8120_v42  ;;  %v8121_v42 = vld [vmem:[%s12120_s4 + $0x278] ss:$8 sps:$4 sm:$0xff]   ;;  %v4349_v9 = vsel %vm3777_vm6, %v7324_v0, 0 }
 0x40d   : > { %v3430_v28 = vmax.f32 %v10290_v2, %v3368_v26  ;;  %7247 = vmatprep.mubr.msk.bf16.mxu1 %vm3752_vm8, %v3574_v5  ;;  %v7793_v48 = vpop.permute.xlu0 %7792  ;;  %v3566_v62 = vsel %vm550_vm0, %v3561_v61, %v3565_v36  ;;  %v8124_v2 = vld [vmem:[%s12120_s4 + $0x150] ss:$8 sps:$4 sm:$0xff]   ;;  %v7325_v5 = vcombine.high %v10550_v17, %v10550_v17  ;;  %v3585_v17 = vor.u32 %v3583_v40, %v3573_v52 }
 0x40e   : > { %v10593_v53 = vpack.c.bf16 %v3431_v32, %v3429_v54  ;;  %v7795_v21 = vunpack.i.h.bf16 %v7793_v48  ;;  %v7794_v18 = vunpack.i.l.bf16 %v7793_v48  ;;  %3847 = vmatmul.mubr.bf16.gmra.mxu1 %v3566_v62  ;;  %4767 = vmatpush2.bf16.msra.mxu0 %v8115_v38  ;;  %v3575_v61 = vshrl.u32 %v10532_v22, 16 }
 0x40f   : > { %v10598_v20 = vpack.c.bf16 %v3430_v28, %v3428_v15  ;;  %4367 = vmatpush1.bf16.msra.mxu1 %v8118_v63  ;;  %4768 = vmatprep.subr.bf16.mxu0 %v8123_v19  ;;  %v10611_v15 = vrot.slane %v3516_v1, 1  ;;  %v10615_v28 = vrot.slane %v3518_v41, 2  ;;  %v10625_v1 = vrot.slane %v3504_v58, 1 }
 0x410   : > { %7280 = vmatprep.mubr.msk.bf16.mxu0 %vm3752_vm8, %v10593_v53  ;;  %v3587_v47 = vshll.u32 %v10593_v53, 16  ;;  %4368 = vmatprep.subr.bf16.mxu1 %v8126_v43  ;;  %v3369_v41 = vsel %vm3356_vm7, %v7794_v18, %v7795_v21  ;;  %v3577_v54 = vor.u32 %v3575_v61, %v3565_v36  ;;  %v10636_v32 = vrot.slane %v3506_v14, 2  ;;  %v8131_v36 = vld [vmem:[%s12120_s4 + $0x1e4] ss:$8 sps:$4 sm:$0xff]  }
 0x411   : > { %4107 = vmatmul.mubr.bf16.gmra.mxu0 %v10598_v20  ;;  %v7798_v38 = vpop.permute.xlu1 %7797  ;;  %v3579_v63 = vshll.u32 %v10598_v20, 16  ;;  %v4187_v58 = vrot.slane %v10475_v23, 1  ;;  %v3433_v26 = vmax.f32 %v10300_v50, %v7795_v21 }
 0x412   : > { %v7800_v19 = vunpack.i.h.bf16 %v7798_v38  ;;  %v7799_v43 = vunpack.i.l.bf16 %v7798_v38  ;;  %v3589_v0 = vrot.slane %v3587_v47, 1  ;;  %4769 = vmatpush2.bf16.msra.mxu0 %v8121_v42  ;;  %v3432_v42 = vmax.f32 %v10297_v8, %v3369_v41 }
 0x413   : > { %v3581_v52 = vrot.slane %v3579_v63, 1  ;;  %4369 = vmatpush1.bf16.msra.mxu1 %v8124_v2  ;;  %v4532_v41 = vrot.slane %v3523_v30, 2  ;;  %v8134_v30 = vld [vmem:[%s12120_s4 + $0x1d4] ss:$8 sps:$4 sm:$0xff]  }
 0x414   : > { %v3435_v48 = vmax.f32 %v10307_v24, %v7800_v19  ;;  %v3370_v62 = vsel %vm3356_vm7, %v7799_v43, %v7800_v19  ;;  %v3590_v18 = vsel %vm550_vm0, %v3585_v17, %v3589_v0  ;;  %7326 = vmatprep.subr.msk.bf16.mxu1 %vm3777_vm6, %v7325_v5  ;;  %v10658_v5 = vsel %vm1279_vm2, %v4183_v12, %v4187_v58  ;;  %v8129_v19 = vld [vmem:[%s12120_s4 + $0x1e0] ss:$8 sps:$4 sm:$0xff]  }
 0x415   : > { %v3434_v14 = vmax.f32 %v10304_v55, %v3370_v62  ;;  %7248 = vmatprep.mubr.msk.bf16.mxu1 %vm3752_vm8, %v3590_v18  ;;  %v7803_v2 = vpop.permute.xlu0 %7802  ;;  %v3582_v50 = vsel %vm550_vm0, %v3577_v54, %v3581_v52  ;;  %v3599_v55 = vshrl.u32 %v10593_v53, 16  ;;  %v4531_v17 = vrot.slane %v3535_v39, 1 }
 0x416   : > { %v10651_v24 = vpack.c.bf16 %v3435_v48, %v3433_v26  ;;  %v7805_v21 = vunpack.i.h.bf16 %v7803_v2  ;;  %v7804_v38 = vunpack.i.l.bf16 %v7803_v2  ;;  %3857 = vmatmul.mubr.bf16.gmra.mxu1 %v3582_v50  ;;  %v4530_v43 = vor.u32 %v10615_v28, %v10611_v15  ;;  %v8132_v2 = vld [vmem:[%s12120_s4 + $0x1d0] ss:$8 sps:$4 sm:$0xff]  }
 0x417   : > { %v10660_v8 = vpack.c.bf16 %v3434_v14, %v3432_v42  ;;  %4381 = vmatpush2.bf16.msra.mxu1 %v4349_v9  ;;  %v4523_v54 = vor.u32 %v10636_v32, %v10625_v1  ;;  %v3601_v9 = vor.u32 %v3599_v55, %v3589_v0  ;;  %v3591_v26 = vshrl.u32 %v10598_v20, 16 }
 0x418   : > { %7281 = vmatprep.mubr.msk.bf16.mxu0 %vm3752_vm8, %v10651_v24  ;;  %v12159_v12 = vshll.u32 %v10651_v24, 16  ;;  %4382 = vmatprep.subr.bf16.mxu1 %v8131_v36  ;;  %v4181_v15 = vrot.slane %v10368_v31, 1  ;;  %v3371_v28 = vsel %vm3356_vm7, %v7804_v38, %v7805_v21  ;;  %v10693_v0 = vor.u32 %v4532_v41, %v4531_v17  ;;  %v8137_v17 = vld [vmem:[%s12120_s4 + $0x314] ss:$8 sps:$4 sm:$0xff]  }
 0x419   : > { %4117 = vmatmul.mubr.bf16.gmra.mxu0 %v10660_v8  ;;  %v7808_v39 = vpop.permute.xlu1 %7807  ;;  %v12160_v48 = vshll.u32 %v10660_v8, 16  ;;  %v3593_v42 = vor.u32 %v3591_v26, %v3581_v52  ;;  %v4191_v50 = vrot.slane %v10532_v22, 1  ;;  %v3437_v38 = vmax.f32 %v10314_v37, %v7805_v21 }
 0x41a   : > { %v7810_v62 = vunpack.i.h.bf16 %v7808_v39  ;;  %v7809_v18 = vunpack.i.l.bf16 %v7808_v39  ;;  %v3605_v36 = vrot.slane %v12159_v12, 1  ;;  %v4524_v41 = vrot.slane %v3527_v25, 1 }
 0x41b   : > { %v3597_v14 = vrot.slane %v12160_v48, 1  ;;  %4383 = vmatpush2.bf16.msra.mxu1 %v8129_v19  ;;  %v3436_v19 = vmax.f32 %v10311_v46, %v3371_v28  ;;  %v4534_v46 = vsel %vm1683_vm1, %v4530_v43, %v10693_v0  ;;  %v10725_v25 = vsel %vm1279_vm2, %v4187_v58, %v4191_v50 }
 0x41c   : > { %v3439_v39 = vmax.f32 %v10321_v51, %v7810_v62  ;;  %v3372_v12 = vsel %vm3356_vm7, %v7809_v18, %v7810_v62  ;;  %v3606_v52 = vsel %vm550_vm0, %v3601_v9, %v3605_v36  ;;  %4384 = vmatprep.subr.bf16.mxu1 %v8134_v30  ;;  %v4525_v62 = vrot.slane %v3511_v3, 2 }
 0x41d   : > { %v3438_v48 = vmax.f32 %v10318_v59, %v3372_v12  ;;  %7249 = vmatprep.mubr.msk.bf16.mxu1 %vm3752_vm8, %v3606_v52  ;;  %v7813_v37 = vpop.permute.xlu0 %7812  ;;  %v3598_v51 = vsel %vm550_vm0, %v3593_v42, %v3597_v14  ;;  %v4539_v59 = vrot.slane %v3551_v13, 1  ;;  %v3615_v3 = vshrl.u32 %v10651_v24, 16 }
 0x41e   : > { %v10712_v21 = vpack.c.bf16 %v3439_v39, %v3437_v38  ;;  %v7815_v9 = vunpack.i.h.bf16 %v7813_v37  ;;  %v7814_v30 = vunpack.i.l.bf16 %v7813_v37  ;;  %3867 = vmatmul.mubr.bf16.gmra.mxu1 %v3598_v51  ;;  %v4199_v32 = vrot.slane %v10660_v8, 1 }
 0x41f   : > { %v10716_v18 = vpack.c.bf16 %v3438_v48, %v3436_v19  ;;  %4385 = vmatpush2.bf16.msra.mxu1 %v8132_v2  ;;  %v3607_v48 = vshrl.u32 %v10660_v8, 16  ;;  %v3617_v2 = vor.u32 %v3615_v3, %v3605_v36 }
 0x420   : > { %v3441_v12 = vmax.f32 %v10328_v27, %v7815_v9  ;;  %v3373_v28 = vsel %vm3356_vm7, %v7814_v30, %v7815_v9  ;;  %7282 = vmatprep.mubr.msk.bf16.mxu0 %vm3752_vm8, %v10712_v21  ;;  %v3619_v43 = vshll.u32 %v10712_v21, 16  ;;  %5082 = vmatprep.subr.bf16.mxu1 %v8137_v17  ;;  %v4540_v27 = vrot.slane %v3539_v7, 2 }
 0x421   : > { %v3440_v13 = vmax.f32 %v10325_v34, %v3373_v28  ;;  %4127 = vmatmul.mubr.bf16.gmra.mxu0 %v10716_v18  ;;  %v3611_v58 = vshll.u32 %v10716_v18, 16  ;;  %v4526_v34 = vor.u32 %v4525_v62, %v4524_v41  ;;  %v3609_v52 = vor.u32 %v3607_v48, %v3597_v14 }
 0x422   : > { %v10739_v42 = vpack.c.bf16 %v3441_v12, %v3441_v12  ;;  %7379 = vmatprep.mubr.msk.bf16.mxu0 %vm3752_vm8, %v4534_v46  ;;  %v3621_v38 = vrot.slane %v3619_v43, 1  ;;  %v4535_v7 = vrot.slane %v3543_v45, 1  ;;  %v3631_v37 = vshrl.u32 %v10712_v21, 16 }
 0x423   : > { %v10746_v39 = vpack.c.bf16 %v3440_v13, %v3440_v13  ;;  %v3613_v17 = vrot.slane %v3611_v58, 1  ;;  %v4536_v41 = vrot.slane %v3531_v49, 2  ;;  %v4541_v14 = vor.u32 %v4540_v27, %v4539_v59 }
 0x424   : > { %v3622_v19 = vsel %vm550_vm0, %v3617_v2, %v3621_v38  ;;  %v3635_v36 = vshll.u32 %v10739_v42, 16  ;;  %v4547_v30 = vrot.slane %v3567_v57, 1  ;;  %v3633_v45 = vor.u32 %v3631_v37, %v3621_v38 }
 0x425   : > { %7250 = vmatprep.mubr.msk.bf16.mxu1 %vm3752_vm8, %v3622_v19  ;;  %v3614_v51 = vsel %vm550_vm0, %v3609_v52, %v3613_v17  ;;  %v12161_v9 = vshll.u32 %v10746_v39, 16  ;;  %v4548_v49 = vrot.slane %v3555_v29, 2  ;;  %v4195_v46 = vrot.slane %v10598_v20, 1 }
 0x426   : > { %3877 = vmatmul.mubr.bf16.gmra.mxu1 %v3614_v51  ;;  %v3637_v62 = vrot.slane %v3635_v36, 1  ;;  %v4180_v12 = vrot.slane %v10339_v11, 1  ;;  %v4527_v57 = vsel %vm1683_vm1, %v4523_v54, %v4526_v34  ;;  %v4908_v13 = vrot.slane %v10339_v11, 2 }
 0x427   : > { %v10778_v28 = vsel %vm1279_vm2, %v4191_v50, %v4195_v46  ;;  %v4542_v29 = vsel %vm1683_vm1, %v10693_v0, %v4541_v14  ;;  %v3623_v27 = vshrl.u32 %v10716_v18, 16  ;;  %v3629_v2 = vrot.slane %v12161_v9, 1 }
 0x428   : > { %v3638_v59 = vsel %vm550_vm0, %v3633_v45, %v3637_v62  ;;  %v10787_v38 = vor.u32 %v4536_v41, %v4535_v7  ;;  %v4182_v1 = vsel %vm1279_vm2, %v4180_v12, %v4181_v15  ;;  %v10793_v11 = vor.u32 %v4548_v49, %v4547_v30 }
 0x429   : > { %7251 = vmatprep.mubr.msk.bf16.mxu1 %vm3752_vm8, %v3638_v59  ;;  %4771 = vmatmul.mubr.bf16.vlgmr.msra.gmra.mxu0 %v4527_v57  ;;  %v4905_v54 = vrot.slane %v10344_v56, 2  ;;  %v3625_v0 = vor.u32 %v3623_v27, %v3613_v17  ;;  %v12380_v50 = vshrl.u32 %v10475_v23, 16  ;;  %v12381_v7 = vshll.u32 %v10475_v23, 16 }
 0x42a   : > { %7380 = vmatprep.mubr.msk.bf16.mxu0 %vm3752_vm8, %v4542_v29  ;;  %v4203_v41 = vrot.slane %v10716_v18, 1  ;;  %v4185_v51 = vrot.slane %v10416_v4, 1  ;;  %v4555_v30 = vrot.slane %v3583_v40, 1  ;;  %v12382_v45 = vshll.u32 %v10527_v60, 16 }
 0x42b   : > { %v4543_v52 = vrot.slane %v12380_v50, 1  ;;  %v4544_v19 = vrot.slane %v12381_v7, 2  ;;  %v10810_v56 = vsel %vm1279_vm2, %v4195_v46, %v4199_v32  ;;  %v3630_v17 = vsel %vm550_vm0, %v3625_v0, %v3629_v2 }
 0x42c   : > { %v4556_v62 = vrot.slane %v12382_v45, 2  ;;  %v4538_v49 = vsel %vm1683_vm1, %v4526_v34, %v10787_v38  ;;  %v10816_v12 = vsel %vm1279_vm2, %v4199_v32, %v4203_v41  ;;  %v4207_v59 = vrot.slane %v10746_v39, 1  ;;  %v8135_v45 = vld [vmem:[%s12120_s4 + $0x310] ss:$8 sps:$4 sm:$0xff]  }
 0x42d   : > { %v4550_v40 = vsel %vm1683_vm1, %v4541_v14, %v10793_v11  ;;  %v4909_v57 = vrot.slane %v10368_v31, 2  ;;  %v4906_v29 = vrot.slane %v10373_v44, 2  ;;  %v4913_v46 = vrot.slane %v10416_v4, 2  ;;  %v8149_v4 = vld [vmem:[%s12120_s4 + $0x2d4] ss:$8 sps:$4 sm:$0xff]  }
 0x42e   : > { %3887 = vmatmul.mubr.bf16.gmra.mxu1 %v3630_v17  ;;  %v10825_v2 = vor.u32 %v4544_v19, %v4543_v52  ;;  %v10828_v34 = vsel %vm1279_vm2, %v4203_v41, %v4207_v59  ;;  %v4911_v32 = vrot.slane %v10421_v33, 2  ;;  %v4917_v0 = vrot.slane %v10470_v6, 2  ;;  %v8140_v59 = vld [vmem:[%s12120_s4 + $0x304] ss:$8 sps:$4 sm:$0xff]  }
 0x42f   : > { %7327 = vmatprep.mubr.msk.bf16.mxu1 %vm3752_vm8, %v4182_v1  ;;  %v10832_v50 = vor.u32 %v4556_v62, %v4555_v30  ;;  %v10835_v14 = vsel %vm2123_vm3, %v4908_v13, %v4909_v57  ;;  %v10838_v44 = vsel %vm2123_vm3, %v4905_v54, %v4906_v29  ;;  %v10841_v7 = vsel %vm2123_vm3, %v4909_v57, %v4913_v46 }
 0x430   : > { %v10844_v1 = vsel %vm2123_vm3, %v4906_v29, %v4911_v32  ;;  %v10847_v52 = vsel %vm2123_vm3, %v4913_v46, %v4917_v0  ;;  %v4915_v33 = vrot.slane %v10475_v23, 2  ;;  %v4921_v19 = vrot.slane %v10527_v60, 2 }
 0x431   : > { %4781 = vmatmul.mubr.bf16.gmra.mxu0 %v4538_v49  ;;  %v4919_v13 = vrot.slane %v10532_v22, 2  ;;  %v4925_v54 = vrot.slane %v10593_v53, 2  ;;  %v4923_v41 = vrot.slane %v10598_v20, 2  ;;  %v4929_v30 = vrot.slane %v10651_v24, 2 }
 0x432   : > { %7381 = vmatprep.mubr.msk.bf16.mxu0 %vm3752_vm8, %v4550_v40  ;;  %v10860_v62 = vsel %vm2123_vm3, %v4911_v32, %v4915_v33  ;;  %v10863_v23 = vsel %vm2123_vm3, %v4917_v0, %v4921_v19  ;;  %v4927_v17 = vrot.slane %v10660_v8, 2  ;;  %v4933_v49 = vrot.slane %v10712_v21, 2 }
 0x433   : > { %v10871_v40 = vsel %vm2123_vm3, %v4915_v33, %v4919_v13  ;;  %v10874_v57 = vsel %vm2123_vm3, %v4921_v19, %v4925_v54  ;;  %v10877_v29 = vsel %vm2123_vm3, %v4919_v13, %v4923_v41  ;;  %v10880_v46 = vsel %vm2123_vm3, %v4925_v54, %v4929_v30  ;;  %v8138_v54 = vld [vmem:[%s12120_s4 + $0x300] ss:$8 sps:$4 sm:$0xff]  }
 0x434   : > { %v10883_v32 = vsel %vm2123_vm3, %v4923_v41, %v4927_v17  ;;  %v10886_v0 = vsel %vm2123_vm3, %v4929_v30, %v4933_v49  ;;  %v4931_v9 = vrot.slane %v10716_v18, 2  ;;  %v4937_v33 = vrot.slane %v10739_v42, 2 }
 0x435   : > { %v4186_v19 = vsel %vm1279_vm2, %v4181_v15, %v4185_v51  ;;  %v4935_v13 = vrot.slane %v10746_v39, 2  ;;  %v4546_v31 = vsel %vm1683_vm1, %v10787_v38, %v10825_v2  ;;  %v4551_v15 = vrot.slane %v3575_v61, 1 }
 0x436   : > { %4387 = vmatmul.mubr.bf16.vlgmr.msra.gmra.mxu1 %v10487_v10  ;;  %v10902_v41 = vsel %vm2123_vm3, %v4927_v17, %v4931_v9  ;;  %v10905_v10 = vsel %vm2123_vm3, %v4933_v49, %v4937_v33  ;;  %v12383_v30 = vshll.u32 %v10532_v22, 16  ;;  %v4558_v49 = vsel %vm1683_vm1, %v10793_v11, %v10832_v50  ;;  %v8146_v11 = vld [vmem:[%s12120_s4 + $0x2e4] ss:$8 sps:$4 sm:$0xff]  }
 0x437   : > { %7328 = vmatprep.mubr.msk.bf16.mxu1 %vm3752_vm8, %v4186_v19  ;;  %5083 = vmatpush1.bf16.msra.mxu1 %v8135_v45  ;;  %v8143_v19 = vld [vmem:[%s12120_s4 + $0x2f4] ss:$8 sps:$4 sm:$0xff]   ;;  %v10918_v17 = vsel %vm2123_vm3, %v4931_v9, %v4935_v13  ;;  %v4563_v38 = vrot.slane %v3599_v55, 1  ;;  %v4564_v22 = vrot.slane %v3587_v47, 2  ;;  %v4189_v61 = vrot.slane %v10470_v6, 1 }
 0x438   : > { %v4552_v45 = vrot.slane %v12383_v30, 2  ;;  %5084 = vmatprep.subr.bf16.mxu1 %v8140_v59  ;;  %v8141_v9 = vld [vmem:[%s12120_s4 + $0x2f0] ss:$8 sps:$4 sm:$0xff]   ;;  %v8144_v6 = vld [vmem:[%s12120_s4 + $0x2e0] ss:$8 sps:$4 sm:$0xff]   ;;  %v4559_v13 = vrot.slane %v3591_v26, 1 }
 0x439   : > { %4791 = vmatmul.mubr.bf16.gmra.mxu0 %v4546_v31  ;;  %v4565_v33 = vor.u32 %v4564_v22, %v4563_v38  ;;  %v4190_v47 = vsel %vm1279_vm2, %v4185_v51, %v4189_v61  ;;  %v4193_v20 = vrot.slane %v10527_v60, 1  ;;  %v8150_v60 = vld [vmem:[%s12120_s4 + $0x2c0] ss:$8 sps:$4 sm:$0xff]   ;;  %v4579_v22 = vrot.slane %v3631_v37, 1 }
 0x43a   : > { %7382 = vmatprep.mubr.msk.bf16.mxu0 %vm3752_vm8, %v4558_v49  ;;  %v4553_v59 = vor.u32 %v4552_v45, %v4551_v15  ;;  %v4567_v45 = vrot.slane %v3607_v48, 1  ;;  %v4197_v48 = vrot.slane %v10593_v53, 1  ;;  %v7407_v37 = vld [vmem:[%s12120_s4 + $0x340] sm:$0x11] }
 0x43b   : > { %5085 = vmatpush1.bf16.msra.mxu1 %v8138_v54  ;;  %v4566_v51 = vsel %vm1683_vm1, %v10832_v50, %v4565_v33  ;;  %v4571_v54 = vrot.slane %v3615_v3, 1  ;;  %v8152_v50 = vld [vmem:[%s12120_s4 + $0x2c4] ss:$8 sps:$4 sm:$0xff]   ;;  %v4194_v3 = vsel %vm1279_vm2, %v4189_v61, %v4193_v20  ;;  %v4580_v61 = vrot.slane %v3619_v43, 2 }
 0x43c   : > { %5086 = vmatprep.subr.bf16.mxu1 %v8143_v19  ;;  %v4554_v55 = vsel %vm1683_vm1, %v10825_v2, %v4553_v59  ;;  %v12384_v2 = vshll.u32 %v10651_v24, 16  ;;  %v12385_v19 = vshll.u32 %v10660_v8, 16  ;;  %v8153_v8 = vld [vmem:[%s12120_s4 + $0x2b0] ss:$8 sps:$4 sm:$0xff]   ;;  %v4198_v53 = vsel %vm1279_vm2, %v4193_v20, %v4197_v48 }
 0x43d   : > { %v4581_v43 = vor.u32 %v4580_v61, %v4579_v22 }
 0x43e   : > { %4397 = vmatmul.mubr.bf16.gmra.mxu1 %v10580_v16  ;;  %v4560_v16 = vrot.slane %v3579_v63, 2  ;;  %v4572_v31 = vrot.slane %v12384_v2, 2  ;;  %v8147_v63 = vld [vmem:[%s12120_s4 + $0x2d0] ss:$8 sps:$4 sm:$0xff]   ;;  %v4568_v49 = vrot.slane %v12385_v19, 2  ;;  %v12387_v19 = vmov 0  }
 0x43f   : > { %7329 = vmatprep.mubr.msk.bf16.mxu1 %vm3752_vm8, %v4190_v47  ;;  %5087 = vmatpush1.bf16.msra.mxu1 %v8141_v9  ;;  %v7429_v47 = vcombine.high %v7407_v37, %v7407_v37 }
 0x440   : > { %5088 = vmatprep.subr.bf16.mxu1 %v8146_v11  ;;  %v4561_v26 = vor.u32 %v4560_v16, %v4559_v13  ;;  %v4573_v15 = vor.u32 %v4572_v31, %v4571_v54  ;;  %v4569_v9 = vor.u32 %v4568_v49, %v4567_v45  ;;  %v4589_v11 = vshrl.u32 %v10739_v42, 16 }
 0x441   : > { %4801 = vmatmul.mubr.bf16.gmra.mxu0 %v4554_v55  ;;  %v4575_v55 = vrot.slane %v3623_v27, 1  ;;  %v4576_v13 = vrot.slane %v3611_v58, 2  ;;  %v4201_v54 = vrot.slane %v10651_v24, 1  ;;  %v4583_v27 = vshrl.u32 %v10746_v39, 16  ;;  %v8163_v58 = vld [vmem:[%s12120_s4 + $0x334] ss:$8 sps:$4 sm:$0xff]  }
 0x442   : > { %7383 = vmatprep.mubr.msk.bf16.mxu0 %vm3752_vm8, %v4566_v51  ;;  %v4562_v30 = vsel %vm1683_vm1, %v4553_v59, %v4561_v26  ;;  %v4574_v38 = vsel %vm1683_vm1, %v4565_v33, %v4573_v15  ;;  %v8158_v59 = vld [vmem:[%s12120_s4 + $0x2a4] ss:$8 sps:$4 sm:$0xff]   ;;  %v8156_v33 = vld [vmem:[%s12120_s4 + $0x2a0] ss:$8 sps:$4 sm:$0xff]   ;;  %v4582_v16 = vsel %vm1683_vm1, %v4573_v15, %v4581_v43  ;;  %v4592_v51 = vrot.slane %v3635_v36, 2 }
 0x443   : > { %5089 = vmatpush1.bf16.msra.mxu1 %v8144_v6  ;;  %v4570_v6 = vsel %vm1683_vm1, %v4561_v26, %v4569_v9  ;;  %v4577_v2 = vor.u32 %v4576_v13, %v4575_v55  ;;  %v4202_v36 = vsel %vm1279_vm2, %v4197_v48, %v4201_v54  ;;  %v8161_v24 = vld [vmem:[%s12120_s4 + $0x330] ss:$8 sps:$4 sm:$0xff]   ;;  %v12386_v26 = vshll.u32 %v10746_v39, 16 }
 0x444   : > { %5090 = vmatprep.subr.bf16.mxu1 %v8149_v4  ;;  %v4591_v4 = vrot.slane %v4589_v11, 1 }
 0x445   : > { %v4578_v20 = vsel %vm1683_vm1, %v4569_v9, %v4577_v2 }
 0x446   : > { %4407 = vmatmul.mubr.bf16.gmra.mxu1 %v10658_v5  ;;  %v8155_v5 = vld [vmem:[%s12120_s4 + $0x2b4] ss:$8 sps:$4 sm:$0xff]   ;;  %v4593_v31 = vor.u32 %v4592_v51, %v4591_v4 }
 0x447   : > { %7330 = vmatprep.mubr.msk.bf16.mxu1 %vm3752_vm8, %v4194_v3  ;;  %5091 = vmatpush1.bf16.msra.mxu1 %v8147_v63  ;;  %v4585_v63 = vrot.slane %v4583_v27, 1  ;;  %v4205_v3 = vrot.slane %v10712_v21, 1  ;;  %v4209_v21 = vrot.slane %v10739_v42, 1 }
 0x448   : > { %5092 = vmatprep.subr.bf16.mxu1 %v8152_v50  ;;  %v4586_v50 = vrot.slane %v12386_v26, 2  ;;  %v4594_v15 = vsel %vm1683_vm1, %v4581_v43, %v4593_v31 }
 0x449   : > { %4811 = vmatmul.mubr.bf16.gmra.mxu0 %v4562_v30  ;;  %v4206_v39 = vsel %vm1279_vm2, %v4201_v54, %v4205_v3  ;;  %v4210_v49 = vsel %vm1279_vm2, %v4205_v3, %v4209_v21 }
 0x44a   : > { %7384 = vmatprep.mubr.msk.bf16.mxu0 %vm3752_vm8, %v4574_v38  ;;  %v4587_v30 = vor.u32 %v4586_v50, %v4585_v63 }
 0x44b   : > { %5093 = vmatpush1.bf16.msra.mxu1 %v8150_v60  ;;  %v8164_v60 = vld [vmem:[%s12120_s4 + $0x320] ss:$8 sps:$4 sm:$0xff]  }
 0x44c   : > { %5094 = vmatprep.subr.bf16.mxu1 %v8155_v5  ;;  %v4588_v45 = vsel %vm1683_vm1, %v4577_v2, %v4587_v30 }
 0x44e   : > { %4417 = vmatmul.mubr.bf16.gmra.mxu1 %v10725_v25  ;;  %v7428_v25 = vcombine.low %v7407_v37, %v7407_v37 }
 0x44f   : > { %7331 = vmatprep.mubr.msk.bf16.mxu1 %vm3752_vm8, %v4198_v53  ;;  %5095 = vmatpush1.bf16.msra.mxu1 %v8153_v8 }
 0x450   : > { %5096 = vmatprep.subr.bf16.mxu1 %v8158_v59  ;;  %v5077_v18 = vsel %vm3777_vm6, %v7428_v25, 0 }
 0x451   : > { %4821 = vmatmul.mubr.bf16.gmra.mxu0 %v4570_v6 }
 0x452   : > { %7385 = vmatprep.mubr.msk.bf16.mxu0 %vm3752_vm8, %v4582_v16 }
 0x453   : > { %5097 = vmatpush1.bf16.msra.mxu1 %v8156_v33 }
 0x454   : > { %7430 = vmatprep.subr.msk.bf16.mxu1 %vm3777_vm6, %v7429_v47 }
 0x456   : > { %4427 = vmatmul.mubr.bf16.gmra.mxu1 %v10778_v28  ;;  %v8166_v28 = vld [vmem:[%s12120_s4 + $0x324] ss:$8 sps:$4 sm:$0xff]  }
 0x457   : > { %7332 = vmatprep.mubr.msk.bf16.mxu1 %vm3752_vm8, %v4202_v36  ;;  %5109 = vmatpush2.bf16.msra.mxu1 %v5077_v18 }
 0x458   : > { %5110 = vmatprep.subr.bf16.mxu1 %v8163_v58 }
 0x459   : > { %4831 = vmatmul.mubr.bf16.gmra.mxu0 %v4578_v20 }
 0x45a   : > { %7386 = vmatprep.mubr.msk.bf16.mxu0 %vm3752_vm8, %v4594_v15 }
 0x45b   : > { %5111 = vmatpush2.bf16.msra.mxu1 %v8161_v24 }
 0x45c   : > { %5112 = vmatprep.subr.bf16.mxu1 %v8166_v28 }
 0x45e   : > { %4437 = vmatmul.mubr.bf16.gmra.mxu1 %v10810_v56 }
 0x45f   : > { %7333 = vmatprep.mubr.msk.bf16.mxu1 %vm3752_vm8, %v4206_v39  ;;  %5113 = vmatpush2.bf16.msra.mxu1 %v8164_v60 }
 0x460   : > { %5901 = vmatprep.subr.bf16.mxu1 %v12387_v19 }
 0x461   : > { %4841 = vmatmul.mubr.bf16.gmra.mxu0 %v4588_v45 }
 0x462   : > { %5562 = vmatprep.mubr.bf16.mxu0 %v12387_v19 }
 0x466   : > { %4447 = vmatmul.mubr.bf16.gmra.mxu1 %v10816_v12 }
 0x467   : > { %7334 = vmatprep.mubr.msk.bf16.mxu1 %vm3752_vm8, %v4210_v49 }
 0x46e   : > { %4457 = vmatmul.mubr.bf16.gmra.mxu1 %v10828_v34 }
 0x46f   : > { %7431 = vmatprep.mubr.msk.bf16.mxu1 %vm3752_vm8, %v10835_v14 }
 0x476   : > { %5115 = vmatmul.mubr.bf16.vlgmr.msra.gmra.mxu1 %v10838_v44 }
 0x477   : > { %7432 = vmatprep.mubr.msk.bf16.mxu1 %vm3752_vm8, %v10841_v7 }
 0x47e   : > { %5125 = vmatmul.mubr.bf16.gmra.mxu1 %v10844_v1 }
 0x47f   : > { %7433 = vmatprep.mubr.msk.bf16.mxu1 %vm3752_vm8, %v10847_v52 }
 0x486   : > { %5135 = vmatmul.mubr.bf16.gmra.mxu1 %v10860_v62 }
 0x487   : > { %7434 = vmatprep.mubr.msk.bf16.mxu1 %vm3752_vm8, %v10863_v23 }
 0x48e   : > { %5145 = vmatmul.mubr.bf16.gmra.mxu1 %v10871_v40 }
 0x48f   : > { %7435 = vmatprep.mubr.msk.bf16.mxu1 %vm3752_vm8, %v10874_v57 }
 0x496   : > { %5155 = vmatmul.mubr.bf16.gmra.mxu1 %v10877_v29 }
 0x497   : > { %7436 = vmatprep.mubr.msk.bf16.mxu1 %vm3752_vm8, %v10880_v46 }
 0x49e   : > { %5165 = vmatmul.mubr.bf16.gmra.mxu1 %v10883_v32 }
 0x49f   : > { %7437 = vmatprep.mubr.msk.bf16.mxu1 %vm3752_vm8, %v10886_v0 }
 0x4a6   : > { %5175 = vmatmul.mubr.bf16.gmra.mxu1 %v10902_v41 }
 0x4a7   : > { %7438 = vmatprep.mubr.msk.bf16.mxu1 %vm3752_vm8, %v10905_v10 }
 0x4a9   : > { %v4058_v42 = vpop.f32.mrf.mxu0 }
 0x4ab   : > { %v4060_v56 = vpop.f32.mrf.mxu0 }
 0x4ad   : > { %v4062_v12 = vpop.f32.mrf.mxu0 }
 0x4ae   : > { %5185 = vmatmul.mubr.bf16.gmra.mxu1 %v10918_v17 }
 0x4af   : > { %v11072_v34 = vpop.f32.mrf.mxu0 }
 0x4b1   : > { %v4068_v14 = vpop.f32.mrf.mxu0 }
 0x4b3   : > { %v4070_v44 = vpop.f32.mrf.mxu0 }
 0x4b5   : > { %v4072_v7 = vpop.f32.mrf.mxu0 }
 0x4b6   : > { %v3818_v1 = vpop.f32.mrf.mxu1 }
 0x4b7   : > { %v11074_v52 = vadd.f32 %v4058_v42, %v3818_v1  ;;  %v11076_v62 = vpop.f32.mrf.mxu0 }
 0x4b8   : > { %v3820_v23 = vpop.f32.mrf.mxu1 }
 0x4b9   : > { %v11078_v40 = vadd.f32 %v4060_v56, %v3820_v23  ;;  %v4078_v57 = vpop.f32.mrf.mxu0 }
 0x4ba   : > { %v3822_v29 = vpop.f32.mrf.mxu1 }
 0x4bb   : > { %v11080_v46 = vadd.f32 %v4062_v12, %v3822_v29  ;;  %v4080_v32 = vpop.f32.mrf.mxu0 }
 0x4bc   : > { %v11082_v0 = vpop.f32.mrf.mxu1 }
 0x4bd   : > { %v4082_v41 = vpop.f32.mrf.mxu0 }
 0x4be   : > { %v3828_v10 = vpop.f32.mrf.mxu1 }
 0x4bf   : > { %v11084_v17 = vadd.f32 %v4068_v14, %v3828_v10  ;;  %v11086_v5 = vpop.f32.mrf.mxu0 }
 0x4c0   : > { %v3830_v38 = vpop.f32.mrf.mxu1 }
 0x4c1   : > { %v11088_v22 = vadd.f32 %v4070_v44, %v3830_v38  ;;  %v4088_v61 = vpop.f32.mrf.mxu0 }
 0x4c2   : > { %v3832_v48 = vpop.f32.mrf.mxu1 }
 0x4c3   : > { %v11090_v8 = vadd.f32 %v4072_v7, %v3832_v48  ;;  %v4090_v9 = vpop.f32.mrf.mxu0 }
 0x4c4   : > { %v11092_v59 = vpop.f32.mrf.mxu1 }
 0x4c5   : > { %v4092_v37 = vpop.f32.mrf.mxu0 }
 0x4c6   : > { %v3838_v43 = vpop.f32.mrf.mxu1 }
 0x4c7   : > { %v11094_v11 = vadd.f32 %v4078_v57, %v3838_v43  ;;  %v11096_v53 = vpop.f32.mrf.mxu0 }
 0x4c8   : > { %v3840_v33 = vpop.f32.mrf.mxu1 }
 0x4c9   : > { %v11098_v47 = vadd.f32 %v4080_v32, %v3840_v33  ;;  %v4098_v6 = vpop.f32.mrf.mxu0 }
 0x4ca   : > { %v3842_v55 = vpop.f32.mrf.mxu1 }
 0x4cb   : > { %v11100_v13 = vadd.f32 %v4082_v41, %v3842_v55  ;;  %v4100_v25 = vpop.f32.mrf.mxu0 }
 0x4cc   : > { %v11102_v16 = vpop.f32.mrf.mxu1 }
 0x4cd   : > { %v4102_v4 = vpop.f32.mrf.mxu0 }
 0x4ce   : > { %v3848_v51 = vpop.f32.mrf.mxu1 }
 0x4cf   : > { %v11104_v54 = vadd.f32 %v4088_v61, %v3848_v51  ;;  %v11106_v2 = vpop.f32.mrf.mxu0 }
 0x4d0   : > { %v3850_v27 = vpop.f32.mrf.mxu1 }
 0x4d1   : > { %v11108_v18 = vadd.f32 %v4090_v9, %v3850_v27  ;;  %v4108_v58 = vpop.f32.mrf.mxu0 }
 0x4d2   : > { %v3852_v31 = vpop.f32.mrf.mxu1 }
 0x4d3   : > { %v11110_v36 = vadd.f32 %v4092_v37, %v3852_v31  ;;  %v4110_v24 = vpop.f32.mrf.mxu0 }
 0x4d4   : > { %v11112_v20 = vpop.f32.mrf.mxu1 }
 0x4d5   : > { %v4112_v63 = vpop.f32.mrf.mxu0 }
 0x4d6   : > { %v3858_v26 = vpop.f32.mrf.mxu1 }
 0x4d7   : > { %v11114_v50 = vadd.f32 %v4098_v6, %v3858_v26  ;;  %v11116_v28 = vpop.f32.mrf.mxu0 }
 0x4d8   : > { %v3860_v15 = vpop.f32.mrf.mxu1 }
 0x4d9   : > { %v11118_v3 = vadd.f32 %v4100_v25, %v3860_v15  ;;  %v4118_v60 = vpop.f32.mrf.mxu0 }
 0x4da   : > { %v3862_v30 = vpop.f32.mrf.mxu1 }
 0x4db   : > { %v11120_v39 = vadd.f32 %v4102_v4, %v3862_v30  ;;  %v4120_v45 = vpop.f32.mrf.mxu0 }
 0x4dc   : > { %v11122_v21 = vpop.f32.mrf.mxu1 }
 0x4dd   : > { %v4122_v49 = vpop.f32.mrf.mxu0 }
 0x4de   : > { %v3868_v42 = vpop.f32.mrf.mxu1 }
 0x4df   : > { %v11124_v56 = vadd.f32 %v4108_v58, %v3868_v42  ;;  %v11126_v12 = vpop.f32.mrf.mxu0 }
 0x4e0   : > { %v3870_v14 = vpop.f32.mrf.mxu1 }
 0x4e1   : > { %v11128_v44 = vadd.f32 %v4110_v24, %v3870_v14  ;;  %v4128_v7 = vpop.f32.mrf.mxu0 }
 0x4e2   : > { %v3872_v1 = vpop.f32.mrf.mxu1 }
 0x4e3   : > { %v11130_v23 = vadd.f32 %v4112_v63, %v3872_v1  ;;  %v4130_v57 = vpop.f32.mrf.mxu0 }
 0x4e4   : > { %v11132_v29 = vpop.f32.mrf.mxu1 }
 0x4e5   : > { %v11134_v32 = vpop.f32.mrf.mxu0 }
 0x4e6   : > { %v3878_v41 = vpop.f32.mrf.mxu1 }
 0x4e7   : > { %v11136_v10 = vadd.f32 %v4118_v60, %v3878_v41  ;;  %v11138_v38 = vpop.f32.mrf.mxu0 }
 0x4e8   : > { %v3880_v61 = vpop.f32.mrf.mxu1 }
 0x4e9   : > { %v11140_v48 = vadd.f32 %v4120_v45, %v3880_v61  ;;  %v4772_v9 = vpop.f32.mrf.mxu0 }
 0x4ea   : > { %v3882_v37 = vpop.f32.mrf.mxu1 }
 0x4eb   : > { %v11142_v43 = vadd.f32 %v4122_v49, %v3882_v37  ;;  %v4774_v33 = vpop.f32.mrf.mxu0 }
 0x4ec   : > { %v11144_v6 = vpop.f32.mrf.mxu1 }
 0x4ed   : > { %v4776_v55 = vpop.f32.mrf.mxu0 }
 0x4ee   : > { %v3888_v25 = vpop.f32.mrf.mxu1 }
 0x4ef   : > { %v11146_v4 = vadd.f32 %v4128_v7, %v3888_v25  ;;  %v11148_v51 = vpop.f32.mrf.mxu0 }
 0x4f0   : > { %v3890_v27 = vpop.f32.mrf.mxu1 }
 0x4f1   : > { %v11150_v58 = vadd.f32 %v4130_v57, %v3890_v27  ;;  %v4782_v24 = vpop.f32.mrf.mxu0 }
 0x4f2   : > { %v11152_v31 = vpop.f32.mrf.mxu1 }
 0x4f3   : > { %v4784_v60 = vpop.f32.mrf.mxu0 }
 0x4f4   : > { %v11154_v63 = vpop.f32.mrf.mxu1 }
 0x4f5   : > { %v4786_v1 = vpop.f32.mrf.mxu0 }
 0x4f6   : > { %v4388_v26 = vpop.f32.mrf.mxu1 }
 0x4f7   : > { %v4467_v15 = vadd.f32 %v4388_v26, %v11074_v52  ;;  %v4788_v52 = vpop.f32.mrf.mxu0 }
 0x4f8   : > { %v4390_v30 = vpop.f32.mrf.mxu1 }
 0x4f9   : > { %v4468_v45 = vadd.f32 %v4390_v30, %v11078_v40  ;;  %v11158_v49 = vadd.f32 %v4772_v9, %v4467_v15  ;;  %v4792_v15 = vpop.f32.mrf.mxu0 }
 0x4fa   : > { %v4392_v42 = vpop.f32.mrf.mxu1 }
 0x4fb   : > { %v4469_v14 = vadd.f32 %v4392_v42, %v11080_v46  ;;  %v11161_v7 = vadd.f32 %v4774_v33, %v4468_v45  ;;  %v4075_v46 = vadd.f32 %v11076_v62, %v11092_v59 }
 0x4fc   : > { %v11163_v57 = vpop.f32.mrf.mxu1 }
 0x4fd   : > { %v11165_v41 = vadd.f32 %v4776_v55, %v4469_v14 }
 0x4fe   : > { %v4398_v61 = vpop.f32.mrf.mxu1 }
 0x4ff   : > { %v4471_v37 = vadd.f32 %v4398_v61, %v11084_v17 }
 0x500   : > { %v4400_v25 = vpop.f32.mrf.mxu1 }
 0x501   : > { %v4472_v27 = vadd.f32 %v4400_v25, %v11088_v22  ;;  %v11169_v40 = vadd.f32 %v4782_v24, %v4471_v37  ;;  %v4794_v22 = vpop.f32.mrf.mxu0 }
 0x502   : > { %v4402_v9 = vpop.f32.mrf.mxu1 }
 0x503   : > { %v4473_v33 = vadd.f32 %v4402_v9, %v11090_v8  ;;  %v11174_v26 = vadd.f32 %v4784_v60, %v4472_v27  ;;  %v4796_v60 = vpop.f32.mrf.mxu0 }
 0x504   : > { %v4404_v55 = vpop.f32.mrf.mxu1 }
 0x505   : > { %v4474_v30 = vadd.f32 %v4404_v55, %v4075_v46  ;;  %v11176_v45 = vadd.f32 %v4786_v1, %v4473_v33  ;;  %v4095_v46 = vadd.f32 %v11096_v53, %v11112_v20 }
 0x506   : > { %v4408_v17 = vpop.f32.mrf.mxu1 }
 0x507   : > { %v4475_v42 = vadd.f32 %v4408_v17, %v11094_v11  ;;  %v11179_v14 = vadd.f32 %v4788_v52, %v4474_v30 }
 0x508   : > { %v4410_v24 = vpop.f32.mrf.mxu1 }
 0x509   : > { %v4476_v61 = vadd.f32 %v4410_v24, %v11098_v47  ;;  %v11182_v37 = vadd.f32 %v4792_v15, %v4475_v42  ;;  %v4105_v42 = vadd.f32 %v11106_v2, %v11122_v21  ;;  %v4115_v2 = vadd.f32 %v11116_v28, %v11132_v29 }
 0x50a   : > { %v4412_v62 = vpop.f32.mrf.mxu1  ;;  %v4125_v28 = vadd.f32 %v11126_v12, %v11144_v6  ;;  %v5227_v12 = vld [vmem:[%s12121_s5] sm:$0x3]  ;;  %v4065_v6 = vadd.f32 %v11072_v34, %v11082_v0 }
 0x50b   : > { %v4477_v8 = vadd.f32 %v4412_v62, %v11100_v13  ;;  %v11185_v59 = vadd.f32 %v4794_v22, %v4476_v61  ;;  %v11220_v61 = vpop.f32.mrf.mxu0 }
 0x50c   : > { %v11187_v25 = vpop.f32.mrf.mxu1 }
 0x50d   : > { %v11189_v1 = vadd.f32 %v4796_v60, %v4477_v8  ;;  %v11230_v8 = vpop.f32.mrf.mxu0 }
 0x50e   : > { %v4418_v27 = vpop.f32.mrf.mxu1 }
 0x50f   : > { %v11192_v11 = vadd.f32 %v4418_v27, %v11104_v54 }
 0x510   : > { %v4420_v52 = vpop.f32.mrf.mxu1 }
 0x511   : > { %v11195_v9 = vadd.f32 %v4420_v52, %v11108_v18 }
 0x512   : > { %v4422_v47 = vpop.f32.mrf.mxu1 }
 0x513   : > { %v11200_v13 = vadd.f32 %v4422_v47, %v11110_v36  ;;  %v11237_v47 = vpop.f32.mrf.mxu0 }
 0x514   : > { %v4424_v33 = vpop.f32.mrf.mxu1 }
 0x515   : > { %v11202_v15 = vadd.f32 %v4424_v33, %v4095_v46  ;;  %v11247_v33 = vpop.f32.mrf.mxu0 }
 0x516   : > { %v4428_v55 = vpop.f32.mrf.mxu1 }
 0x517   : > { %v11205_v30 = vadd.f32 %v4428_v55, %v11114_v50 }
 0x518   : > { %v4430_v54 = vpop.f32.mrf.mxu1 }
 0x519   : > { %v11208_v17 = vadd.f32 %v4430_v54, %v11118_v3 }
 0x51a   : > { %v4432_v18 = vpop.f32.mrf.mxu1 }
 0x51b   : > { %v11213_v53 = vadd.f32 %v4432_v18, %v11120_v39 }
 0x51c   : > { %v4434_v36 = vpop.f32.mrf.mxu1 }
 0x51d   : > { %v11215_v20 = vadd.f32 %v4434_v36, %v4105_v42  ;;  %v11254_v42 = vpop.f32.mrf.mxu0 }
 0x51e   : > { %v4438_v22 = vpop.f32.mrf.mxu1 }
 0x51f   : > { %v11218_v24 = vadd.f32 %v4438_v22, %v11124_v56  ;;  %v11268_v22 = vpop.f32.mrf.mxu0 }
 0x520   : > { %v4440_v50 = vpop.f32.mrf.mxu1 }
 0x521   : > { %v11223_v3 = vadd.f32 %v4440_v50, %v11128_v44 }
 0x522   : > { %v4442_v62 = vpop.f32.mrf.mxu1 }
 0x523   : > { %v11228_v39 = vadd.f32 %v4442_v62, %v11130_v23 }
 0x524   : > { %v4444_v21 = vpop.f32.mrf.mxu1 }
 0x525   : > { %v11232_v60 = vadd.f32 %v4444_v21, %v4115_v2 }
 0x526   : > { %v4448_v56 = vpop.f32.mrf.mxu1 }
 0x527   : > { %v11235_v27 = vadd.f32 %v4448_v56, %v11136_v10 }
 0x528   : > { %v4450_v52 = vpop.f32.mrf.mxu1 }
 0x529   : > { %v11240_v44 = vadd.f32 %v4450_v52, %v11140_v48 }
 0x52a   : > { %v4452_v46 = vpop.f32.mrf.mxu1 }
 0x52b   : > { %v11245_v23 = vadd.f32 %v4452_v46, %v11142_v43 }
 0x52c   : > { %v4454_v29 = vpop.f32.mrf.mxu1 }
 0x52d   : > { %v11249_v55 = vadd.f32 %v4454_v29, %v4125_v28  ;;  %v11280_v28 = vpop.f32.mrf.mxu0 }
 0x52e   : > { %v4458_v10 = vpop.f32.mrf.mxu1 }
 0x52f   : > { %v11252_v54 = vadd.f32 %v4458_v10, %v11146_v4  ;;  %v12391_v4 = vld [vmem:[#allocation79_spill] sm:$0xff] }
 0x530   : > { %v4460_v18 = vpop.f32.mrf.mxu1  ;;  %v12392_v50 = vsub.s32 0, %v12391_v4  ;;  %v12393_v56 = vsub.s32 1, %v12391_v4 }
 0x531   : > { %v11257_v48 = vadd.f32 %v4460_v18, %v11150_v58  ;;  %v4470_v58 = vadd.f32 %v11163_v57, %v4065_v6 }
 0x532   : > { %v11259_v36 = vpop.f32.mrf.mxu1  ;;  %v11272_v62 = vrot.slane %v5227_v12, %v12392_v50  ;;  %v11278_v52 = vrot.slane %v5227_v12, %v12393_v56  ;;  %v11287_v50 = vpop.f32.mrf.mxu0 }
 0x533   : > { %12388 = vst [vmem:[#allocation17_spill] sm:$0xff] %v11257_v48  ;;  %12389 = vst [vmem:[#allocation47_spill] sm:$0xff] %v11259_v36  ;;  %v4854_v57 = vadd.f32 %v11148_v51, %v4470_v58 }
 0x534   : > { %v11264_v43 = vpop.f32.mrf.mxu1  ;;  %v11292_v35 = vpop.f32.mrf.mxu0 }
 0x535   : > { %12390 = vst [vmem:[#allocation49_spill] sm:$0xff] %v11264_v43 }
 0x536   : > { %v5116_v2 = vpop.f32.mrf.mxu1 }
 0x537   : > { %v5195_v21 = vadd.f32 %v5116_v2, %v11158_v49 }
 0x538   : > { %v5118_v46 = vpop.f32.mrf.mxu1 }
 0x539   : > { %v5239_v34 = vadd.f32 %v11272_v62, %v5195_v21  ;;  %v5196_v0 = vadd.f32 %v5118_v46, %v11161_v7 }
 0x53a   : > { %v5120_v29 = vpop.f32.mrf.mxu1 }
 0x53b   : > { %v5240_v10 = vadd.f32 %v11278_v52, %v5196_v0  ;;  %v5197_v18 = vadd.f32 %v5120_v29, %v11165_v41  ;;  %v5271_v6 = vmax.f32 %v5239_v34, 0.0 }
 0x53c   : > { %v5122_v49 = vpop.f32.mrf.mxu1 }
 0x53d   : > { %v5241_v12 = vadd.f32 %v11272_v62, %v5197_v18  ;;  %v5198_v4 = vadd.f32 %v5122_v49, %v4854_v57  ;;  %v5272_v2 = vmax.f32 %v5240_v10, 0.0  ;;  %v5335_v46 = vrot.slane %v5271_v6, 1 }
 0x53e   : > { %v5126_v56 = vpop.f32.mrf.mxu1 }
 0x53f   : > { %v5273_v19 = vmax.f32 %v5241_v12, 0.0  ;;  %v5242_v21 = vadd.f32 %v11278_v52, %v5198_v4  ;;  %v5199_v7 = vadd.f32 %v5126_v56, %v11169_v40  ;;  %v5338_v29 = vrot.slane %v5272_v2, 1 }
 0x540   : > { %v5128_v0 = vpop.f32.mrf.mxu1  ;;  %v4085_v40 = vadd.f32 %v11086_v5, %v11102_v16 }
 0x541   : > { %v5336_v41 = vrot.slane %v5273_v19, 1  ;;  %v5274_v51 = vmax.f32 %v5242_v21, 0.0  ;;  %v5243_v58 = vadd.f32 %v11272_v62, %v5199_v7  ;;  %v5200_v34 = vadd.f32 %v5128_v0, %v11174_v26  ;;  %v11303_v21 = vpop.f32.mrf.mxu0 }
 0x542   : > { %v5130_v18 = vpop.f32.mrf.mxu1 }
 0x543   : > { %v5337_v10 = vsel %vm1279_vm2, %v5335_v46, %v5336_v41  ;;  %v5339_v57 = vrot.slane %v5274_v51, 1  ;;  %v5275_v49 = vmax.f32 %v5243_v58, 0.0  ;;  %v5244_v12 = vadd.f32 %v11278_v52, %v5200_v34 }
 0x544   : > { %v5201_v4 = vadd.f32 %v5130_v18, %v11176_v45  ;;  %v5132_v56 = vpop.f32.mrf.mxu1  ;;  %v11301_v48 = vmax.f32 %v5271_v6, %v5337_v10  ;;  %v4478_v58 = vadd.f32 %v11187_v25, %v4085_v40 }
 0x545   : > { %v5341_v7 = vrot.slane %v5275_v49, 1  ;;  %v5276_v26 = vmax.f32 %v5244_v12, 0.0  ;;  %v5202_v0 = vadd.f32 %v5132_v56, %v11179_v14  ;;  %v5340_v46 = vsel %vm1279_vm2, %v5338_v29, %v5339_v57  ;;  %v11316_v14 = vpop.f32.mrf.mxu0 }
 0x546   : > { %v5245_v34 = vadd.f32 %v11272_v62, %v5201_v4  ;;  %v5136_v43 = vpop.f32.mrf.mxu1  ;;  %v11309_v36 = vmax.f32 %v5272_v2, %v5340_v46  ;;  %v4862_v56 = vadd.f32 %v11220_v61, %v4478_v58 }
 0x547   : > { %v5342_v5 = vsel %vm1279_vm2, %v5336_v41, %v5341_v7  ;;  %v5343_v16 = vrot.slane %v5276_v26, 1  ;;  %v5246_v45 = vadd.f32 %v11278_v52, %v5202_v0  ;;  %v5203_v6 = vadd.f32 %v5136_v43, %v11182_v37 }
 0x548   : > { %v5277_v18 = vmax.f32 %v5245_v34, 0.0  ;;  %v5138_v10 = vpop.f32.mrf.mxu1  ;;  %v11314_v12 = vmax.f32 %v5273_v19, %v5342_v5 }
 0x549   : > { %v5278_v29 = vmax.f32 %v5246_v45, 0.0  ;;  %v5247_v25 = vadd.f32 %v11272_v62, %v5203_v6  ;;  %v5204_v40 = vadd.f32 %v5138_v10, %v11185_v59  ;;  %v5344_v2 = vsel %vm1279_vm2, %v5339_v57, %v5343_v16  ;;  %v11331_v45 = vpop.f32.mrf.mxu0 }
 0x54a   : > { %v5345_v4 = vrot.slane %v5277_v18, 1  ;;  %v5140_v41 = vpop.f32.mrf.mxu1  ;;  %v11322_v0 = vmax.f32 %v5274_v51, %v5344_v2  ;;  %v4863_v10 = vadd.f32 %v11230_v8, %v11192_v11 }
 0x54b   : > { %v5347_v19 = vrot.slane %v5278_v29, 1  ;;  %v5279_v43 = vmax.f32 %v5247_v25, 0.0  ;;  %v5248_v46 = vadd.f32 %v11278_v52, %v5204_v40  ;;  %v5205_v34 = vadd.f32 %v5140_v41, %v11189_v1 }
 0x54c   : > { %v5346_v5 = vsel %vm1279_vm2, %v5341_v7, %v5345_v4  ;;  %v5142_v59 = vpop.f32.mrf.mxu1  ;;  %v4864_v1 = vadd.f32 %v11237_v47, %v11195_v9  ;;  %v11349_v9 = vpop.f32.mrf.mxu0 }
 0x54d   : > { %v5349_v61 = vrot.slane %v5279_v43, 1  ;;  %v5280_v51 = vmax.f32 %v5248_v46, 0.0  ;;  %v5249_v58 = vadd.f32 %v11272_v62, %v5205_v34  ;;  %v5206_v6 = vadd.f32 %v5142_v59, %v4862_v56 }
 0x54e   : > { %v5146_v25 = vpop.f32.mrf.mxu1  ;;  %v5348_v7 = vsel %vm1279_vm2, %v5343_v16, %v5347_v19  ;;  %v11339_v40 = vmax.f32 %v5275_v49, %v5346_v5  ;;  %v4865_v56 = vadd.f32 %v11247_v33, %v11200_v13 }
 0x54f   : > { %v5350_v2 = vsel %vm1279_vm2, %v5345_v4, %v5349_v61  ;;  %v5351_v41 = vrot.slane %v5280_v51, 1  ;;  %v5281_v37 = vmax.f32 %v5249_v58, 0.0  ;;  %v5250_v46 = vadd.f32 %v11278_v52, %v5206_v6 }
 0x550   : > { %v5207_v57 = vadd.f32 %v5146_v25, %v4863_v10  ;;  %v5148_v34 = vpop.f32.mrf.mxu1  ;;  %v11345_v11 = vmax.f32 %v5276_v26, %v5348_v7  ;;  %v11347_v8 = vmax.f32 %v5277_v18, %v5350_v2  ;;  %v4866_v58 = vadd.f32 %v11254_v42, %v11202_v15  ;;  %v11367_v42 = vpop.f32.mrf.mxu0 }
 0x551   : > { %v5353_v47 = vrot.slane %v5281_v37, 1  ;;  %v5282_v49 = vmax.f32 %v5250_v46, 0.0  ;;  %v5208_v16 = vadd.f32 %v5148_v34, %v4864_v1  ;;  %v5352_v4 = vsel %vm1279_vm2, %v5347_v19, %v5351_v41 }
 0x552   : > { %v5251_v5 = vadd.f32 %v11272_v62, %v5207_v57  ;;  %v5150_v59 = vpop.f32.mrf.mxu1  ;;  %v11355_v6 = vmax.f32 %v5278_v29, %v5352_v4  ;;  %v4867_v19 = vadd.f32 %v11268_v22, %v11205_v30 }
 0x553   : > { %v5354_v33 = vsel %vm1279_vm2, %v5349_v61, %v5353_v47  ;;  %v5355_v26 = vrot.slane %v5282_v49, 1  ;;  %v5252_v18 = vadd.f32 %v11278_v52, %v5208_v16  ;;  %v5209_v10 = vadd.f32 %v5150_v59, %v4865_v56 }
 0x554   : > { %v5283_v25 = vmax.f32 %v5251_v5, 0.0  ;;  %v5152_v1 = vpop.f32.mrf.mxu1  ;;  %v11363_v57 = vmax.f32 %v5279_v43, %v5354_v33  ;;  %v4868_v56 = vadd.f32 %v11280_v28, %v11208_v17  ;;  %v11379_v33 = vpop.f32.mrf.mxu0 }
 0x555   : > { %v5284_v29 = vmax.f32 %v5252_v18, 0.0  ;;  %v5253_v7 = vadd.f32 %v11272_v62, %v5209_v10  ;;  %v5210_v61 = vadd.f32 %v5152_v1, %v4866_v58  ;;  %v5356_v2 = vsel %vm1279_vm2, %v5351_v41, %v5355_v26 }
 0x556   : > { %v5357_v46 = vrot.slane %v5283_v25, 1  ;;  %v5156_v34 = vpop.f32.mrf.mxu1  ;;  %v11373_v16 = vmax.f32 %v5280_v51, %v5356_v2  ;;  %v4869_v58 = vadd.f32 %v11287_v50, %v11213_v53  ;;  %v4870_v51 = vadd.f32 %v11292_v35, %v11215_v20  ;;  %v4836_v20 = vpop.f32.mrf.mxu0 }
 0x557   : > { %v5359_v30 = vrot.slane %v5284_v29, 1  ;;  %v5285_v22 = vmax.f32 %v5253_v7, 0.0  ;;  %v5254_v43 = vadd.f32 %v11278_v52, %v5210_v61  ;;  %v5211_v4 = vadd.f32 %v5156_v34, %v4867_v19 }
 0x558   : > { %v5358_v5 = vsel %vm1279_vm2, %v5353_v47, %v5357_v46  ;;  %v5158_v59 = vpop.f32.mrf.mxu1  ;;  %v4871_v1 = vadd.f32 %v11303_v21, %v11218_v24 }
 0x559   : > { %v5361_v41 = vrot.slane %v5285_v22, 1  ;;  %v5286_v18 = vmax.f32 %v5254_v43, 0.0  ;;  %v11382_v10 = vadd.f32 %v11272_v62, %v5211_v4  ;;  %v5212_v17 = vadd.f32 %v5158_v59, %v4868_v56 }
 0x55a   : > { %v5160_v28 = vpop.f32.mrf.mxu1  ;;  %v5360_v47 = vsel %vm1279_vm2, %v5355_v26, %v5359_v30  ;;  %v11389_v19 = vmax.f32 %v5281_v37, %v5358_v5  ;;  %v4872_v5 = vadd.f32 %v11316_v14, %v11223_v3  ;;  %v4838_v14 = vpop.f32.mrf.mxu0 }
 0x55b   : > { %v5362_v53 = vsel %vm1279_vm2, %v5357_v46, %v5361_v41  ;;  %v5363_v50 = vrot.slane %v5286_v18, 1  ;;  %v5287_v7 = vmax.f32 %v11382_v10, 0.0  ;;  %v5256_v61 = vadd.f32 %v11278_v52, %v5212_v17 }
 0x55c   : > { %v5213_v2 = vadd.f32 %v5160_v28, %v4869_v58  ;;  %v5162_v34 = vpop.f32.mrf.mxu1  ;;  %v11394_v56 = vmax.f32 %v5283_v25, %v5362_v53  ;;  %v11396_v43 = vmax.f32 %v5282_v49, %v5360_v47  ;;  %v5465_v35 = vpack.c.bf16 %v11389_v19, %v11363_v57 }
 0x55d   : > { %v5365_v24 = vrot.slane %v5287_v7, 1  ;;  %v5288_v21 = vmax.f32 %v5256_v61, 0.0  ;;  %v5214_v37 = vadd.f32 %v5162_v34, %v4870_v51  ;;  %v5364_v26 = vsel %vm1279_vm2, %v5359_v30, %v5363_v50 }
 0x55e   : > { %v5257_v46 = vadd.f32 %v11272_v62, %v5213_v2  ;;  %v5166_v4 = vpop.f32.mrf.mxu1  ;;  %v11404_v59 = vmax.f32 %v5284_v29, %v5364_v26  ;;  %v5466_v49 = vpack.c.bf16 %v11396_v43, %v11373_v16  ;;  %v4133_v30 = vadd.f32 %v11134_v32, %v11152_v31  ;;  %v8167_v16 = vld [vmem:[%s12122_s6] sm:$0xff]   ;;  %v8174_v43 = vld [vmem:[%s12123_s7 + $0x28] sm:$0xff]  }
 0x55f   : > { %v5366_v25 = vsel %vm1279_vm2, %v5361_v41, %v5365_v24  ;;  %v5367_v58 = vrot.slane %v5288_v21, 1  ;;  %v5258_v10 = vadd.f32 %v11278_v52, %v5214_v37  ;;  %v5215_v17 = vadd.f32 %v5166_v4, %v4871_v1 }
 0x560   : > { %v5289_v28 = vmax.f32 %v5257_v46, 0.0  ;;  %v5168_v51 = vpop.f32.mrf.mxu1  ;;  %v4873_v47 = vadd.f32 %v11331_v45, %v11228_v39  ;;  %v11414_v3 = vmax.f32 %v5285_v22, %v5366_v25  ;;  %v4874_v1 = vadd.f32 %v11349_v9, %v11232_v60  ;;  %v4842_v9 = vpop.f32.mrf.mxu0 }
 0x561   : > { %v5290_v29 = vmax.f32 %v5258_v10, 0.0  ;;  %v5259_v53 = vadd.f32 %v11272_v62, %v5215_v17  ;;  %v5216_v61 = vadd.f32 %v5168_v51, %v4872_v5  ;;  %v5368_v41 = vsel %vm1279_vm2, %v5363_v50, %v5367_v58 }
 0x562   : > { %v5369_v2 = vrot.slane %v5289_v28, 1  ;;  %v5170_v34 = vpop.f32.mrf.mxu1  ;;  %v11420_v32 = vmax.f32 %v5286_v18, %v5368_v41  ;;  %v5467_v31 = vpack.c.bf16 %v11414_v3, %v11394_v56  ;;  %v4135_v26 = vadd.f32 %v11138_v38, %v11154_v63  ;;  %v8177_v3 = vld [vmem:[%s12123_s7 + $0x18] sm:$0xff]  }
 0x563   : > { %v5371_v39 = vrot.slane %v5290_v29, 1  ;;  %v5291_v45 = vmax.f32 %v5259_v53, 0.0  ;;  %v5260_v22 = vadd.f32 %v11278_v52, %v5216_v61  ;;  %v5217_v37 = vadd.f32 %v5170_v34, %v4873_v47 }
 0x564   : > { %v5370_v50 = vsel %vm1279_vm2, %v5365_v24, %v5369_v2  ;;  %v5172_v46 = vpop.f32.mrf.mxu1  ;;  %v4875_v4 = vadd.f32 %v11367_v42, %v11235_v27  ;;  %v5468_v60 = vpack.c.bf16 %v11420_v32, %v11404_v59  ;;  %v4876_v51 = vadd.f32 %v11379_v33, %v11240_v44  ;;  %v4844_v44 = vpop.f32.mrf.mxu0  ;;  %v8179_v32 = vld [vmem:[%s12123_s7 + $0x10] sm:$0xff]  }
 0x565   : > { %v5373_v18 = vrot.slane %v5291_v45, 1  ;;  %v5292_v5 = vmax.f32 %v5260_v22, 0.0  ;;  %v5261_v25 = vadd.f32 %v11272_v62, %v5217_v37  ;;  %v5218_v10 = vadd.f32 %v5172_v46, %v4874_v1 }
 0x566   : > { %v5176_v17 = vpop.f32.mrf.mxu1  ;;  %v4877_v38 = vadd.f32 %v4836_v20, %v11245_v23  ;;  %v5372_v63 = vsel %vm1279_vm2, %v5367_v58, %v5371_v39  ;;  %v11437_v24 = vmax.f32 %v5287_v7, %v5370_v50  ;;  %v4878_v34 = vadd.f32 %v4838_v14, %v11249_v55 }
 0x567   : > { %v5374_v27 = vsel %vm1279_vm2, %v5369_v2, %v5373_v18  ;;  %v5375_v42 = vrot.slane %v5292_v5, 1  ;;  %v5293_v47 = vmax.f32 %v5261_v25, 0.0  ;;  %v5262_v53 = vadd.f32 %v11278_v52, %v5218_v10 }
 0x568   : > { %v5219_v61 = vadd.f32 %v5176_v17, %v4875_v4  ;;  %v5178_v41 = vpop.f32.mrf.mxu1  ;;  %v11442_v1 = vmax.f32 %v5288_v21, %v5372_v63  ;;  %v11444_v22 = vmax.f32 %v5289_v28, %v5374_v27  ;;  %v4879_v37 = vadd.f32 %v4842_v9, %v11252_v54  ;;  %v12394_v4 = vld [vmem:[#allocation47_spill] sm:$0xff]  ;;  %v12395_v27 = vld [vmem:[#allocation49_spill] sm:$0xff] }
 0x569   : > { %v5377_v23 = vrot.slane %v5293_v47, 1  ;;  %v5294_v33 = vmax.f32 %v5262_v53, 0.0  ;;  %v5220_v20 = vadd.f32 %v5178_v41, %v4876_v51  ;;  %v5376_v7 = vsel %vm1279_vm2, %v5371_v39, %v5375_v42  ;;  %v12396_v41 = vld [vmem:[#allocation17_spill] sm:$0xff] }
 0x56a   : > { %v5263_v58 = vadd.f32 %v11272_v62, %v5219_v61  ;;  %v5180_v2 = vpop.f32.mrf.mxu1  ;;  %v11449_v50 = vmax.f32 %v5290_v29, %v5376_v7  ;;  %v5469_v55 = vpack.c.bf16 %v11444_v22, %v11437_v24  ;;  %v4497_v25 = vadd.f32 %v12394_v4, %v4133_v30  ;;  %v4846_v29 = vpop.f32.mrf.mxu0 }
 0x56b   : > { %v5378_v21 = vsel %vm1279_vm2, %v5373_v18, %v5377_v23  ;;  %v5379_v28 = vrot.slane %v5294_v33, 1  ;;  %v5264_v14 = vadd.f32 %v11278_v52, %v5220_v20  ;;  %v5221_v46 = vadd.f32 %v5180_v2, %v4877_v38 }
 0x56c   : > { %v5295_v10 = vmax.f32 %v5263_v58, 0.0  ;;  %v5182_v39 = vpop.f32.mrf.mxu1  ;;  %v11456_v17 = vmax.f32 %v5291_v45, %v5378_v21  ;;  %v5470_v54 = vpack.c.bf16 %v11449_v50, %v11442_v1  ;;  %v4498_v53 = vadd.f32 %v12395_v27, %v4135_v26  ;;  %v4848_v4 = vpop.f32.mrf.mxu0  ;;  %v8183_v1 = vld [vmem:[%s12123_s7] sm:$0xff]  }
 0x56d   : > { %v5296_v9 = vmax.f32 %v5264_v14, 0.0  ;;  %v5265_v51 = vadd.f32 %v11272_v62, %v5221_v46  ;;  %v5222_v63 = vadd.f32 %v5182_v39, %v4878_v34  ;;  %v5380_v18 = vsel %vm1279_vm2, %v5375_v42, %v5379_v28  ;;  %v8184_v50 = vld [vmem:[%s12123_s7 + $0x60] sm:$0xff]  }
 0x56e   : > { %v5381_v61 = vrot.slane %v5295_v10, 1  ;;  %v5186_v38 = vpop.f32.mrf.mxu1  ;;  %v4880_v30 = vadd.f32 %v4844_v44, %v12396_v41  ;;  %v5450_v20 = vmax.f32 %v5292_v5, %v5380_v18  ;;  %v4881_v26 = vadd.f32 %v4846_v29, %v4497_v25 }
 0x56f   : > { %v5383_v7 = vrot.slane %v5296_v9, 1  ;;  %v5297_v45 = vmax.f32 %v5265_v51, 0.0  ;;  %v5266_v58 = vadd.f32 %v11278_v52, %v5222_v63  ;;  %v5223_v2 = vadd.f32 %v5186_v38, %v4879_v37 }
 0x570   : > { %v5382_v21 = vsel %vm1279_vm2, %v5377_v23, %v5381_v61  ;;  %v5188_v14 = vpop.f32.mrf.mxu1  ;;  %v4882_v13 = vadd.f32 %v4848_v4, %v4498_v53  ;;  %v12398_v24 = vpack.c.bf16 %v11355_v6, %v11345_v11  ;;  %v12399_v59 = vpack.c.bf16 %v11347_v8, %v11339_v40  ;;  %v8168_v40 = vld [vmem:[%s12122_s6 + $0x8] sm:$0xff]   ;;  %v8176_v11 = vld [vmem:[%s12123_s7 + $0x80] sm:$0xff]   ;;  %v8173_v8 = vld [vmem:[%s12123_s7 + $0x30] sm:$0xff]  }
 0x571   : > { %v5385_v46 = vrot.slane %v5297_v45, 1  ;;  %v5298_v34 = vmax.f32 %v5266_v58, 0.0  ;;  %v5267_v42 = vadd.f32 %v11272_v62, %v5223_v2  ;;  %v5224_v39 = vadd.f32 %v5188_v14, %v4880_v30  ;;  %5902 = vmatpush1.bf16.msra.mxu1 %v8176_v11  ;;  %v8178_v6 = vld [vmem:[%s12123_s7 + $0x78] sm:$0xff]  }
 0x572   : > { %v5190_v27 = vpop.f32.mrf.mxu1  ;;  %v5384_v44 = vsel %vm1279_vm2, %v5379_v28, %v5383_v7  ;;  %v5451_v5 = vmax.f32 %v5293_v47, %v5382_v21  ;;  %v12400_v56 = vpack.c.bf16 %v11322_v0, %v11309_v36  ;;  %v12401_v57 = vpack.c.bf16 %v11314_v12, %v11301_v48  ;;  %v8169_v36 = vld [vmem:[%s12122_s6 + $0x10] sm:$0xff]   ;;  %v8170_v48 = vld [vmem:[%s12122_s6 + $0x18] sm:$0xff]   ;;  %v8171_v12 = vld [vmem:[%s12122_s6 + $0x20] ss:$0 sps:$4 sm:$0xff]  }
 0x573   : > { %v5386_v51 = vsel %vm1279_vm2, %v5381_v61, %v5385_v46  ;;  %v5387_v18 = vrot.slane %v5298_v34, 1  ;;  %v5299_v63 = vmax.f32 %v5267_v42, 0.0  ;;  %v5268_v37 = vadd.f32 %v11278_v52, %v5224_v39  ;;  %v8172_v0 = vld [vmem:[%s12123_s7 + $0x38] sm:$0xff]  }
 0x574   : > { %v5225_v23 = vadd.f32 %v5190_v27, %v4881_v26  ;;  %v5192_v38 = vpop.f32.mrf.mxu1  ;;  %v5453_v41 = vmax.f32 %v5295_v10, %v5386_v51  ;;  %v5452_v15 = vmax.f32 %v5294_v33, %v5384_v44  ;;  %v5471_v58 = vpack.c.bf16 %v5451_v5, %v11456_v17  ;;  %v12397_v5 = vld [vmem:[#allocation16_spill] sm:$0xff] }
 0x575   : > { %v5389_v2 = vrot.slane %v5299_v63, 1  ;;  %v5300_v30 = vmax.f32 %v5268_v37, 0.0  ;;  %v5226_v25 = vadd.f32 %v5192_v38, %v4882_v13  ;;  %v5388_v29 = vsel %vm1279_vm2, %v5383_v7, %v5387_v18 }
 0x576   : > { %v5269_v28 = vadd.f32 %v11272_v62, %v5225_v23  ;;  %v5454_v47 = vmax.f32 %v5296_v9, %v5388_v29  ;;  %v5472_v53 = vpack.c.bf16 %v5452_v15, %v5450_v20  ;;  %v12402_v19 = vmov 0  }
 0x577   : > { %v5390_v61 = vsel %vm1279_vm2, %v5385_v46, %v5389_v2  ;;  %v5391_v21 = vrot.slane %v5300_v30, 1  ;;  %v5270_v14 = vadd.f32 %v11278_v52, %v5226_v25  ;;  %5903 = vmatprep.subr.bf16.mxu1 %v12402_v19 }
 0x578   : > { %v5301_v4 = vmax.f32 %v5269_v28, 0.0  ;;  %v5455_v42 = vmax.f32 %v5297_v45, %v5390_v61  ;;  %5904 = vmatpush1.bf16.msra.mxu1 %v8178_v6 }
 0x579   : > { %v5302_v10 = vmax.f32 %v5270_v14, 0.0  ;;  %v5392_v33 = vsel %vm1279_vm2, %v5387_v18, %v5391_v21  ;;  %5905 = vmatprep.subr.bf16.mxu1 %v12402_v19  ;;  %v8186_v18 = vld [vmem:[%s12123_s7 + $0x58] sm:$0xff]  }
 0x57a   : > { %v5393_v17 = vrot.slane %v5301_v4, 1  ;;  %v5456_v39 = vmax.f32 %v5298_v34, %v5392_v33  ;;  %v5473_v26 = vpack.c.bf16 %v5455_v42, %v5453_v41  ;;  %v8188_v41 = vld [vmem:[%s12123_s7 + $0x50] sm:$0xff]  }
 0x57b   : > { %v5395_v13 = vrot.slane %v5302_v10, 1 }
 0x57c   : > { %v5394_v7 = vsel %vm1279_vm2, %v5389_v2, %v5393_v17  ;;  %v5459_v27 = vmax.f32 %v5301_v4, %v5393_v17  ;;  %v5474_v62 = vpack.c.bf16 %v5456_v39, %v5454_v47 }
 0x57d   : > { %v5457_v9 = vmax.f32 %v5299_v63, %v5394_v7  ;;  %v5460_v15 = vmax.f32 %v5302_v10, %v5395_v13  ;;  %v5396_v20 = vsel %vm1279_vm2, %v5391_v21, %v5395_v13 }
 0x57e   : > { %v5458_v46 = vmax.f32 %v5300_v30, %v5396_v20  ;;  %v8190_v30 = vld [vmem:[%s12123_s7 + $0x48] sm:$0xff]  }
 0x57f   : > { %v5475_v44 = vpack.c.bf16 %v5459_v27, %v5457_v9 }
 0x580   : > { %v5476_v52 = vpack.c.bf16 %v5460_v15, %v5458_v46 }
 0x581   : > { %v5525_v51 = vand.u32 %v5475_v44, %v12397_v5 }
 0x582   : > { %v5528_v45 = vand.u32 %v5476_v52, %v12397_v5 }
 0x584   : > { %5530 = vmatprep.subr.bf16.mxu0 %v5528_v45 }
 0x585   : > { %5531 = vmatpush1.bf16.msra.mxu0 %v5525_v51 }
 0x586   : > { %5532 = vmatprep.subr.bf16.mxu0 %v5474_v62 }
 0x589   : > { %5533 = vmatpush1.bf16.msra.mxu0 %v5473_v26 }
 0x58a   : > { %5534 = vmatprep.subr.bf16.mxu0 %v5472_v53  ;;  %v8192_v53 = vld [vmem:[%s12123_s7 + $0x88] sm:$0xff]  }
 0x58d   : > { %5535 = vmatpush1.bf16.msra.mxu0 %v5471_v58 }
 0x58e   : > { %5536 = vmatprep.subr.bf16.mxu0 %v5470_v54 }
 0x591   : > { %5537 = vmatpush1.bf16.msra.mxu0 %v5469_v55  ;;  %v8185_v55 = vld [vmem:[%s12123_s7 + $0x40] sm:$0xff]  }
 0x592   : > { %5538 = vmatprep.subr.bf16.mxu0 %v5468_v60  ;;  %v8182_v60 = vld [vmem:[%s12123_s7 + $0x68] sm:$0xff]  }
 0x595   : > { %5539 = vmatpush1.bf16.msra.mxu0 %v5467_v31  ;;  %v8181_v31 = vld [vmem:[%s12123_s7 + $0x8] sm:$0xff]  }
 0x596   : > { %5540 = vmatprep.subr.bf16.mxu0 %v5466_v49  ;;  %v8175_v49 = vld [vmem:[%s12123_s7 + $0x20] sm:$0xff]  }
 0x599   : > { %5541 = vmatpush1.bf16.msra.mxu0 %v5465_v35  ;;  %v8180_v35 = vld [vmem:[%s12123_s7 + $0x70] sm:$0xff]  }
 0x59a   : > { %5542 = vmatprep.subr.bf16.mxu0 %v12398_v24  ;;  %5906 = vmatpush1.bf16.msra.mxu1 %v8180_v35 }
 0x59b   : > { %5907 = vmatprep.subr.bf16.mxu1 %v12402_v19 }
 0x59d   : > { %5543 = vmatpush1.bf16.msra.mxu0 %v12399_v59 }
 0x59e   : > { %5544 = vmatprep.subr.bf16.mxu0 %v12400_v56  ;;  %5908 = vmatpush1.bf16.msra.mxu1 %v8182_v60 }
 0x59f   : > { %5909 = vmatprep.subr.bf16.mxu1 %v12402_v19 }
 0x5a1   : > { %5545 = vmatpush1.bf16.msra.mxu0 %v12401_v57 }
 0x5a2   : > { %6028 = vmatprep.subr.bf16.mxu0 %v12402_v19  ;;  %5910 = vmatpush1.bf16.msra.mxu1 %v8184_v50 }
 0x5a3   : > { %5911 = vmatprep.subr.bf16.mxu1 %v12402_v19 }
 0x5a4   : > { %7444 = vmatmul.mubr.msk.bf16.vlgmr.msra.gmra.mxu0 %vm3096_vm4, %v8167_v16 }
 0x5a5   : > { %5572 = vmatprep.mubr.bf16.mxu0 %v12402_v19  ;;  %6029 = vmatpush1.bf16.msra.mxu0 %v8172_v0  ;;  %v8187_v0 = vld [vmem:[%s12123_s7 + $0x110] sm:$0xff]  }
 0x5a6   : > { %6030 = vmatprep.subr.bf16.mxu0 %v12402_v19  ;;  %5912 = vmatpush1.bf16.msra.mxu1 %v8186_v18 }
 0x5a7   : > { %5913 = vmatprep.subr.bf16.mxu1 %v12402_v19 }
 0x5a9   : > { %6031 = vmatpush1.bf16.msra.mxu0 %v8173_v8 }
 0x5aa   : > { %6032 = vmatprep.subr.bf16.mxu0 %v12402_v19  ;;  %5914 = vmatpush1.bf16.msra.mxu1 %v8188_v41 }
 0x5ab   : > { %5915 = vmatprep.subr.bf16.mxu1 %v12402_v19 }
 0x5ac   : > { %7445 = vmatmul.mubr.msk.bf16.gmra.mxu0 %vm3096_vm4, %v8168_v40 }
 0x5ad   : > { %5582 = vmatprep.mubr.bf16.mxu0 %v12402_v19  ;;  %6033 = vmatpush1.bf16.msra.mxu0 %v8174_v43 }
 0x5ae   : > { %6034 = vmatprep.subr.bf16.mxu0 %v12402_v19  ;;  %5916 = vmatpush1.bf16.msra.mxu1 %v8190_v30 }
 0x5af   : > { %5931 = vmatprep.subr.bf16.mxu1 %v12402_v19 }
 0x5b1   : > { %6035 = vmatpush1.bf16.msra.mxu0 %v8175_v49 }
 0x5b2   : > { %6036 = vmatprep.subr.bf16.mxu0 %v12402_v19  ;;  %5932 = vmatpush2.bf16.msra.mxu1 %v8192_v53 }
 0x5b3   : > { %6210 = vmatprep.subr.bf16.mxu1 %v12402_v19 }
 0x5b4   : > { %7446 = vmatmul.mubr.msk.bf16.gmra.mxu0 %vm3096_vm4, %v8169_v36 }
 0x5b5   : > { %5592 = vmatprep.mubr.bf16.mxu0 %v12402_v19  ;;  %6037 = vmatpush1.bf16.msra.mxu0 %v8177_v3  ;;  %v8189_v3 = vld [vmem:[%s12123_s7 + $0x108] sm:$0xff]  }
 0x5b6   : > { %6038 = vmatprep.subr.bf16.mxu0 %v12402_v19 }
 0x5b9   : > { %6039 = vmatpush1.bf16.msra.mxu0 %v8179_v32 }
 0x5ba   : > { %6040 = vmatprep.subr.bf16.mxu0 %v12402_v19 }
 0x5bc   : > { %7447 = vmatmul.mubr.msk.bf16.gmra.mxu0 %vm3096_vm4, %v8170_v48 }
 0x5bd   : > { %5602 = vmatprep.mubr.bf16.mxu0 %v12402_v19  ;;  %6041 = vmatpush1.bf16.msra.mxu0 %v8181_v31 }
 0x5be   : > { %6042 = vmatprep.subr.bf16.mxu0 %v12402_v19 }
 0x5c1   : > { %6043 = vmatpush1.bf16.msra.mxu0 %v8183_v1 }
 0x5c2   : > { %6058 = vmatprep.subr.bf16.mxu0 %v12402_v19 }
 0x5c4   : > { %7448 = vmatmul.mubr.msk.bf16.gmra.mxu0 %vm3096_vm4, %v8171_v12 }
 0x5c5   : > { %6059 = vmatpush2.bf16.msra.mxu0 %v8185_v55 }
 0x5c6   : > { %6414 = vmatprep.subr.bf16.mxu0 %v12402_v19 }
 0x664   : > { %v11583_v22 = vpop.f32.mrf.mxu0 }
 0x666   : > { %v5566_v54 = vpop.f32.mrf.mxu0 }
 0x667   : > { %v7816_v34 = vpack.i.bf16 %v5566_v54, %v11583_v22 }
 0x668   : > { %v11595_v63 = vpop.f32.mrf.mxu0 }
 0x669   : > { %7817 = vrot.lane.b32.xlu1 %v7816_v34, %s8298_s28 }
 0x66a   : > { %v5570_v37 = vpop.f32.mrf.mxu0 }
 0x66b   : > { %v7821_v23 = vpack.i.bf16 %v5570_v37, %v11595_v63 }
 0x66c   : > { %v11601_v38 = vpop.f32.mrf.mxu0 }
 0x66d   : > { %7822 = vrot.lane.b32.xlu0 %v7821_v23, %s8298_s28 }
 0x66e   : > { %v11608_v58 = vpop.f32.mrf.mxu0 }
 0x66f   : > { %v7826_v2 = vpack.i.bf16 %v11608_v58, %v11601_v38 }
 0x670   : > { %v11615_v25 = vpop.f32.mrf.mxu0 }
 0x671   : > { %7827 = vrot.lane.b32.xlu1 %v7826_v2, %s8298_s28 }
 0x672   : > { %v5580_v29 = vpop.f32.mrf.mxu0 }
 0x673   : > { %v7831_v28 = vpack.i.bf16 %v5580_v29, %v11615_v25 }
 0x674   : > { %v11620_v47 = vpop.f32.mrf.mxu0 }
 0x675   : > { %7832 = vrot.lane.b32.xlu0 %v7831_v28, %s8298_s28 }
 0x676   : > { %v11627_v61 = vpop.f32.mrf.mxu0 }
 0x677   : > { %v7836_v21 = vpack.i.bf16 %v11627_v61, %v11620_v47 }
 0x678   : > { %v11631_v14 = vpop.f32.mrf.mxu0 }
 0x679   : > { %7837 = vrot.lane.b32.xlu1 %v7836_v21, %s8298_s28 }
 0x67a   : > { %v11635_v4 = vpop.f32.mrf.mxu0 }
 0x67b   : > { %v7841_v42 = vpack.i.bf16 %v11635_v4, %v11631_v14 }
 0x67c   : > { %v11639_v10 = vpop.f32.mrf.mxu0 }
 0x67d   : > { %7842 = vrot.lane.b32.xlu0 %v7841_v42, %s8298_s28 }
 0x67e   : > { %v11642_v33 = vpop.f32.mrf.mxu0 }
 0x67f   : > { %v7846_v17 = vpack.i.bf16 %v11642_v33, %v11639_v10 }
 0x680   : > { %v11646_v39 = vpop.f32.mrf.mxu0 }
 0x681   : > { %7847 = vrot.lane.b32.xlu1 %v7846_v17, %s8298_s28  ;;  %v8193_v17 = vld [vmem:[%s12123_s7 + $0xf8] sm:$0xff]  }
 0x682   : > { %v11649_v26 = vpop.f32.mrf.mxu0 }
 0x683   : > { %v7851_v13 = vpack.i.bf16 %v11649_v26, %v11646_v39 }
 0x684   : > { %v11653_v7 = vpop.f32.mrf.mxu0 }
 0x685   : > { %7852 = vrot.lane.b32.xlu0 %v7851_v13, %s8298_s28 }
 0x686   : > { %v11656_v27 = vpop.f32.mrf.mxu0 }
 0x687   : > { %v7856_v62 = vpack.i.bf16 %v11656_v27, %v11653_v7 }
 0x688   : > { %v5608_v9 = vpop.f32.mrf.mxu0 }
 0x689   : > { %7857 = vrot.lane.b32.xlu1 %v7856_v62, %s8298_s28  ;;  %v8194_v9 = vld [vmem:[%s12123_s7 + $0xc8] sm:$0xff]   ;;  %s12075_s28 = scalar_lea.hbm %s12130_s14, %s7607_s22 }
 0x68a   : > { %v5609_v15 = vpop.f32.mrf.mxu0 }
 0x6db   : > { %v7818_v20 = vpop.permute.xlu1 %7817 }
 0x6dc   : > { %v7820_v46 = vunpack.i.h.bf16 %v7818_v20  ;;  %v7819_v44 = vunpack.i.l.bf16 %v7818_v20 }
 0x6de   : > { %v5666_v5 = vsel %vm5665_vm9, %v7819_v44, %v7820_v46  ;;  %v5694_v24 = vmax.f32 %v5566_v54, %v7820_v46 }
 0x6df   : > { %v7823_v52 = vpop.permute.xlu0 %7822  ;;  %v5693_v16 = vmax.f32 %v11583_v22, %v5666_v5 }
 0x6e0   : > { %v7825_v45 = vunpack.i.h.bf16 %v7823_v52  ;;  %v7824_v51 = vunpack.i.l.bf16 %v7823_v52 }
 0x6e2   : > { %v5696_v59 = vmax.f32 %v5570_v37, %v7825_v45  ;;  %v5667_v56 = vsel %vm5665_vm9, %v7824_v51, %v7825_v45  ;;  %v8191_v37 = vld [vmem:[%s12123_s7 + $0x100] sm:$0xff]  }
 0x6e3   : > { %v5695_v57 = vmax.f32 %v11595_v63, %v5667_v56  ;;  %v7828_v40 = vpop.permute.xlu1 %7827  ;;  %v8195_v56 = vld [vmem:[%s12123_s7 + $0xf0] sm:$0xff]  }
 0x6e4   : > { %v11665_v36 = vpack.c.bf16 %v5696_v59, %v5694_v24  ;;  %v7830_v48 = vunpack.i.h.bf16 %v7828_v40  ;;  %v7829_v12 = vunpack.i.l.bf16 %v7828_v40 }
 0x6e5   : > { %v11670_v11 = vpack.c.bf16 %v5695_v57, %v5693_v16 }
 0x6e6   : > { %7489 = vmatprep.mubr.msk.bf16.mxu0 %vm5888_vm10, %v11665_v36  ;;  %v5773_v6 = vshll.u32 %v11665_v36, 16  ;;  %v5668_v43 = vsel %vm5665_vm9, %v7829_v12, %v7830_v48  ;;  %v5698_v31 = vmax.f32 %v11608_v58, %v7830_v48 }
 0x6e7   : > { %6061 = vmatmul.mubr.bf16.vlgmr.msra.gmra.mxu0 %v11670_v11  ;;  %v7833_v8 = vpop.permute.xlu0 %7832  ;;  %v5761_v32 = vshll.u32 %v11670_v11, 16  ;;  %v5697_v22 = vmax.f32 %v11601_v38, %v5668_v43  ;;  %v5771_v38 = vshrl.u32 %v11665_v36, 16 }
 0x6e8   : > { %6415 = vmatpush1.bf16.msra.mxu0 %v8187_v0  ;;  %v7835_v35 = vunpack.i.h.bf16 %v7833_v8  ;;  %v7834_v49 = vunpack.i.l.bf16 %v7833_v8  ;;  %v5775_v54 = vrot.slane %v5773_v6, 1 }
 0x6e9   : > { %6416 = vmatprep.subr.bf16.mxu0 %v12402_v19  ;;  %v5763_v41 = vrot.slane %v5761_v32, 1 }
 0x6ea   : > { %v5700_v60 = vmax.f32 %v5580_v29, %v7835_v35  ;;  %v5669_v1 = vsel %vm5665_vm9, %v7834_v49, %v7835_v35  ;;  %v5776_v30 = vor.u32 %v5775_v54, %v5771_v38 }
 0x6eb   : > { %v5699_v50 = vmax.f32 %v11615_v25, %v5669_v1  ;;  %v7838_v55 = vpop.permute.xlu1 %7837  ;;  %v5759_v25 = vshrl.u32 %v11670_v11, 16 }
 0x6ec   : > { %v11688_v34 = vpack.c.bf16 %v5700_v60, %v5698_v31  ;;  %6417 = vmatpush1.bf16.msra.mxu0 %v8189_v3  ;;  %v7840_v18 = vunpack.i.h.bf16 %v7838_v55  ;;  %v7839_v63 = vunpack.i.l.bf16 %v7838_v55  ;;  %v8197_v31 = vld [vmem:[%s12123_s7 + $0xe8] sm:$0xff]   ;;  %v6310_v55 = vrot.slane %v5773_v6, 2 }
 0x6ed   : > { %v11693_v23 = vpack.c.bf16 %v5699_v50, %v5697_v22  ;;  %6418 = vmatprep.subr.bf16.mxu0 %v12402_v19  ;;  %v5764_v13 = vor.u32 %v5763_v41, %v5759_v25  ;;  %v8198_v22 = vld [vmem:[%s12123_s7 + $0xb8] sm:$0xff]   ;;  %v6309_v50 = vrot.slane %v5771_v38, 1 }
 0x6ee   : > { %7490 = vmatprep.mubr.msk.bf16.mxu0 %vm5888_vm10, %v11688_v34  ;;  %v5778_v58 = vshll.u32 %v11688_v34, 16  ;;  %v5670_v28 = vsel %vm5665_vm9, %v7839_v63, %v7840_v18  ;;  %v5702_v15 = vmax.f32 %v11627_v61, %v7840_v18  ;;  %v5790_v24 = vshrl.u32 %v11688_v34, 16 }
 0x6ef   : > { %6069 = vmatmul.mubr.bf16.gmra.mxu0 %v11693_v23  ;;  %v7843_v2 = vpop.permute.xlu0 %7842  ;;  %v5766_v29 = vshll.u32 %v11693_v23, 16  ;;  %v5701_v52 = vmax.f32 %v11620_v47, %v5670_v28  ;;  %v5782_v57 = vshrl.u32 %v11693_v23, 16  ;;  %v8199_v28 = vld [vmem:[%s12123_s7 + $0xe0] sm:$0xff]  }
 0x6f0   : > { %6419 = vmatpush1.bf16.msra.mxu0 %v8191_v37  ;;  %v7845_v53 = vunpack.i.h.bf16 %v7843_v2  ;;  %v7844_v21 = vunpack.i.l.bf16 %v7843_v2  ;;  %v5780_v42 = vrot.slane %v5778_v58, 1  ;;  %v6312_v0 = vrot.slane %v5790_v24, 1 }
 0x6f1   : > { %6420 = vmatprep.subr.bf16.mxu0 %v12402_v19  ;;  %v5768_v62 = vrot.slane %v5766_v29, 1  ;;  %v6313_v8 = vrot.slane %v5778_v58, 2 }
 0x6f2   : > { %v5704_v20 = vmax.f32 %v11635_v4, %v7845_v53  ;;  %v5671_v46 = vsel %vm5665_vm9, %v7844_v21, %v7845_v53  ;;  %v5781_v44 = vsel %vm550_vm0, %v5776_v30, %v5780_v42  ;;  %v5792_v48 = vor.u32 %v5790_v24, %v5780_v42  ;;  %v8200_v53 = vld [vmem:[%s12123_s7 + $0xb0] sm:$0xff]  }
 0x6f3   : > { %v5703_v5 = vmax.f32 %v11631_v14, %v5671_v46  ;;  %7476 = vmatprep.mubr.msk.bf16.mxu1 %vm5888_vm10, %v5781_v44  ;;  %v7848_v45 = vpop.permute.xlu1 %7847  ;;  %v5769_v51 = vsel %vm550_vm0, %v5764_v13, %v5768_v62  ;;  %v8196_v14 = vld [vmem:[%s12123_s7 + $0xc0] sm:$0xff]   ;;  %v5784_v60 = vor.u32 %v5782_v57, %v5768_v62  ;;  %v11767_v6 = vor.u32 %v6313_v8, %v6312_v0 }
 0x6f4   : > { %v11726_v59 = vpack.c.bf16 %v5704_v20, %v5702_v15  ;;  %6421 = vmatpush1.bf16.msra.mxu0 %v8193_v17  ;;  %v7850_v61 = vunpack.i.h.bf16 %v7848_v45  ;;  %v7849_v4 = vunpack.i.l.bf16 %v7848_v45  ;;  %5934 = vmatmul.mubr.bf16.vlgmr.msra.gmra.mxu1 %v5769_v51  ;;  %v6311_v21 = vor.u32 %v6310_v55, %v6309_v50 }
 0x6f5   : > { %v11731_v47 = vpack.c.bf16 %v5703_v5, %v5701_v52  ;;  %6211 = vmatpush1.bf16.msra.mxu1 %v8194_v9  ;;  %6422 = vmatprep.subr.bf16.mxu0 %v12402_v19  ;;  %v6303_v17 = vrot.slane %v5761_v32, 2  ;;  %v6306_v5 = vrot.slane %v5766_v29, 2  ;;  %v6509_v50 = vrot.slane %v11665_v36, 2 }
 0x6f6   : > { %7491 = vmatprep.mubr.msk.bf16.mxu0 %vm5888_vm10, %v11726_v59  ;;  %6212 = vmatprep.subr.bf16.mxu1 %v12402_v19  ;;  %v5794_v16 = vshll.u32 %v11726_v59, 16  ;;  %v5672_v43 = vsel %vm5665_vm9, %v7849_v4, %v7850_v61  ;;  %v5706_v54 = vmax.f32 %v11642_v33, %v7850_v61  ;;  %v5806_v42 = vshrl.u32 %v11726_v59, 16  ;;  %v8202_v61 = vld [vmem:[%s12123_s7 + $0xa8] sm:$0xff]  }
 0x6f7   : > { %6077 = vmatmul.mubr.bf16.gmra.mxu0 %v11731_v47  ;;  %v7853_v40 = vpop.permute.xlu0 %7852  ;;  %v5786_v12 = vshll.u32 %v11731_v47, 16  ;;  %v5705_v41 = vmax.f32 %v11639_v10, %v5672_v43  ;;  %v6302_v10 = vrot.slane %v5759_v25, 1  ;;  %v6305_v25 = vrot.slane %v5782_v57, 1  ;;  %v8203_v43 = vld [vmem:[%s12123_s7 + $0x118] sm:$0xff]  }
 0x6f8   : > { %6423 = vmatpush1.bf16.msra.mxu0 %v8195_v56  ;;  %v7855_v35 = vunpack.i.h.bf16 %v7853_v40  ;;  %v7854_v49 = vunpack.i.l.bf16 %v7853_v40  ;;  %v5796_v3 = vrot.slane %v5794_v16, 1  ;;  %v6315_v20 = vsel %vm1683_vm1, %v6311_v21, %v11767_v6 }
 0x6f9   : > { %6213 = vmatpush1.bf16.msra.mxu1 %v8196_v14  ;;  %6424 = vmatprep.subr.bf16.mxu0 %v12402_v19  ;;  %v5788_v1 = vrot.slane %v5786_v12, 1  ;;  %v5798_v32 = vshrl.u32 %v11731_v47, 16  ;;  %v6320_v4 = vrot.slane %v5806_v42, 1  ;;  %v6321_v57 = vrot.slane %v5794_v16, 2  ;;  %v8204_v16 = vld [vmem:[%s12123_s7 + $0xa0] sm:$0xff]  }
 0x6fa   : > { %v5708_v18 = vmax.f32 %v11649_v26, %v7855_v35  ;;  %v5673_v63 = vsel %vm5665_vm9, %v7854_v49, %v7855_v35  ;;  %v5797_v37 = vsel %vm550_vm0, %v5792_v48, %v5796_v3  ;;  %6214 = vmatprep.subr.bf16.mxu1 %v12402_v19  ;;  %v5808_v44 = vor.u32 %v5806_v42, %v5796_v3 }
 0x6fb   : > { %v5707_v58 = vmax.f32 %v11646_v39, %v5673_v63  ;;  %7477 = vmatprep.mubr.msk.bf16.mxu1 %vm5888_vm10, %v5797_v37  ;;  %v7858_v38 = vpop.permute.xlu1 %7857  ;;  %v5789_v2 = vsel %vm550_vm0, %v5784_v60, %v5788_v1  ;;  %v5800_v51 = vor.u32 %v5798_v32, %v5788_v1  ;;  %v6307_v35 = vor.u32 %v6306_v5, %v6305_v25 }
 0x6fc   : > { %v11769_v33 = vpack.c.bf16 %v5708_v18, %v5706_v54  ;;  %6425 = vmatpush1.bf16.msra.mxu0 %v8197_v31  ;;  %v7860_v26 = vunpack.i.h.bf16 %v7858_v38  ;;  %v7859_v30 = vunpack.i.l.bf16 %v7858_v38  ;;  %5942 = vmatmul.mubr.bf16.gmra.mxu1 %v5789_v2  ;;  %v6304_v3 = vor.u32 %v6303_v17, %v6302_v10 }
 0x6fd   : > { %v11776_v39 = vpack.c.bf16 %v5707_v58, %v5705_v41  ;;  %6215 = vmatpush1.bf16.msra.mxu1 %v8198_v22  ;;  %6426 = vmatprep.subr.bf16.mxu0 %v12402_v19  ;;  %v6322_v31 = vor.u32 %v6321_v57, %v6320_v4  ;;  %v6125_v22 = vrot.slane %v11665_v36, 1  ;;  %v6126_v54 = vrot.slane %v11688_v34, 1  ;;  %v8205_v41 = vld [vmem:[%s12123_s7 + $0x98] sm:$0xff]  }
 0x6fe   : > { %v5710_v13 = vmax.f32 %v11656_v27, %v7860_v26  ;;  %v5674_v62 = vsel %vm5665_vm9, %v7859_v30, %v7860_v26  ;;  %7492 = vmatprep.mubr.msk.bf16.mxu0 %vm5888_vm10, %v11769_v33  ;;  %6216 = vmatprep.subr.bf16.mxu1 %v12402_v19  ;;  %v5810_v9 = vshll.u32 %v11769_v33, 16  ;;  %v5822_v29 = vshrl.u32 %v11769_v33, 16 }
 0x6ff   : > { %v5709_v15 = vmax.f32 %v11653_v7, %v5674_v62  ;;  %6085 = vmatmul.mubr.bf16.gmra.mxu0 %v11776_v39  ;;  %v5802_v27 = vshll.u32 %v11776_v39, 16  ;;  %v8201_v7 = vld [vmem:[%s12123_s7 + $0xd8] sm:$0xff]   ;;  %v5814_v60 = vshrl.u32 %v11776_v39, 16  ;;  %v6308_v55 = vsel %vm1683_vm1, %v6304_v3, %v6307_v35 }
 0x700   : > { %v11797_v46 = vpack.c.bf16 %v5710_v13, %v5710_v13  ;;  %6427 = vmatpush1.bf16.msra.mxu0 %v8199_v28  ;;  %7551 = vmatprep.mubr.msk.bf16.mxu0 %vm5888_vm10, %v6315_v20  ;;  %v5812_v52 = vrot.slane %v5810_v9, 1  ;;  %v6316_v18 = vrot.slane %v5798_v32, 1  ;;  %v6506_v63 = vrot.slane %v11670_v11, 2  ;;  %v8206_v13 = vld [vmem:[%s12123_s7 + $0x90] sm:$0xff]  }
 0x701   : > { %v11805_v45 = vpack.c.bf16 %v5709_v15, %v5709_v15  ;;  %6217 = vmatpush1.bf16.msra.mxu1 %v8200_v53  ;;  %6428 = vmatprep.subr.bf16.mxu0 %v12402_v19  ;;  %v5804_v24 = vrot.slane %v5802_v27, 1  ;;  %v6510_v58 = vrot.slane %v11688_v34, 2  ;;  %v6507_v38 = vrot.slane %v11693_v23, 2 }
 0x702   : > { %v5813_v56 = vsel %vm550_vm0, %v5808_v44, %v5812_v52  ;;  %6218 = vmatprep.subr.bf16.mxu1 %v12402_v19  ;;  %v5826_v14 = vshll.u32 %v11797_v46, 16  ;;  %v5824_v0 = vor.u32 %v5822_v29, %v5812_v52  ;;  %v6514_v36 = vrot.slane %v11726_v59, 2 }
 0x703   : > { %7478 = vmatprep.mubr.msk.bf16.mxu1 %vm5888_vm10, %v5813_v56  ;;  %v5805_v40 = vsel %vm550_vm0, %v5800_v51, %v5804_v24  ;;  %v5818_v48 = vshll.u32 %v11805_v45, 16  ;;  %v5816_v37 = vor.u32 %v5814_v60, %v5804_v24  ;;  %v6323_v2 = vsel %vm1683_vm1, %v11767_v6, %v6322_v31  ;;  %v8207_v51 = vld [vmem:[%s12123_s7 + $0xd0] sm:$0xff]  }
 0x704   : > { %6429 = vmatpush1.bf16.msra.mxu0 %v8201_v7  ;;  %5950 = vmatmul.mubr.bf16.gmra.mxu1 %v5805_v40  ;;  %v5828_v8 = vrot.slane %v5826_v14, 1  ;;  %v6317_v26 = vrot.slane %v5786_v12, 2  ;;  %v6328_v30 = vrot.slane %v5822_v29, 1  ;;  %v6329_v28 = vrot.slane %v5810_v9, 2 }
 0x705   : > { %6219 = vmatpush1.bf16.msra.mxu1 %v8202_v61  ;;  %6444 = vmatprep.subr.bf16.mxu0 %v12402_v19  ;;  %v5820_v1 = vrot.slane %v5818_v48, 1  ;;  %v11855_v53 = vsel %vm2123_vm3, %v6509_v50, %v6510_v58  ;;  %v11858_v34 = vsel %vm2123_vm3, %v6506_v63, %v6507_v38  ;;  %v11861_v21 = vsel %vm2123_vm3, %v6510_v58, %v6514_v36  ;;  %v8212_v63 = vld [vmem:[%s12123_s7 + $0x138] sm:$0xff]   ;;  %v8214_v58 = vld [vmem:[%s12123_s7 + $0x128] sm:$0xff]  }
 0x706   : > { %v5829_v49 = vsel %vm550_vm0, %v5824_v0, %v5828_v8  ;;  %6220 = vmatprep.subr.bf16.mxu1 %v12402_v19  ;;  %v6127_v6 = vsel %vm1279_vm2, %v6125_v22, %v6126_v54  ;;  %v6512_v12 = vrot.slane %v11731_v47, 2  ;;  %v6518_v42 = vrot.slane %v11769_v33, 2  ;;  %v8210_v22 = vld [vmem:[%s12123_s7 + $0x148] sm:$0xff]  }
 0x707   : > { %7479 = vmatprep.mubr.msk.bf16.mxu1 %vm5888_vm10, %v5829_v49  ;;  %v5821_v10 = vsel %vm550_vm0, %v5816_v37, %v5820_v1  ;;  %v6516_v17 = vrot.slane %v11776_v39, 2  ;;  %v6522_v62 = vrot.slane %v11797_v46, 2  ;;  %v6520_v25 = vrot.slane %v11805_v45, 2 }
 0x708   : > { %6445 = vmatpush2.bf16.msra.mxu0 %v8203_v43  ;;  %v6318_v9 = vor.u32 %v6317_v26, %v6316_v18  ;;  %v11876_v15 = vsel %vm2123_vm3, %v6507_v38, %v6512_v12  ;;  %v11879_v20 = vsel %vm2123_vm3, %v6514_v36, %v6518_v42  ;;  %v6330_v44 = vor.u32 %v6329_v28, %v6328_v30  ;;  %v8215_v36 = vld [vmem:[%s12123_s7 + $0x120] sm:$0xff]   ;;  %v8217_v28 = vld [vmem:[%s12126_s10 + $0x38] sm:$0xff]  }
 0x709   : > { %6221 = vmatpush1.bf16.msra.mxu1 %v8204_v16  ;;  %v11882_v32 = vsel %vm2123_vm3, %v6512_v12, %v6516_v17  ;;  %v6338_v52 = vshrl.u32 %v11797_v46, 16  ;;  %v11886_v7 = vsel %vm2123_vm3, %v6518_v42, %v6522_v62  ;;  %v11889_v5 = vsel %vm2123_vm3, %v6516_v17, %v6520_v25  ;;  %v8220_v25 = vld [vmem:[%s12126_s10 + $0x20] sm:$0xff]  }
 0x70a   : > { %6222 = vmatprep.subr.bf16.mxu1 %v12402_v19  ;;  %v6319_v24 = vsel %vm1683_vm1, %v6307_v35, %v6318_v9  ;;  %v6324_v61 = vrot.slane %v5814_v60, 1  ;;  %v6325_v4 = vrot.slane %v5802_v27, 2  ;;  %v6331_v56 = vsel %vm1683_vm1, %v6322_v31, %v6330_v44  ;;  %v8208_v27 = vld [vmem:[%s12123_s7 + $0x158] sm:$0xff]  }
 0x70b   : > { %6447 = vmatmul.mubr.bf16.vlgmr.msra.gmra.mxu0 %v6308_v55  ;;  %v6123_v29 = vrot.slane %v11693_v23, 1  ;;  %v6340_v57 = vrot.slane %v6338_v52, 1  ;;  %v6341_v40 = vrot.slane %v5826_v14, 2  ;;  %v6130_v0 = vrot.slane %v11726_v59, 1  ;;  %v8221_v52 = vld [vmem:[%s12126_s10 + $0x18] sm:$0xff]  }
 0x70c   : > { %7552 = vmatprep.mubr.msk.bf16.mxu0 %vm5888_vm10, %v6323_v2  ;;  %5958 = vmatmul.mubr.bf16.gmra.mxu1 %v5821_v10  ;;  %v6122_v8 = vrot.slane %v11670_v11, 1  ;;  %v6326_v43 = vor.u32 %v6325_v4, %v6324_v61  ;;  %v6332_v23 = vshrl.u32 %v11805_v45, 16  ;;  %v8209_v11 = vld [vmem:[%s12123_s7 + $0x150] sm:$0xff]   ;;  %v6335_v3 = vrot.slane %v5818_v48, 2 }
 0x70d   : > { %6223 = vmatpush1.bf16.msra.mxu1 %v8205_v41  ;;  %7520 = vmatprep.mubr.msk.bf16.mxu1 %vm5888_vm10, %v6127_v6  ;;  %v6342_v16 = vor.u32 %v6341_v40, %v6340_v57  ;;  %v6131_v14 = vsel %vm1279_vm2, %v6126_v54, %v6130_v0  ;;  %v6128_v60 = vrot.slane %v11731_v47, 1  ;;  %v6134_v1 = vrot.slane %v11769_v33, 1  ;;  %v8211_v47 = vld [vmem:[%s12123_s7 + $0x140] sm:$0xff]   ;;  %v8219_v6 = vld [vmem:[%s12126_s10 + $0x28] sm:$0xff]   ;;  %v8222_v4 = vld [vmem:[%s12126_s10 + $0x10] sm:$0xff]  }
 0x70e   : > { %6224 = vmatprep.subr.bf16.mxu1 %v12402_v19  ;;  %v6124_v35 = vsel %vm1279_vm2, %v6122_v8, %v6123_v29  ;;  %v6327_v59 = vsel %vm1683_vm1, %v6318_v9, %v6326_v43  ;;  %v6334_v49 = vrot.slane %v6332_v23, 1  ;;  %v6132_v54 = vrot.slane %v11776_v39, 1  ;;  %v8213_v39 = vld [vmem:[%s12123_s7 + $0x130] sm:$0xff]  }
 0x70f   : > { %v6343_v31 = vsel %vm1683_vm1, %v6330_v44, %v6342_v16  ;;  %v6129_v55 = vsel %vm1279_vm2, %v6123_v29, %v6128_v60  ;;  %v6135_v48 = vsel %vm1279_vm2, %v6130_v0, %v6134_v1  ;;  %v6138_v18 = vrot.slane %v11797_v46, 1 }
 0x710   : > { %v6336_v50 = vor.u32 %v6335_v3, %v6334_v49  ;;  %v6133_v37 = vsel %vm1279_vm2, %v6128_v60, %v6132_v54  ;;  %v6136_v46 = vrot.slane %v11805_v45, 1  ;;  %v8216_v45 = vld [vmem:[%s12123_s7 + $0x160] sm:$0xff]   ;;  %v8299_v2 = vmov 0.0  }
 0x711   : > { %6225 = vmatpush1.bf16.msra.mxu1 %v8206_v13  ;;  %v6139_v41 = vsel %vm1279_vm2, %v6134_v1, %v6138_v18  ;;  %7633 = vmatprep.subr.bf16.mxu0 %v8299_v2 }
 0x712   : > { %6240 = vmatprep.subr.bf16.mxu1 %v12402_v19  ;;  %v6337_v33 = vsel %vm1683_vm1, %v6326_v43, %v6336_v50  ;;  %v6137_v38 = vsel %vm1279_vm2, %v6132_v54, %v6136_v46 }
 0x713   : > { %6455 = vmatmul.mubr.bf16.gmra.mxu0 %v6319_v24 }
 0x714   : > { %7553 = vmatprep.mubr.msk.bf16.mxu0 %vm5888_vm10, %v6331_v56 }
 0x715   : > { %6241 = vmatpush2.bf16.msra.mxu1 %v8207_v51 }
 0x716   : > { %6594 = vmatprep.subr.bf16.mxu1 %v12402_v19 }
 0x718   : > { %6243 = vmatmul.mubr.bf16.vlgmr.msra.gmra.mxu1 %v6124_v35 }
 0x719   : > { %7521 = vmatprep.mubr.msk.bf16.mxu1 %vm5888_vm10, %v6131_v14  ;;  %6595 = vmatpush1.bf16.msra.mxu1 %v8208_v27 }
 0x71a   : > { %6596 = vmatprep.subr.bf16.mxu1 %v12402_v19 }
 0x71b   : > { %6463 = vmatmul.mubr.bf16.gmra.mxu0 %v6327_v59 }
 0x71c   : > { %7554 = vmatprep.mubr.msk.bf16.mxu0 %vm5888_vm10, %v6343_v31 }
 0x71d   : > { %6597 = vmatpush1.bf16.msra.mxu1 %v8209_v11 }
 0x71e   : > { %6598 = vmatprep.subr.bf16.mxu1 %v12402_v19 }
 0x720   : > { %6251 = vmatmul.mubr.bf16.gmra.mxu1 %v6129_v55 }
 0x721   : > { %7522 = vmatprep.mubr.msk.bf16.mxu1 %vm5888_vm10, %v6135_v48  ;;  %6599 = vmatpush1.bf16.msra.mxu1 %v8210_v22 }
 0x722   : > { %6600 = vmatprep.subr.bf16.mxu1 %v12402_v19 }
 0x723   : > { %6471 = vmatmul.mubr.bf16.gmra.mxu0 %v6337_v33 }
 0x724   : > { %7641 = vmatprep.mubr.msk.bf16.mxu0 %vm8300_vm11, %v8299_v2 }
 0x725   : > { %6601 = vmatpush1.bf16.msra.mxu1 %v8211_v47 }
 0x726   : > { %6602 = vmatprep.subr.bf16.mxu1 %v12402_v19 }
 0x728   : > { %6259 = vmatmul.mubr.bf16.gmra.mxu1 %v6133_v37 }
 0x729   : > { %7523 = vmatprep.mubr.msk.bf16.mxu1 %vm5888_vm10, %v6139_v41  ;;  %6603 = vmatpush1.bf16.msra.mxu1 %v8212_v63 }
 0x72a   : > { %6604 = vmatprep.subr.bf16.mxu1 %v12402_v19 }
 0x72d   : > { %6605 = vmatpush1.bf16.msra.mxu1 %v8213_v39 }
 0x72e   : > { %6606 = vmatprep.subr.bf16.mxu1 %v12402_v19 }
 0x730   : > { %6267 = vmatmul.mubr.bf16.gmra.mxu1 %v6137_v38 }
 0x731   : > { %6607 = vmatpush1.bf16.msra.mxu1 %v8214_v58  ;;  %7582 = vmatprep.mubr.msk.bf16.mxu1 %vm5888_vm10, %v11855_v53  ;;  %v8218_v53 = vld [vmem:[%s12126_s10 + $0x30] sm:$0xff]  }
 0x732   : > { %6608 = vmatprep.subr.bf16.mxu1 %v12402_v19 }
 0x735   : > { %6609 = vmatpush1.bf16.msra.mxu1 %v8215_v36 }
 0x736   : > { %6624 = vmatprep.subr.bf16.mxu1 %v12402_v19 }
 0x739   : > { %6625 = vmatpush2.bf16.msra.mxu1 %v8216_v45 }
 0x73a   : > { %7645 = vmatprep.subr.bf16.mxu1 %v8299_v2 }
 0x73c   : > { %6627 = vmatmul.mubr.bf16.vlgmr.msra.gmra.mxu1 %v11858_v34 }
 0x73d   : > { %7583 = vmatprep.mubr.msk.bf16.mxu1 %vm5888_vm10, %v11861_v21  ;;  %7646 = vmatpush3.bf16.msra.mxu1 %v8217_v28 }
 0x73e   : > { %7647 = vmatprep.subr.bf16.mxu1 %v8299_v2 }
 0x741   : > { %7648 = vmatpush3.bf16.msra.mxu1 %v8218_v53 }
 0x742   : > { %7649 = vmatprep.subr.bf16.mxu1 %v8299_v2 }
 0x744   : > { %6635 = vmatmul.mubr.bf16.gmra.mxu1 %v11876_v15 }
 0x745   : > { %7584 = vmatprep.mubr.msk.bf16.mxu1 %vm5888_vm10, %v11879_v20  ;;  %7650 = vmatpush3.bf16.msra.mxu1 %v8219_v6 }
 0x746   : > { %7651 = vmatprep.subr.bf16.mxu1 %v8299_v2 }
 0x749   : > { %7652 = vmatpush3.bf16.msra.mxu1 %v8220_v25 }
 0x74a   : > { %7653 = vmatprep.subr.bf16.mxu1 %v8299_v2 }
 0x74c   : > { %6643 = vmatmul.mubr.bf16.gmra.mxu1 %v11882_v32 }
 0x74d   : > { %7585 = vmatprep.mubr.msk.bf16.mxu1 %vm5888_vm10, %v11886_v7  ;;  %7654 = vmatpush3.bf16.msra.mxu1 %v8221_v52 }
 0x74e   : > { %7655 = vmatprep.subr.bf16.mxu1 %v8299_v2 }
 0x751   : > { %7656 = vmatpush3.bf16.msra.mxu1 %v8222_v4 }
 0x752   : > { %7657 = vmatprep.subr.bf16.mxu1 %v8299_v2 }
 0x754   : > { %6651 = vmatmul.mubr.bf16.gmra.mxu1 %v11889_v5 }
 0x755   : > { %7661 = vmatprep.mubr.msk.bf16.mxu1 %vm8300_vm11, %v8299_v2 }
 0x7a7   : > { %v6062_v19 = vpop.f32.mrf.mxu0 }
 0x7a9   : > { %v6064_v26 = vpop.f32.mrf.mxu0 }
 0x7ab   : > { %v6065_v30 = vpop.f32.mrf.mxu0 }
 0x7ad   : > { %v6067_v10 = vpop.f32.mrf.mxu0 }
 0x7af   : > { %v6070_v34 = vpop.f32.mrf.mxu0 }
 0x7b1   : > { %v6072_v21 = vpop.f32.mrf.mxu0 }
 0x7b3   : > { %v6073_v12 = vpop.f32.mrf.mxu0 }
 0x7b4   : > { %v5935_v42 = vpop.f32.mrf.mxu1 }
 0x7b5   : > { %v6063_v17 = vadd.f32 %v6062_v19, %v5935_v42  ;;  %v6075_v13 = vpop.f32.mrf.mxu0 }
 0x7b6   : > { %v5937_v62 = vpop.f32.mrf.mxu1 }
 0x7b7   : > { %v6078_v9 = vpop.f32.mrf.mxu0 }
 0x7b8   : > { %v5938_v15 = vpop.f32.mrf.mxu1 }
 0x7b9   : > { %v6066_v20 = vadd.f32 %v6065_v30, %v5938_v15  ;;  %v6080_v32 = vpop.f32.mrf.mxu0 }
 0x7ba   : > { %v5940_v44 = vpop.f32.mrf.mxu1 }
 0x7bb   : > { %v6081_v7 = vpop.f32.mrf.mxu0 }
 0x7bc   : > { %v5943_v5 = vpop.f32.mrf.mxu1 }
 0x7bd   : > { %v6071_v51 = vadd.f32 %v6070_v34, %v5943_v5  ;;  %v6083_v24 = vpop.f32.mrf.mxu0 }
 0x7be   : > { %v5945_v61 = vpop.f32.mrf.mxu1 }
 0x7bf   : > { %v6086_v56 = vpop.f32.mrf.mxu0 }
 0x7c0   : > { %v5946_v29 = vpop.f32.mrf.mxu1 }
 0x7c1   : > { %v6074_v57 = vadd.f32 %v6073_v12, %v5946_v29  ;;  %v6088_v40 = vpop.f32.mrf.mxu0 }
 0x7c2   : > { %v5948_v0 = vpop.f32.mrf.mxu1 }
 0x7c3   : > { %v6089_v8 = vpop.f32.mrf.mxu0 }
 0x7c4   : > { %v5951_v27 = vpop.f32.mrf.mxu1 }
 0x7c5   : > { %v12005_v43 = vadd.f32 %v6078_v9, %v5951_v27  ;;  %v6091_v23 = vpop.f32.mrf.mxu0 }
 0x7c6   : > { %v5953_v35 = vpop.f32.mrf.mxu1 }
 0x7c8   : > { %v5954_v16 = vpop.f32.mrf.mxu1 }
 0x7c9   : > { %v6082_v14 = vadd.f32 %v6081_v7, %v5954_v16 }
 0x7ca   : > { %v5956_v11 = vpop.f32.mrf.mxu1 }
 0x7cb   : > { %v6448_v59 = vpop.f32.mrf.mxu0 }
 0x7cc   : > { %v5959_v49 = vpop.f32.mrf.mxu1 }
 0x7cd   : > { %v12007_v3 = vadd.f32 %v6086_v56, %v5959_v49  ;;  %v6450_v31 = vpop.f32.mrf.mxu0 }
 0x7ce   : > { %v5961_v60 = vpop.f32.mrf.mxu1 }
 0x7cf   : > { %v6451_v1 = vpop.f32.mrf.mxu0 }
 0x7d0   : > { %v5962_v22 = vpop.f32.mrf.mxu1 }
 0x7d1   : > { %v12009_v50 = vadd.f32 %v6089_v8, %v5962_v22  ;;  %v6453_v55 = vpop.f32.mrf.mxu0 }
 0x7d2   : > { %v5964_v48 = vpop.f32.mrf.mxu1 }
 0x7d3   : > { %v6456_v47 = vpop.f32.mrf.mxu0 }
 0x7d5   : > { %v6458_v33 = vpop.f32.mrf.mxu0 }
 0x7d7   : > { %v6459_v54 = vpop.f32.mrf.mxu0 }
 0x7d8   : > { %v6244_v18 = vpop.f32.mrf.mxu1 }
 0x7d9   : > { %v6275_v63 = vadd.f32 %v6244_v18, %v6063_v17  ;;  %v6461_v37 = vpop.f32.mrf.mxu0 }
 0x7da   : > { %v6246_v41 = vpop.f32.mrf.mxu1 }
 0x7db   : > { %v6464_v39 = vpop.f32.mrf.mxu0  ;;  %v6479_v46 = vadd.f32 %v6448_v59, %v6275_v63 }
 0x7dc   : > { %v6247_v58 = vpop.f32.mrf.mxu1 }
 0x7dd   : > { %v6276_v38 = vadd.f32 %v6247_v58, %v6066_v20  ;;  %v6466_v36 = vpop.f32.mrf.mxu0 }
 0x7de   : > { %v6249_v45 = vpop.f32.mrf.mxu1 }
 0x7df   : > { %v6467_v19 = vpop.f32.mrf.mxu0  ;;  %v6480_v26 = vadd.f32 %v6451_v1, %v6276_v38  ;;  %v8225_v45 = vld [vmem:[%s12128_s12 + $0x38] sm:$0xff]  }
 0x7e0   : > { %v6252_v30 = vpop.f32.mrf.mxu1 }
 0x7e1   : > { %v6277_v28 = vadd.f32 %v6252_v30, %v6071_v51  ;;  %v6469_v10 = vpop.f32.mrf.mxu0  ;;  %v8228_v30 = vld [vmem:[%s12128_s12 + $0x20] sm:$0xff]  }
 0x7e2   : > { %v6254_v53 = vpop.f32.mrf.mxu1  ;;  %v8230_v10 = vld [vmem:[%s12128_s12 + $0x10] sm:$0xff]  }
 0x7e3   : > { %v6472_v34 = vpop.f32.mrf.mxu0  ;;  %v6481_v21 = vadd.f32 %v6456_v47, %v6277_v28  ;;  %v8229_v28 = vld [vmem:[%s12128_s12 + $0x18] sm:$0xff]   ;;  %v7586_v53 = vld [vmem:[%s12125_s9] ss:$0 sm:$0xff] }
 0x7e4   : > { %v6255_v6 = vpop.f32.mrf.mxu1 }
 0x7e5   : > { %v6278_v12 = vadd.f32 %v6255_v6, %v6074_v57  ;;  %v6474_v42 = vpop.f32.mrf.mxu0 }
 0x7e6   : > { %v6257_v17 = vpop.f32.mrf.mxu1 }
 0x7e7   : > { %v6475_v13 = vpop.f32.mrf.mxu0  ;;  %v6482_v62 = vadd.f32 %v6459_v54, %v6278_v12 }
 0x7e8   : > { %v6260_v25 = vpop.f32.mrf.mxu1 }
 0x7e9   : > { %v6477_v9 = vpop.f32.mrf.mxu0  ;;  %v6279_v16 = vadd.f32 %v6260_v25, %v12005_v43  ;;  %v8232_v25 = vld [vmem:[%s12128_s12] sm:$0xff]  }
 0x7ea   : > { %v6262_v15 = vpop.f32.mrf.mxu1  ;;  %v7588_v9 = vld [vmem:[%s12127_s11] ss:$0 sm:$0xff] }
 0x7eb   : > { %v6483_v60 = vadd.f32 %v6464_v39, %v6279_v16  ;;  %v8224_v39 = vld [vmem:[%s12126_s10] sm:$0xff]  }
 0x7ec   : > { %v6263_v20 = vpop.f32.mrf.mxu1 }
 0x7ed   : > { %v6280_v11 = vadd.f32 %v6263_v20, %v6082_v14 }
 0x7ee   : > { %v6265_v32 = vpop.f32.mrf.mxu1 }
 0x7ef   : > { %v6484_v1 = vadd.f32 %v6467_v19, %v6280_v11  ;;  %v8226_v19 = vld [vmem:[%s12128_s12 + $0x30] sm:$0xff]  }
 0x7f0   : > { %v6268_v44 = vpop.f32.mrf.mxu1 }
 0x7f1   : > { %v6281_v33 = vadd.f32 %v6268_v44, %v12007_v3  ;;  %v6667_v3 = vld [vmem:[%s12124_s8] sm:$0xf] }
 0x7f2   : > { %v6270_v52 = vpop.f32.mrf.mxu1 }
 0x7f3   : > { %v6485_v41 = vadd.f32 %v6472_v34, %v6281_v33 }
 0x7f4   : > { %v6271_v7 = vpop.f32.mrf.mxu1 }
 0x7f5   : > { %v6282_v54 = vadd.f32 %v6271_v7, %v12009_v50  ;;  %v8223_v50 = vld [vmem:[%s12126_s10 + $0x8] sm:$0xff]  }
 0x7f6   : > { %v6273_v5 = vpop.f32.mrf.mxu1  ;;  %7658 = vmatpush3.bf16.msra.mxu1 %v8223_v50 }
 0x7f7   : > { %7659 = vmatprep.subr.bf16.mxu1 %v8299_v2 }
 0x7fa   : > { %7660 = vmatpush3.bf16.msra.mxu1 %v8224_v39 }
 0x7fc   : > { %v6628_v51 = vpop.f32.mrf.mxu1 }
 0x7fd   : > { %v6659_v4 = vadd.f32 %v6628_v51, %v6479_v46  ;;  %v6486_v46 = vadd.f32 %v6475_v13, %v6282_v54 }
 0x7fe   : > { %v6630_v24 = vpop.f32.mrf.mxu1 }
 0x800   : > { %v6631_v61 = vpop.f32.mrf.mxu1 }
 0x801   : > { %v6660_v56 = vadd.f32 %v6631_v61, %v6480_v26  ;;  %v8227_v26 = vld [vmem:[%s12128_s12 + $0x28] sm:$0xff]  }
 0x802   : > { %v6633_v29 = vpop.f32.mrf.mxu1 }
 0x803   : > { %v6668_v57 = vpack.c.bf16 %v6660_v56, %v6659_v4 }
 0x804   : > { %v6636_v40 = vpop.f32.mrf.mxu1 }
 0x805   : > { %v6661_v27 = vadd.f32 %v6636_v40, %v6481_v21 }
 0x806   : > { %v6638_v0 = vpop.f32.mrf.mxu1 }
 0x808   : > { %v6639_v8 = vpop.f32.mrf.mxu1 }
 0x809   : > { %v6662_v23 = vadd.f32 %v6639_v8, %v6482_v62  ;;  %v8231_v62 = vld [vmem:[%s12128_s12 + $0x8] sm:$0xff]  }
 0x80a   : > { %v6641_v35 = vpop.f32.mrf.mxu1 }
 0x80b   : > { %v6669_v59 = vpack.c.bf16 %v6662_v23, %v6661_v27 }
 0x80c   : > { %v6644_v49 = vpop.f32.mrf.mxu1 }
 0x80d   : > { %v6663_v55 = vadd.f32 %v6644_v49, %v6483_v60 }
 0x80e   : > { %v6646_v31 = vpop.f32.mrf.mxu1 }
 0x810   : > { %v6647_v22 = vpop.f32.mrf.mxu1 }
 0x811   : > { %v6664_v48 = vadd.f32 %v6647_v22, %v6484_v1 }
 0x812   : > { %v6649_v47 = vpop.f32.mrf.mxu1 }
 0x813   : > { %v6670_v18 = vpack.c.bf16 %v6664_v48, %v6663_v55 }
 0x814   : > { %v6652_v63 = vpop.f32.mrf.mxu1 }
 0x815   : > { %v6665_v14 = vadd.f32 %v6652_v63, %v6485_v41 }
 0x816   : > { %v6654_v37 = vpop.f32.mrf.mxu1 }
 0x818   : > { %v6655_v43 = vpop.f32.mrf.mxu1 }
 0x819   : > { %v6666_v58 = vadd.f32 %v6655_v43, %v6486_v46 }
 0x81a   : > { %v6657_v38 = vpop.f32.mrf.mxu1 }
 0x81b   : > { %v6671_v36 = vpack.c.bf16 %v6666_v58, %v6665_v14 }
 0x81d   : > { %7634 = vmatpush3.bf16.msra.mxu0 %v6671_v36 }
 0x81e   : > { %7635 = vmatprep.subr.bf16.mxu0 %v8299_v2 }
 0x821   : > { %7636 = vmatpush3.bf16.msra.mxu0 %v6670_v18 }
 0x822   : > { %7637 = vmatprep.subr.bf16.mxu0 %v8299_v2 }
 0x825   : > { %7638 = vmatpush3.bf16.msra.mxu0 %v6669_v59 }
 0x826   : > { %7639 = vmatprep.subr.bf16.mxu0 %v8299_v2 }
 0x829   : > { %7640 = vmatpush3.bf16.msra.mxu0 %v6668_v57 }
 0x82a   : > { %7665 = vmatprep.subr.bf16.mxu0 %v8299_v2 }
 0x82c   : > { %7642 = vmatmul.mubr.msk.bf16.vlgmr.msra.gmra.mxu0 %vm6679_vm12, %v6667_v3 }
 0x82d   : > { %7681 = vmatprep.mubr.msk.bf16.mxu0 %vm8300_vm11, %v8299_v2  ;;  %7666 = vmatpush3.bf16.msra.mxu0 %v8225_v45 }
 0x82e   : > { %7667 = vmatprep.subr.bf16.mxu0 %v8299_v2 }
 0x831   : > { %7668 = vmatpush3.bf16.msra.mxu0 %v8226_v19 }
 0x832   : > { %7669 = vmatprep.subr.bf16.mxu0 %v8299_v2 }
 0x835   : > { %7670 = vmatpush3.bf16.msra.mxu0 %v8227_v26 }
 0x836   : > { %7671 = vmatprep.subr.bf16.mxu0 %v8299_v2 }
 0x839   : > { %7672 = vmatpush3.bf16.msra.mxu0 %v8228_v30 }
 0x83a   : > { %7673 = vmatprep.subr.bf16.mxu0 %v8299_v2 }
 0x83d   : > { %7674 = vmatpush3.bf16.msra.mxu0 %v8229_v28 }
 0x83e   : > { %7675 = vmatprep.subr.bf16.mxu0 %v8299_v2 }
 0x841   : > { %7676 = vmatpush3.bf16.msra.mxu0 %v8230_v10 }
 0x842   : > { %7677 = vmatprep.subr.bf16.mxu0 %v8299_v2 }
 0x845   : > { %7678 = vmatpush3.bf16.msra.mxu0 %v8231_v62 }
 0x846   : > { %7679 = vmatprep.subr.bf16.mxu0 %v8299_v2  ;;  %v7597_v2 = vld [vmem:[%s12129_s13] ss:$0 sm:$0xff] }
 0x849   : > { %7680 = vmatpush3.bf16.msra.mxu0 %v8232_v25 }
 0x8ec   : > { %v6717_v34 = vpop.f32.mrf.mxu0 }
 0x8ed   : > { %v6718_v21 = vadd.f32 %v7586_v53, %v6717_v34 }
 0x8ee   : > { %v7643_v6 = vpop.f32.mrf.mxu0 }
 0x8ef   : > { %v6723_v12 = vmax.f32 %v6718_v21, 0.0 }
 0x8f0   : > { %v6720_v42 = vpop.f32.mrf.mxu0 }
 0x8f1   : > { %v6724_v17 = vpack.c.bf16 %v6723_v12, %v6723_v12 }
 0x8f2   : > { %v7644_v13 = vpop.f32.mrf.mxu0 }
 0x8f3   : > { %7662 = vmatmul.mubr.bf16.vlgmr.msra.gmra.mxu1 %v6724_v17 }
 0x9b3   : > { %v6830_v15 = vpop.f32.mrf.mxu1 }
 0x9b4   : > { %v6831_v20 = vadd.f32 %v7588_v9, %v6830_v15 }
 0x9b5   : > { %v7663_v32 = vpop.f32.mrf.mxu1 }
 0x9b6   : > { %v6836_v44 = vmax.f32 %v6831_v20, 0.0 }
 0x9b7   : > { %v6833_v52 = vpop.f32.mrf.mxu1 }
 0x9b8   : > { %v6837_v7 = vpack.c.bf16 %v6836_v44, %v6836_v44 }
 0x9b9   : > { %v7664_v5 = vpop.f32.mrf.mxu1 }
 0x9ba   : > { %7682 = vmatmul.mubr.bf16.vlgmr.msra.gmra.mxu0 %v6837_v7 }
 0xa7a   : > { %v6943_v51 = vpop.f32.mrf.mxu0 }
 0xa7b   : > { %v6944_v24 = vadd.f32 %v7597_v2, %v6943_v51 }
 0xa7c   : > { %v7683_v61 = vpop.f32.mrf.mxu0 }
 0xa7d   : > { %6949 = vst [vmem:[%s460_s20] sm:$0xff] %v6944_v24 }
 0xa7e   : > { %v6946_v4 = vpop.f32.mrf.mxu0 }
 0xa7f   : > { %8246 = shalt.err (!%p8243_p3)
}
 0xa80   : > { %s8247_s25 = scalar_lea.hbm %s12075_s28, 128  ;;  %s8251_s20 = scalar_lea.hbm %s12130_s14, 256 }
 0xa81   : > { %p8248_p4 = scmp.ne.s32.totalorder %s12075_s28, %s8247_s25  ;;  %p8252_p9 = scmp.lt.s32.totalorder %s12075_s28, %s12130_s14 }
 0xa82   : > { %p8253_p10 = scmp.lt.s32.totalorder %s8251_s20, %s8247_s25 }
 0xa83   : > { %p8249_p7 = pnand %p8248_p4, %p8415_p5 }
 0xa84   : > { %p8254_p11 = por %p8253_p10, %p8252_p9 }
 0xa85   : > { %p8250_p8 = pneg %p8249_p7 }
 0xa87   : > { %p8255_p12 = pnand %p8254_p11, %p8250_p8 }
 0xa89   : > { %8258 = shalt.err (!%p8255_p12)
}
 0xa8a   : > { %7686 = dma.vmem_to_hbm [thread:$0]  (%p8415_p5), %s12077_s29, 128, %s12075_s28, %s6951_s15   ;;  %v7684_v56 = vpop.f32.mrf.mxu0 }
 0xa8b PF: > { %s12403_s21 = sld [smem:[#allocation5_spill]]  ;;  %p7692_p13 = scmp.ge.s32.totalorder %s8293_s16, 2 }
 0xa8d   : > { %p7689_p0 = pnand %p7692_p13, %p8419_p6 }
 0xa8f   : > { %p7690_p1 = pneg %p7689_p0 }
 0xa91   : > { %s6976_s19 = sand.u32 1, %s12403_s21  }
 0xa92   : > { %s6977_s24 = scalar_lea.sflag [#allocation3], %s6976_s19 }
 0xa93   : > { %8276 = dma.done.wait (%p7690_p1), %s6977_s24, 128  }
 0xa94   : > { %8278 = vsyncadd (%p7690_p1), %s6977_s24, 4294967168  ;;  %s12405_s16 = sld [smem:[#allocation7_spill]]  ;;  %s12408_s29 = smov %s8285_s30 }
 0xa95   : > { %s12406_s25 = sld [smem:[#allocation6_spill]] }
 0xa96   : > { %s12407_s15 = sld [smem:[#allocation8_spill]] }
 0xa9a   : > { %p24_p2 = scmp.ge.s32.totalorder %s12405_s16, 4  }
 0xa9b   : > { %s12409_s30 = smov %s12406_s25 }
 0xa9c   :  { %26 = sbr.rel (!%p24_p2) target bundleno = 3 (0x3), region = 123 }
 0xaa1   :  { %6982 = vsyncpa [#allocation3], 1 }
 0xaa2   :  { %6984 = vsyncpa [#allocation3 + $0x1], 1 }

</bundles_post_ra>
